<compile_context>
chip_gen: v5e
topology: v5e:2x2
jax: 0.10.0
libtpu: 0.0.40
codegen_flags: <defaults>
</compile_context>

<pallas_src>
import jax
import jax.numpy as jnp
from jax import lax
from jax.experimental import pallas as pl
from jax.experimental.pallas import tpu as pltpu

EPS = 1e-5
IMG = 28                    # spatial size of the never-compacted flat grid
S = IMG * IMG               # 784 real pixels per image
CORE = 896                  # per-image core width = 7*128 (784 + 112 zero pad)
PRE = 128                   # left slop  (conv6's padded taps reach -58)
POST = 128                  # right slop (largest positive tap shift is +116)
BUF = PRE + CORE + POST     # 1152: per-image activation buffer width
XW = CORE + POST            # 1024: per-image input row width (shifts >= 0)

# column offsets of each conv weight inside the packed (16, WP_COLS) matrix
W1_OFF, W2_OFF, W3_OFF, W4_OFF = 0, 128, 256, 384
W5_OFF, W6_OFF, W7_OFF, W8_OFF = 512, 768, 1024, 1152
WP_COLS = 1280


# ----------------------------------------------------------------------------
# Fused per-image Pallas kernel
# ----------------------------------------------------------------------------
def _cnn_kernel(x_ref,                    # (1, 1, XW)   one image, flat + zero tail
                wp_ref,                   # (16, 1280)   packed conv weights
                sb_ref,                   # (16, 16)     packed BN scale/bias columns
                mask_ref,                 # (1, CORE)    valid 7x7 positions (1.0/0.0)
                out_ref,                  # (1, 10, 1)   logits column for this image
                a1, a3, a4, a5,           # VMEM scratch (C, BUF) activations
                stk):                     # VMEM scratch (144, CORE) stacked taps
    f32 = jnp.float32

    # Zero ONLY the slop columns; the core columns are fully overwritten by
    # every layer's store.  (Zeroed every step: with "parallel" semantics each
    # core has its own scratch, so a program_id==0 gate would be unsafe.)
    for ref, c in ((a1, 8), (a3, 8), (a4, 16), (a5, 16)):
        ref[:, 0:PRE] = jnp.zeros((c, PRE), f32)
        ref[:, PRE + CORE:BUF] = jnp.zeros((c, POST), f32)

    # ---- helpers -----------------------------------------------------------
    def wmat(rows, col, width):                    # slice of the packed weights
        return wp_ref[0:rows, col:col + width]

    def relu_bn(z, c, idx):                        # ReLU, then eval-mode BatchNorm
        s = sb_ref[0:c, 2 * idx:2 * idx + 1]
        b = sb_ref[0:c, 2 * idx + 1:2 * idx + 2]
        return s * jnp.maximum(z, 0.0) + b

    def shifted(ref):                              # statically shifted flat-grid view
        return lambda sh: ref[:, PRE + sh:PRE + sh + CORE]

    def conv(read_fn, cin, k, dil, pad, rows, col):
        # Stacked-tap convolution: copy the k*k shifted (cin, CORE) views into
        # the stacked scratch (tap-major rows), then ONE MXU matmul with
        # contraction depth cin*k*k.  The lane-rotate copies run on the
        # XLU/load-store slots and overlap the MXU work.
        for i in range(k):
            for j in range(k):
                t = i * k + j
                shift = dil * ((i - pad) * IMG + (j - pad))
                stk[t * cin:(t + 1) * cin, :] = read_fn(shift)
        nrows = cin * k * k
        return jnp.dot(wmat(rows, col, nrows), stk[0:nrows, :],
                       preferred_element_type=f32)

    def store_core(ref, val):
        ref[:, PRE:PRE + CORE] = val               # lane-aligned, unmasked store

    # ---- convblock1: 5x5, 1 -> 8, ReLU + BN            (valid 24x24) -------
    z = conv(lambda sh: x_ref[0, :, sh:sh + CORE], 1, 5, 1, 0, 8, W1_OFF)
    store_core(a1, relu_bn(z, 8, 0))

    # ---- convblock2: 3x3, 8 -> 16, ReLU + BN           (valid 22x22) -------
    act2 = relu_bn(conv(shifted(a1), 8, 3, 1, 0, 16, W2_OFF), 16, 1)

    # ---- convblock3: 1x1 stride 2, 16 -> 8, no act/BN  (valid 11x11;
    #      output stays on the 28x28 flat grid, later layers use dilation 2) -
    store_core(a3, jnp.dot(wmat(8, W3_OFF, 16), act2, preferred_element_type=f32))

    # ---- convblock4: 3x3 (dil 2 on flat grid), 8 -> 16 (valid 9x9) ---------
    store_core(a4, relu_bn(conv(shifted(a3), 8, 3, 2, 0, 16, W4_OFF), 16, 2))

    # ---- convblock5: 3x3 (dil 2), 16 -> 16             (valid 7x7) ---------
    # Mask to the valid 7x7 positions so conv6's zero padding and the GAP read
    # exact zeros everywhere else (incl. the 112 in-core pad columns).
    z = conv(shifted(a4), 16, 3, 2, 0, 16, W5_OFF)
    store_core(a5, relu_bn(z, 16, 3) * mask_ref[...])

    # ---- convblock6: 3x3 pad 1 (dil 2), 16 -> 16       ('same' 7x7) --------
    act6 = relu_bn(conv(shifted(a5), 16, 3, 2, 1, 16, W6_OFF), 16, 4)

    # ---- convblock7: 1x1, 16 -> 10, ReLU + BN -------------------------------
    z7 = relu_bn(jnp.dot(wmat(10, W7_OFF, 16), act6, preferred_element_type=f32),
                 10, 5)                                            # (10, CORE)

    # ---- gap (AvgPool2d(7)) + convblock8 (1x1, 10 -> 10) --------------------
    # mask selects the 49 valid positions; 1/49 is folded into the packed
    # conv8 weights; conv8 is applied before the lane reduction (linear).
    z8 = jnp.dot(wmat(10, W8_OFF, 10), z7 * mask_ref[...],
                 preferred_element_type=f32)                       # (10, CORE)
    out_ref[0] = jnp.sum(z8, axis=1, keepdims=True)                # (10, 1)


# ----------------------------------------------------------------------------
# Host-side parameter packing (tiny) + pallas_call wrapper
# ----------------------------------------------------------------------------
def _bn_fold(gamma, beta, mean, var):
    s = gamma / jnp.sqrt(var + EPS)
    return s, beta - mean * s


def _taps(w):
    # (Cout, Cin, kh, kw) -> (Cout, kh*kw*Cin), tap-major to match the stacked
    # activation layout built in-kernel (stacked row = tap * Cin + channel).
    co, ci, kh, kw = w.shape
    return jnp.transpose(w, (0, 2, 3, 1)).reshape(co, kh * kw * ci)


def _pack_params(p):
    wp = jnp.zeros((16, WP_COLS), jnp.float32)

    def put(buf, mat, col):
        r, c = mat.shape
        return buf.at[:r, col:col + c].set(mat)

    wp = put(wp, _taps(p["w1"]), W1_OFF)                    # (8, 25)
    wp = put(wp, _taps(p["w2"]), W2_OFF)                    # (16, 72)
    wp = put(wp, p["w3"].reshape(8, 16), W3_OFF)            # (8, 16)
    wp = put(wp, _taps(p["w4"]), W4_OFF)                    # (16, 72)
    wp = put(wp, _taps(p["w5"]), W5_OFF)                    # (16, 144)
    wp = put(wp, _taps(p["w6"]), W6_OFF)                    # (16, 144)
    wp = put(wp, p["w7"].reshape(10, 16), W7_OFF)           # (10, 16)
    wp = put(wp, p["w8"].reshape(10, 10) / 49.0, W8_OFF)    # (10, 10), GAP 1/49 folded

    sb = jnp.zeros((16, 16), jnp.float32)
    for idx, key in enumerate(("bn1", "bn2", "bn4", "bn5", "bn6", "bn7")):
        s, b = _bn_fold(*p[key])
        c = s.shape[0]
        sb = sb.at[:c, 2 * idx].set(s)
        sb = sb.at[:c, 2 * idx + 1].set(b)
    return wp, sb


def _valid_mask():
    # 1.0 at flat-grid positions that are valid 7x7 outputs of conv5 (even
    # row/col <= 12), 0.0 elsewhere (including the 112 per-image pad columns).
    r = jnp.arange(CORE)
    yy, xx = r // IMG, r % IMG
    valid = (r < S) & (yy % 2 == 0) & (xx % 2 == 0) & (yy <= 12) & (xx <= 12)
    return valid.astype(jnp.float32).reshape(1, CORE)


def forward_pallas(x_nchw, p):
    n = x_nchw.shape[0]
    wp, sb = _pack_params(p)
    mask = _valid_mask()

    # Per-image flat row (row-major 28x28) with a zero tail so every positive
    # tap shift (max +116) reads zeros past the last real pixel.
    x_rows = jnp.pad(x_nchw.reshape(n, 1, S), ((0, 0), (0, 0), (0, XW - S)))

    # One grid step per image; for very large batches one could process a
    # chunk of images per step (896-strided blocks) to amortize per-step
    # overhead, keeping scratch well under v7x's 64 MiB VMEM.
    out = pl.pallas_call(
        _cnn_kernel,
        out_shape=jax.ShapeDtypeStruct((n, 10, 1), jnp.float32),
        grid=(n,),
        in_specs=[
            pl.BlockSpec((1, 1, XW), lambda i: (i, 0, 0)),   # one image per step
            pl.BlockSpec((16, WP_COLS), lambda i: (0, 0)),   # packed conv weights
            pl.BlockSpec((16, 16), lambda i: (0, 0)),        # packed BN scale/bias
            pl.BlockSpec((1, CORE), lambda i: (0, 0)),       # valid-position mask
        ],
        out_specs=pl.BlockSpec((1, 10, 1), lambda i: (i, 0, 0)),
        scratch_shapes=[
            pltpu.VMEM((8, BUF), jnp.float32),      # conv1 output
            pltpu.VMEM((8, BUF), jnp.float32),      # conv3 output
            pltpu.VMEM((16, BUF), jnp.float32),     # conv4 output
            pltpu.VMEM((16, BUF), jnp.float32),     # conv5 output (masked)
            pltpu.VMEM((144, CORE), jnp.float32),   # stacked-tap matmul operand
        ],
        compiler_params=pltpu.CompilerParams(
            dimension_semantics=("parallel",),      # batch steps are independent
            vmem_limit_bytes=32 * 1024 * 1024,
        ),
    )(x_rows, wp, sb, mask)
    return out.reshape(n, 10)


# ----------------------------------------------------------------------------
# Model parameters (deterministic) + pure-JAX reference for validation
# ----------------------------------------------------------------------------
def init_params():
    key = jax.random.PRNGKey(0)

    def conv_w(k, cout, cin, kh, kw):
        return 0.1 * jax.random.normal(k, (cout, cin, kh, kw), jnp.float32)

    def bn_p(k, c):
        k1, k2, k3, k4 = jax.random.split(k, 4)
        gamma = 1.0 + 0.1 * jax.random.normal(k1, (c,), jnp.float32)
        beta = 0.1 * jax.random.normal(k2, (c,), jnp.float32)
        mean = 0.1 * jax.random.normal(k3, (c,), jnp.float32)
        var = 1.0 + 0.1 * jnp.abs(jax.random.normal(k4, (c,), jnp.float32))
        return gamma, beta, mean, var

    keys = jax.random.split(key, 16)
    p = {}
    p["w1"] = conv_w(keys[0], 8, 1, 5, 5);    p["bn1"] = bn_p(keys[1], 8)
    p["w2"] = conv_w(keys[2], 16, 8, 3, 3);   p["bn2"] = bn_p(keys[3], 16)
    p["w3"] = conv_w(keys[4], 8, 16, 1, 1)                                    # stride 2, no act/BN
    p["w4"] = conv_w(keys[5], 16, 8, 3, 3);   p["bn4"] = bn_p(keys[6], 16)
    p["w5"] = conv_w(keys[7], 16, 16, 3, 3);  p["bn5"] = bn_p(keys[8], 16)
    p["w6"] = conv_w(keys[9], 16, 16, 3, 3);  p["bn6"] = bn_p(keys[10], 16)   # pad 1
    p["w7"] = conv_w(keys[11], 10, 16, 1, 1); p["bn7"] = bn_p(keys[12], 10)
    p["w8"] = conv_w(keys[13], 10, 10, 1, 1)                                  # no act/BN
    # the `conv1x1` block in __init__ is unused in forward(); not instantiated
    return p


def forward_ref(x, p):
    def conv(x, w, stride=1, padding=0):
        return lax.conv_general_dilated(
            x, w, (stride, stride), [(padding, padding), (padding, padding)],
            dimension_numbers=("NCHW", "OIHW", "NCHW"),
            precision=lax.Precision.HIGHEST)

    def bn(x, gamma, beta, mean, var):
        g = gamma[None, :, None, None]
        b = beta[None, :, None, None]
        m = mean[None, :, None, None]
        v = var[None, :, None, None]
        return g * (x - m) / jnp.sqrt(v + EPS) + b

    x = bn(jax.nn.relu(conv(x, p["w1"])), *p["bn1"])
    x = bn(jax.nn.relu(conv(x, p["w2"])), *p["bn2"])
    x = conv(x, p["w3"], stride=2)
    x = bn(jax.nn.relu(conv(x, p["w4"])), *p["bn4"])
    x = bn(jax.nn.relu(conv(x, p["w5"])), *p["bn5"])
    x = bn(jax.nn.relu(conv(x, p["w6"], padding=1)), *p["bn6"])
    x = bn(jax.nn.relu(conv(x, p["w7"])), *p["bn7"])
    x = jnp.mean(x, axis=(2, 3), keepdims=True)   # AvgPool2d(7) on 7x7
    x = conv(x, p["w8"])
    return x.reshape(-1, 10)


# ----------------------------------------------------------------------------
if __name__ == "__main__":
    params = init_params()
    x = jax.random.normal(jax.random.PRNGKey(0), (2, 1, 28, 28), jnp.float32)  # NCHW

    out = jax.block_until_ready(jax.jit(forward_pallas)(x, params))
    ref = jax.block_until_ready(forward_ref(x, params))

    assert out.shape == (2, 10), out.shape
    # 1e-3 tolerance: both sides use f32 MXU matmul paths; a real bug (wrong
    # tap / mask / BN fold) produces errors orders of magnitude larger.
    assert jnp.allclose(out, ref, atol=1e-3, rtol=1e-3), (
        "mismatch vs reference", float(jnp.max(jnp.abs(out - ref))))
    print("KERNEL_OK")
</pallas_src>

<mosaic_0001>
module attributes {stable_mosaic.version = 11 : i64} {
  func.func @_cnn_kernel(%arg0: i32, %arg1: memref<1x1x1024xf32, #tpu.memory_space<vmem>>, %arg2: memref<16x1280xf32, #tpu.memory_space<vmem>>, %arg3: memref<16x16xf32, #tpu.memory_space<vmem>>, %arg4: memref<1x896xf32, #tpu.memory_space<vmem>>, %arg5: memref<1x10x1xf32, #tpu.memory_space<vmem>>, %arg6: memref<8x1152xf32, #tpu.memory_space<vmem>>, %arg7: memref<8x1152xf32, #tpu.memory_space<vmem>>, %arg8: memref<16x1152xf32, #tpu.memory_space<vmem>>, %arg9: memref<16x1152xf32, #tpu.memory_space<vmem>>, %arg10: memref<144x896xf32, #tpu.memory_space<vmem>>) attributes {dimension_semantics = [#tpu.dimension_semantics<parallel>], iteration_bounds = array<i64: 2>, scalar_prefetch = 0 : i64, scratch_operands = 5 : i64, tpu.core_type = #tpu.core_type<tc>, window_params = [{transform_indices = @transform_0, window_bounds = array<i64: 1, 1, 1024>}, {pipeline_mode = #tpu.pipeline_mode<synchronous>, transform_indices = @transform_1, window_bounds = array<i64: 16, 1280>}, {pipeline_mode = #tpu.pipeline_mode<synchronous>, transform_indices = @transform_2, window_bounds = array<i64: 16, 16>}, {pipeline_mode = #tpu.pipeline_mode<synchronous>, transform_indices = @transform_3, window_bounds = array<i64: 1, 896>}, {transform_indices = @transform_4, window_bounds = array<i64: 1, 10, 1>}]} {
    %cst = arith.constant 0.000000e+00 : f32
    %0 = vector.broadcast %cst : f32 to vector<8x128xf32>
    %c0 = arith.constant 0 : index
    %c0_0 = arith.constant 0 : index
    %1 = vector.load %arg6[%c0, %c0_0] : memref<8x1152xf32, #tpu.memory_space<vmem>>, vector<8x128xf32>
    tpu.vector_store %arg6[%c0, %c0_0], %0 {strides = array<i32>} : memref<8x1152xf32, #tpu.memory_space<vmem>>, vector<8x128xf32>,
    %cst_1 = arith.constant 0.000000e+00 : f32
    %2 = vector.broadcast %cst_1 : f32 to vector<8x128xf32>
    %c0_2 = arith.constant 0 : index
    %c1024 = arith.constant 1024 : index
    %3 = vector.load %arg6[%c0_2, %c1024] : memref<8x1152xf32, #tpu.memory_space<vmem>>, vector<8x128xf32>
    tpu.vector_store %arg6[%c0_2, %c1024], %2 {strides = array<i32>} : memref<8x1152xf32, #tpu.memory_space<vmem>>, vector<8x128xf32>,
    %cst_3 = arith.constant 0.000000e+00 : f32
    %4 = vector.broadcast %cst_3 : f32 to vector<8x128xf32>
    %c0_4 = arith.constant 0 : index
    %c0_5 = arith.constant 0 : index
    %5 = vector.load %arg7[%c0_4, %c0_5] : memref<8x1152xf32, #tpu.memory_space<vmem>>, vector<8x128xf32>
    tpu.vector_store %arg7[%c0_4, %c0_5], %4 {strides = array<i32>} : memref<8x1152xf32, #tpu.memory_space<vmem>>, vector<8x128xf32>,
    %cst_6 = arith.constant 0.000000e+00 : f32
    %6 = vector.broadcast %cst_6 : f32 to vector<8x128xf32>
    %c0_7 = arith.constant 0 : index
    %c1024_8 = arith.constant 1024 : index
    %7 = vector.load %arg7[%c0_7, %c1024_8] : memref<8x1152xf32, #tpu.memory_space<vmem>>, vector<8x128xf32>
    tpu.vector_store %arg7[%c0_7, %c1024_8], %6 {strides = array<i32>} : memref<8x1152xf32, #tpu.memory_space<vmem>>, vector<8x128xf32>,
    %cst_9 = arith.constant 0.000000e+00 : f32
    %8 = vector.broadcast %cst_9 : f32 to vector<16x128xf32>
    %c0_10 = arith.constant 0 : index
    %c0_11 = arith.constant 0 : index
    %9 = vector.load %arg8[%c0_10, %c0_11] : memref<16x1152xf32, #tpu.memory_space<vmem>>, vector<16x128xf32>
    tpu.vector_store %arg8[%c0_10, %c0_11], %8 {strides = array<i32>} : memref<16x1152xf32, #tpu.memory_space<vmem>>, vector<16x128xf32>,
    %cst_12 = arith.constant 0.000000e+00 : f32
    %10 = vector.broadcast %cst_12 : f32 to vector<16x128xf32>
    %c0_13 = arith.constant 0 : index
    %c1024_14 = arith.constant 1024 : index
    %11 = vector.load %arg8[%c0_13, %c1024_14] : memref<16x1152xf32, #tpu.memory_space<vmem>>, vector<16x128xf32>
    tpu.vector_store %arg8[%c0_13, %c1024_14], %10 {strides = array<i32>} : memref<16x1152xf32, #tpu.memory_space<vmem>>, vector<16x128xf32>,
    %cst_15 = arith.constant 0.000000e+00 : f32
    %12 = vector.broadcast %cst_15 : f32 to vector<16x128xf32>
    %c0_16 = arith.constant 0 : index
    %c0_17 = arith.constant 0 : index
    %13 = vector.load %arg9[%c0_16, %c0_17] : memref<16x1152xf32, #tpu.memory_space<vmem>>, vector<16x128xf32>
    tpu.vector_store %arg9[%c0_16, %c0_17], %12 {strides = array<i32>} : memref<16x1152xf32, #tpu.memory_space<vmem>>, vector<16x128xf32>,
    %cst_18 = arith.constant 0.000000e+00 : f32
    %14 = vector.broadcast %cst_18 : f32 to vector<16x128xf32>
    %c0_19 = arith.constant 0 : index
    %c1024_20 = arith.constant 1024 : index
    %15 = vector.load %arg9[%c0_19, %c1024_20] : memref<16x1152xf32, #tpu.memory_space<vmem>>, vector<16x128xf32>
    tpu.vector_store %arg9[%c0_19, %c1024_20], %14 {strides = array<i32>} : memref<16x1152xf32, #tpu.memory_space<vmem>>, vector<16x128xf32>,
    %c0_21 = arith.constant 0 : index
    %c0_22 = arith.constant 0 : index
    %c0_23 = arith.constant 0 : index
    %16 = vector.load %arg1[%c0_21, %c0_22, %c0_23] : memref<1x1x1024xf32, #tpu.memory_space<vmem>>, vector<1x1x896xf32>
    %17 = vector.shape_cast %16 : vector<1x1x896xf32> to vector<1x896xf32>
    %c0_24 = arith.constant 0 : index
    %c0_25 = arith.constant 0 : index
    %18 = vector.load %arg10[%c0_24, %c0_25] : memref<144x896xf32, #tpu.memory_space<vmem>>, vector<1x896xf32>
    tpu.vector_store %arg10[%c0_24, %c0_25], %17 {strides = array<i32>} : memref<144x896xf32, #tpu.memory_space<vmem>>, vector<1x896xf32>,
    %c0_26 = arith.constant 0 : index
    %c0_27 = arith.constant 0 : index
    %c1 = arith.constant 1 : index
    %19 = vector.load %arg1[%c0_26, %c0_27, %c1] : memref<1x1x1024xf32, #tpu.memory_space<vmem>>, vector<1x1x896xf32>
    %20 = vector.shape_cast %19 : vector<1x1x896xf32> to vector<1x896xf32>
    %c1_28 = arith.constant 1 : index
    %c0_29 = arith.constant 0 : index
    %21 = vector.load %arg10[%c1_28, %c0_29] : memref<144x896xf32, #tpu.memory_space<vmem>>, vector<1x896xf32>
    tpu.vector_store %arg10[%c1_28, %c0_29], %20 {strides = array<i32>} : memref<144x896xf32, #tpu.memory_space<vmem>>, vector<1x896xf32>,
    %c0_30 = arith.constant 0 : index
    %c0_31 = arith.constant 0 : index
    %c2 = arith.constant 2 : index
    %22 = vector.load %arg1[%c0_30, %c0_31, %c2] : memref<1x1x1024xf32, #tpu.memory_space<vmem>>, vector<1x1x896xf32>
    %23 = vector.shape_cast %22 : vector<1x1x896xf32> to vector<1x896xf32>
    %c2_32 = arith.constant 2 : index
    %c0_33 = arith.constant 0 : index
    %24 = vector.load %arg10[%c2_32, %c0_33] : memref<144x896xf32, #tpu.memory_space<vmem>>, vector<1x896xf32>
    tpu.vector_store %arg10[%c2_32, %c0_33], %23 {strides = array<i32>} : memref<144x896xf32, #tpu.memory_space<vmem>>, vector<1x896xf32>,
    %c0_34 = arith.constant 0 : index
    %c0_35 = arith.constant 0 : index
    %c3 = arith.constant 3 : index
    %25 = vector.load %arg1[%c0_34, %c0_35, %c3] : memref<1x1x1024xf32, #tpu.memory_space<vmem>>, vector<1x1x896xf32>
    %26 = vector.shape_cast %25 : vector<1x1x896xf32> to vector<1x896xf32>
    %c3_36 = arith.constant 3 : index
    %c0_37 = arith.constant 0 : index
    %27 = vector.load %arg10[%c3_36, %c0_37] : memref<144x896xf32, #tpu.memory_space<vmem>>, vector<1x896xf32>
    tpu.vector_store %arg10[%c3_36, %c0_37], %26 {strides = array<i32>} : memref<144x896xf32, #tpu.memory_space<vmem>>, vector<1x896xf32>,
    %c0_38 = arith.constant 0 : index
    %c0_39 = arith.constant 0 : index
    %c4 = arith.constant 4 : index
    %28 = vector.load %arg1[%c0_38, %c0_39, %c4] : memref<1x1x1024xf32, #tpu.memory_space<vmem>>, vector<1x1x896xf32>
    %29 = vector.shape_cast %28 : vector<1x1x896xf32> to vector<1x896xf32>
    %c4_40 = arith.constant 4 : index
    %c0_41 = arith.constant 0 : index
    %30 = vector.load %arg10[%c4_40, %c0_41] : memref<144x896xf32, #tpu.memory_space<vmem>>, vector<1x896xf32>
    tpu.vector_store %arg10[%c4_40, %c0_41], %29 {strides = array<i32>} : memref<144x896xf32, #tpu.memory_space<vmem>>, vector<1x896xf32>,
    %c0_42 = arith.constant 0 : index
    %c0_43 = arith.constant 0 : index
    %c28 = arith.constant 28 : index
    %31 = vector.load %arg1[%c0_42, %c0_43, %c28] : memref<1x1x1024xf32, #tpu.memory_space<vmem>>, vector<1x1x896xf32>
    %32 = vector.shape_cast %31 : vector<1x1x896xf32> to vector<1x896xf32>
    %c5 = arith.constant 5 : index
    %c0_44 = arith.constant 0 : index
    %33 = vector.load %arg10[%c5, %c0_44] : memref<144x896xf32, #tpu.memory_space<vmem>>, vector<1x896xf32>
    tpu.vector_store %arg10[%c5, %c0_44], %32 {strides = array<i32>} : memref<144x896xf32, #tpu.memory_space<vmem>>, vector<1x896xf32>,
    %c0_45 = arith.constant 0 : index
    %c0_46 = arith.constant 0 : index
    %c29 = arith.constant 29 : index
    %34 = vector.load %arg1[%c0_45, %c0_46, %c29] : memref<1x1x1024xf32, #tpu.memory_space<vmem>>, vector<1x1x896xf32>
    %35 = vector.shape_cast %34 : vector<1x1x896xf32> to vector<1x896xf32>
    %c6 = arith.constant 6 : index
    %c0_47 = arith.constant 0 : index
    %36 = vector.load %arg10[%c6, %c0_47] : memref<144x896xf32, #tpu.memory_space<vmem>>, vector<1x896xf32>
    tpu.vector_store %arg10[%c6, %c0_47], %35 {strides = array<i32>} : memref<144x896xf32, #tpu.memory_space<vmem>>, vector<1x896xf32>,
    %c0_48 = arith.constant 0 : index
    %c0_49 = arith.constant 0 : index
    %c30 = arith.constant 30 : index
    %37 = vector.load %arg1[%c0_48, %c0_49, %c30] : memref<1x1x1024xf32, #tpu.memory_space<vmem>>, vector<1x1x896xf32>
    %38 = vector.shape_cast %37 : vector<1x1x896xf32> to vector<1x896xf32>
    %c7 = arith.constant 7 : index
    %c0_50 = arith.constant 0 : index
    %39 = vector.load %arg10[%c7, %c0_50] : memref<144x896xf32, #tpu.memory_space<vmem>>, vector<1x896xf32>
    tpu.vector_store %arg10[%c7, %c0_50], %38 {strides = array<i32>} : memref<144x896xf32, #tpu.memory_space<vmem>>, vector<1x896xf32>,
    %c0_51 = arith.constant 0 : index
    %c0_52 = arith.constant 0 : index
    %c31 = arith.constant 31 : index
    %40 = vector.load %arg1[%c0_51, %c0_52, %c31] : memref<1x1x1024xf32, #tpu.memory_space<vmem>>, vector<1x1x896xf32>
    %41 = vector.shape_cast %40 : vector<1x1x896xf32> to vector<1x896xf32>
    %c8 = arith.constant 8 : index
    %c0_53 = arith.constant 0 : index
    %42 = vector.load %arg10[%c8, %c0_53] : memref<144x896xf32, #tpu.memory_space<vmem>>, vector<1x896xf32>
    tpu.vector_store %arg10[%c8, %c0_53], %41 {strides = array<i32>} : memref<144x896xf32, #tpu.memory_space<vmem>>, vector<1x896xf32>,
    %c0_54 = arith.constant 0 : index
    %c0_55 = arith.constant 0 : index
    %c32 = arith.constant 32 : index
    %43 = vector.load %arg1[%c0_54, %c0_55, %c32] : memref<1x1x1024xf32, #tpu.memory_space<vmem>>, vector<1x1x896xf32>
    %44 = vector.shape_cast %43 : vector<1x1x896xf32> to vector<1x896xf32>
    %c9 = arith.constant 9 : index
    %c0_56 = arith.constant 0 : index
    %45 = vector.load %arg10[%c9, %c0_56] : memref<144x896xf32, #tpu.memory_space<vmem>>, vector<1x896xf32>
    tpu.vector_store %arg10[%c9, %c0_56], %44 {strides = array<i32>} : memref<144x896xf32, #tpu.memory_space<vmem>>, vector<1x896xf32>,
    %c0_57 = arith.constant 0 : index
    %c0_58 = arith.constant 0 : index
    %c56 = arith.constant 56 : index
    %46 = vector.load %arg1[%c0_57, %c0_58, %c56] : memref<1x1x1024xf32, #tpu.memory_space<vmem>>, vector<1x1x896xf32>
    %47 = vector.shape_cast %46 : vector<1x1x896xf32> to vector<1x896xf32>
    %c10 = arith.constant 10 : index
    %c0_59 = arith.constant 0 : index
    %48 = vector.load %arg10[%c10, %c0_59] : memref<144x896xf32, #tpu.memory_space<vmem>>, vector<1x896xf32>
    tpu.vector_store %arg10[%c10, %c0_59], %47 {strides = array<i32>} : memref<144x896xf32, #tpu.memory_space<vmem>>, vector<1x896xf32>,
    %c0_60 = arith.constant 0 : index
    %c0_61 = arith.constant 0 : index
    %c57 = arith.constant 57 : index
    %49 = vector.load %arg1[%c0_60, %c0_61, %c57] : memref<1x1x1024xf32, #tpu.memory_space<vmem>>, vector<1x1x896xf32>
    %50 = vector.shape_cast %49 : vector<1x1x896xf32> to vector<1x896xf32>
    %c11 = arith.constant 11 : index
    %c0_62 = arith.constant 0 : index
    %51 = vector.load %arg10[%c11, %c0_62] : memref<144x896xf32, #tpu.memory_space<vmem>>, vector<1x896xf32>
    tpu.vector_store %arg10[%c11, %c0_62], %50 {strides = array<i32>} : memref<144x896xf32, #tpu.memory_space<vmem>>, vector<1x896xf32>,
    %c0_63 = arith.constant 0 : index
    %c0_64 = arith.constant 0 : index
    %c58 = arith.constant 58 : index
    %52 = vector.load %arg1[%c0_63, %c0_64, %c58] : memref<1x1x1024xf32, #tpu.memory_space<vmem>>, vector<1x1x896xf32>
    %53 = vector.shape_cast %52 : vector<1x1x896xf32> to vector<1x896xf32>
    %c12 = arith.constant 12 : index
    %c0_65 = arith.constant 0 : index
    %54 = vector.load %arg10[%c12, %c0_65] : memref<144x896xf32, #tpu.memory_space<vmem>>, vector<1x896xf32>
    tpu.vector_store %arg10[%c12, %c0_65], %53 {strides = array<i32>} : memref<144x896xf32, #tpu.memory_space<vmem>>, vector<1x896xf32>,
    %c0_66 = arith.constant 0 : index
    %c0_67 = arith.constant 0 : index
    %c59 = arith.constant 59 : index
    %55 = vector.load %arg1[%c0_66, %c0_67, %c59] : memref<1x1x1024xf32, #tpu.memory_space<vmem>>, vector<1x1x896xf32>
    %56 = vector.shape_cast %55 : vector<1x1x896xf32> to vector<1x896xf32>
    %c13 = arith.constant 13 : index
    %c0_68 = arith.constant 0 : index
    %57 = vector.load %arg10[%c13, %c0_68] : memref<144x896xf32, #tpu.memory_space<vmem>>, vector<1x896xf32>
    tpu.vector_store %arg10[%c13, %c0_68], %56 {strides = array<i32>} : memref<144x896xf32, #tpu.memory_space<vmem>>, vector<1x896xf32>,
    %c0_69 = arith.constant 0 : index
    %c0_70 = arith.constant 0 : index
    %c60 = arith.constant 60 : index
    %58 = vector.load %arg1[%c0_69, %c0_70, %c60] : memref<1x1x1024xf32, #tpu.memory_space<vmem>>, vector<1x1x896xf32>
    %59 = vector.shape_cast %58 : vector<1x1x896xf32> to vector<1x896xf32>
    %c14 = arith.constant 14 : index
    %c0_71 = arith.constant 0 : index
    %60 = vector.load %arg10[%c14, %c0_71] : memref<144x896xf32, #tpu.memory_space<vmem>>, vector<1x896xf32>
    tpu.vector_store %arg10[%c14, %c0_71], %59 {strides = array<i32>} : memref<144x896xf32, #tpu.memory_space<vmem>>, vector<1x896xf32>,
    %c0_72 = arith.constant 0 : index
    %c0_73 = arith.constant 0 : index
    %c84 = arith.constant 84 : index
    %61 = vector.load %arg1[%c0_72, %c0_73, %c84] : memref<1x1x1024xf32, #tpu.memory_space<vmem>>, vector<1x1x896xf32>
    %62 = vector.shape_cast %61 : vector<1x1x896xf32> to vector<1x896xf32>
    %c15 = arith.constant 15 : index
    %c0_74 = arith.constant 0 : index
    %63 = vector.load %arg10[%c15, %c0_74] : memref<144x896xf32, #tpu.memory_space<vmem>>, vector<1x896xf32>
    tpu.vector_store %arg10[%c15, %c0_74], %62 {strides = array<i32>} : memref<144x896xf32, #tpu.memory_space<vmem>>, vector<1x896xf32>,
    %c0_75 = arith.constant 0 : index
    %c0_76 = arith.constant 0 : index
    %c85 = arith.constant 85 : index
    %64 = vector.load %arg1[%c0_75, %c0_76, %c85] : memref<1x1x1024xf32, #tpu.memory_space<vmem>>, vector<1x1x896xf32>
    %65 = vector.shape_cast %64 : vector<1x1x896xf32> to vector<1x896xf32>
    %c16 = arith.constant 16 : index
    %c0_77 = arith.constant 0 : index
    %66 = vector.load %arg10[%c16, %c0_77] : memref<144x896xf32, #tpu.memory_space<vmem>>, vector<1x896xf32>
    tpu.vector_store %arg10[%c16, %c0_77], %65 {strides = array<i32>} : memref<144x896xf32, #tpu.memory_space<vmem>>, vector<1x896xf32>,
    %c0_78 = arith.constant 0 : index
    %c0_79 = arith.constant 0 : index
    %c86 = arith.constant 86 : index
    %67 = vector.load %arg1[%c0_78, %c0_79, %c86] : memref<1x1x1024xf32, #tpu.memory_space<vmem>>, vector<1x1x896xf32>
    %68 = vector.shape_cast %67 : vector<1x1x896xf32> to vector<1x896xf32>
    %c17 = arith.constant 17 : index
    %c0_80 = arith.constant 0 : index
    %69 = vector.load %arg10[%c17, %c0_80] : memref<144x896xf32, #tpu.memory_space<vmem>>, vector<1x896xf32>
    tpu.vector_store %arg10[%c17, %c0_80], %68 {strides = array<i32>} : memref<144x896xf32, #tpu.memory_space<vmem>>, vector<1x896xf32>,
    %c0_81 = arith.constant 0 : index
    %c0_82 = arith.constant 0 : index
    %c87 = arith.constant 87 : index
    %70 = vector.load %arg1[%c0_81, %c0_82, %c87] : memref<1x1x1024xf32, #tpu.memory_space<vmem>>, vector<1x1x896xf32>
    %71 = vector.shape_cast %70 : vector<1x1x896xf32> to vector<1x896xf32>
    %c18 = arith.constant 18 : index
    %c0_83 = arith.constant 0 : index
    %72 = vector.load %arg10[%c18, %c0_83] : memref<144x896xf32, #tpu.memory_space<vmem>>, vector<1x896xf32>
    tpu.vector_store %arg10[%c18, %c0_83], %71 {strides = array<i32>} : memref<144x896xf32, #tpu.memory_space<vmem>>, vector<1x896xf32>,
    %c0_84 = arith.constant 0 : index
    %c0_85 = arith.constant 0 : index
    %c88 = arith.constant 88 : index
    %73 = vector.load %arg1[%c0_84, %c0_85, %c88] : memref<1x1x1024xf32, #tpu.memory_space<vmem>>, vector<1x1x896xf32>
    %74 = vector.shape_cast %73 : vector<1x1x896xf32> to vector<1x896xf32>
    %c19 = arith.constant 19 : index
    %c0_86 = arith.constant 0 : index
    %75 = vector.load %arg10[%c19, %c0_86] : memref<144x896xf32, #tpu.memory_space<vmem>>, vector<1x896xf32>
    tpu.vector_store %arg10[%c19, %c0_86], %74 {strides = array<i32>} : memref<144x896xf32, #tpu.memory_space<vmem>>, vector<1x896xf32>,
    %c0_87 = arith.constant 0 : index
    %c0_88 = arith.constant 0 : index
    %c112 = arith.constant 112 : index
    %76 = vector.load %arg1[%c0_87, %c0_88, %c112] : memref<1x1x1024xf32, #tpu.memory_space<vmem>>, vector<1x1x896xf32>
    %77 = vector.shape_cast %76 : vector<1x1x896xf32> to vector<1x896xf32>
    %c20 = arith.constant 20 : index
    %c0_89 = arith.constant 0 : index
    %78 = vector.load %arg10[%c20, %c0_89] : memref<144x896xf32, #tpu.memory_space<vmem>>, vector<1x896xf32>
    tpu.vector_store %arg10[%c20, %c0_89], %77 {strides = array<i32>} : memref<144x896xf32, #tpu.memory_space<vmem>>, vector<1x896xf32>,
    %c0_90 = arith.constant 0 : index
    %c0_91 = arith.constant 0 : index
    %c113 = arith.constant 113 : index
    %79 = vector.load %arg1[%c0_90, %c0_91, %c113] : memref<1x1x1024xf32, #tpu.memory_space<vmem>>, vector<1x1x896xf32>
    %80 = vector.shape_cast %79 : vector<1x1x896xf32> to vector<1x896xf32>
    %c21 = arith.constant 21 : index
    %c0_92 = arith.constant 0 : index
    %81 = vector.load %arg10[%c21, %c0_92] : memref<144x896xf32, #tpu.memory_space<vmem>>, vector<1x896xf32>
    tpu.vector_store %arg10[%c21, %c0_92], %80 {strides = array<i32>} : memref<144x896xf32, #tpu.memory_space<vmem>>, vector<1x896xf32>,
    %c0_93 = arith.constant 0 : index
    %c0_94 = arith.constant 0 : index
    %c114 = arith.constant 114 : index
    %82 = vector.load %arg1[%c0_93, %c0_94, %c114] : memref<1x1x1024xf32, #tpu.memory_space<vmem>>, vector<1x1x896xf32>
    %83 = vector.shape_cast %82 : vector<1x1x896xf32> to vector<1x896xf32>
    %c22 = arith.constant 22 : index
    %c0_95 = arith.constant 0 : index
    %84 = vector.load %arg10[%c22, %c0_95] : memref<144x896xf32, #tpu.memory_space<vmem>>, vector<1x896xf32>
    tpu.vector_store %arg10[%c22, %c0_95], %83 {strides = array<i32>} : memref<144x896xf32, #tpu.memory_space<vmem>>, vector<1x896xf32>,
    %c0_96 = arith.constant 0 : index
    %c0_97 = arith.constant 0 : index
    %c115 = arith.constant 115 : index
    %85 = vector.load %arg1[%c0_96, %c0_97, %c115] : memref<1x1x1024xf32, #tpu.memory_space<vmem>>, vector<1x1x896xf32>
    %86 = vector.shape_cast %85 : vector<1x1x896xf32> to vector<1x896xf32>
    %c23 = arith.constant 23 : index
    %c0_98 = arith.constant 0 : index
    %87 = vector.load %arg10[%c23, %c0_98] : memref<144x896xf32, #tpu.memory_space<vmem>>, vector<1x896xf32>
    tpu.vector_store %arg10[%c23, %c0_98], %86 {strides = array<i32>} : memref<144x896xf32, #tpu.memory_space<vmem>>, vector<1x896xf32>,
    %c0_99 = arith.constant 0 : index
    %c0_100 = arith.constant 0 : index
    %c116 = arith.constant 116 : index
    %88 = vector.load %arg1[%c0_99, %c0_100, %c116] : memref<1x1x1024xf32, #tpu.memory_space<vmem>>, vector<1x1x896xf32>
    %89 = vector.shape_cast %88 : vector<1x1x896xf32> to vector<1x896xf32>
    %c24 = arith.constant 24 : index
    %c0_101 = arith.constant 0 : index
    %90 = vector.load %arg10[%c24, %c0_101] : memref<144x896xf32, #tpu.memory_space<vmem>>, vector<1x896xf32>
    tpu.vector_store %arg10[%c24, %c0_101], %89 {strides = array<i32>} : memref<144x896xf32, #tpu.memory_space<vmem>>, vector<1x896xf32>,
    %c0_102 = arith.constant 0 : index
    %c0_103 = arith.constant 0 : index
    %91 = vector.load %arg2[%c0_102, %c0_103] : memref<16x1280xf32, #tpu.memory_space<vmem>>, vector<8x25xf32>
    %c0_104 = arith.constant 0 : index
    %c0_105 = arith.constant 0 : index
    %92 = vector.load %arg10[%c0_104, %c0_105] : memref<144x896xf32, #tpu.memory_space<vmem>>, vector<25x896xf32>
    %cst_106 = arith.constant dense<0.000000e+00> : vector<8x896xf32>
    %93 = tpu.matmul %91, %92, %cst_106 {dimension_numbers = #tpu.dot_dimension_numbers<[1], [0], [0], [1], [0, 0, 1, 1], [], []>} : vector<8x25xf32>, vector<25x896xf32>, vector<8x896xf32> -> vector<8x896xf32>
    %c0_107 = arith.constant 0 : index
    %c0_108 = arith.constant 0 : index
    %94 = vector.load %arg3[%c0_107, %c0_108] : memref<16x16xf32, #tpu.memory_space<vmem>>, vector<8x1xf32>
    %c0_109 = arith.constant 0 : index
    %c1_110 = arith.constant 1 : index
    %95 = vector.load %arg3[%c0_109, %c1_110] : memref<16x16xf32, #tpu.memory_space<vmem>>, vector<8x1xf32>
    %cst_111 = arith.constant 0.000000e+00 : f32
    %96 = vector.broadcast %cst_111 : f32 to vector<8x896xf32>
    %97 = arith.maximumf %93, %96 : vector<8x896xf32>
    %98 = vector.broadcast %94 : vector<8x1xf32> to vector<8x896xf32>
    %99 = arith.mulf %98, %97 : vector<8x896xf32>
    %100 = vector.broadcast %95 : vector<8x1xf32> to vector<8x896xf32>
    %101 = arith.addf %99, %100 : vector<8x896xf32>
    %c0_112 = arith.constant 0 : index
    %c128 = arith.constant 128 : index
    %102 = vector.load %arg6[%c0_112, %c128] : memref<8x1152xf32, #tpu.memory_space<vmem>>, vector<8x896xf32>
    tpu.vector_store %arg6[%c0_112, %c128], %101 {strides = array<i32>} : memref<8x1152xf32, #tpu.memory_space<vmem>>, vector<8x896xf32>,
    %c0_113 = arith.constant 0 : index
    %c128_114 = arith.constant 128 : index
    %103 = vector.load %arg6[%c0_113, %c128_114] : memref<8x1152xf32, #tpu.memory_space<vmem>>, vector<8x896xf32>
    %c0_115 = arith.constant 0 : index
    %c0_116 = arith.constant 0 : index
    %104 = vector.load %arg10[%c0_115, %c0_116] : memref<144x896xf32, #tpu.memory_space<vmem>>, vector<8x896xf32>
    tpu.vector_store %arg10[%c0_115, %c0_116], %103 {strides = array<i32>} : memref<144x896xf32, #tpu.memory_space<vmem>>, vector<8x896xf32>,
    %c0_117 = arith.constant 0 : index
    %c129 = arith.constant 129 : index
    %105 = vector.load %arg6[%c0_117, %c129] : memref<8x1152xf32, #tpu.memory_space<vmem>>, vector<8x896xf32>
    %c8_118 = arith.constant 8 : index
    %c0_119 = arith.constant 0 : index
    %106 = vector.load %arg10[%c8_118, %c0_119] : memref<144x896xf32, #tpu.memory_space<vmem>>, vector<8x896xf32>
    tpu.vector_store %arg10[%c8_118, %c0_119], %105 {strides = array<i32>} : memref<144x896xf32, #tpu.memory_space<vmem>>, vector<8x896xf32>,
    %c0_120 = arith.constant 0 : index
    %c130 = arith.constant 130 : index
    %107 = vector.load %arg6[%c0_120, %c130] : memref<8x1152xf32, #tpu.memory_space<vmem>>, vector<8x896xf32>
    %c16_121 = arith.constant 16 : index
    %c0_122 = arith.constant 0 : index
    %108 = vector.load %arg10[%c16_121, %c0_122] : memref<144x896xf32, #tpu.memory_space<vmem>>, vector<8x896xf32>
    tpu.vector_store %arg10[%c16_121, %c0_122], %107 {strides = array<i32>} : memref<144x896xf32, #tpu.memory_space<vmem>>, vector<8x896xf32>,
    %c0_123 = arith.constant 0 : index
    %c156 = arith.constant 156 : index
    %109 = vector.load %arg6[%c0_123, %c156] : memref<8x1152xf32, #tpu.memory_space<vmem>>, vector<8x896xf32>
    %c24_124 = arith.constant 24 : index
    %c0_125 = arith.constant 0 : index
    %110 = vector.load %arg10[%c24_124, %c0_125] : memref<144x896xf32, #tpu.memory_space<vmem>>, vector<8x896xf32>
    tpu.vector_store %arg10[%c24_124, %c0_125], %109 {strides = array<i32>} : memref<144x896xf32, #tpu.memory_space<vmem>>, vector<8x896xf32>,
    %c0_126 = arith.constant 0 : index
    %c157 = arith.constant 157 : index
    %111 = vector.load %arg6[%c0_126, %c157] : memref<8x1152xf32, #tpu.memory_space<vmem>>, vector<8x896xf32>
    %c32_127 = arith.constant 32 : index
    %c0_128 = arith.constant 0 : index
    %112 = vector.load %arg10[%c32_127, %c0_128] : memref<144x896xf32, #tpu.memory_space<vmem>>, vector<8x896xf32>
    tpu.vector_store %arg10[%c32_127, %c0_128], %111 {strides = array<i32>} : memref<144x896xf32, #tpu.memory_space<vmem>>, vector<8x896xf32>,
    %c0_129 = arith.constant 0 : index
    %c158 = arith.constant 158 : index
    %113 = vector.load %arg6[%c0_129, %c158] : memref<8x1152xf32, #tpu.memory_space<vmem>>, vector<8x896xf32>
    %c40 = arith.constant 40 : index
    %c0_130 = arith.constant 0 : index
    %114 = vector.load %arg10[%c40, %c0_130] : memref<144x896xf32, #tpu.memory_space<vmem>>, vector<8x896xf32>
    tpu.vector_store %arg10[%c40, %c0_130], %113 {strides = array<i32>} : memref<144x896xf32, #tpu.memory_space<vmem>>, vector<8x896xf32>,
    %c0_131 = arith.constant 0 : index
    %c184 = arith.constant 184 : index
    %115 = vector.load %arg6[%c0_131, %c184] : memref<8x1152xf32, #tpu.memory_space<vmem>>, vector<8x896xf32>
    %c48 = arith.constant 48 : index
    %c0_132 = arith.constant 0 : index
    %116 = vector.load %arg10[%c48, %c0_132] : memref<144x896xf32, #tpu.memory_space<vmem>>, vector<8x896xf32>
    tpu.vector_store %arg10[%c48, %c0_132], %115 {strides = array<i32>} : memref<144x896xf32, #tpu.memory_space<vmem>>, vector<8x896xf32>,
    %c0_133 = arith.constant 0 : index
    %c185 = arith.constant 185 : index
    %117 = vector.load %arg6[%c0_133, %c185] : memref<8x1152xf32, #tpu.memory_space<vmem>>, vector<8x896xf32>
    %c56_134 = arith.constant 56 : index
    %c0_135 = arith.constant 0 : index
    %118 = vector.load %arg10[%c56_134, %c0_135] : memref<144x896xf32, #tpu.memory_space<vmem>>, vector<8x896xf32>
    tpu.vector_store %arg10[%c56_134, %c0_135], %117 {strides = array<i32>} : memref<144x896xf32, #tpu.memory_space<vmem>>, vector<8x896xf32>,
    %c0_136 = arith.constant 0 : index
    %c186 = arith.constant 186 : index
    %119 = vector.load %arg6[%c0_136, %c186] : memref<8x1152xf32, #tpu.memory_space<vmem>>, vector<8x896xf32>
    %c64 = arith.constant 64 : index
    %c0_137 = arith.constant 0 : index
    %120 = vector.load %arg10[%c64, %c0_137] : memref<144x896xf32, #tpu.memory_space<vmem>>, vector<8x896xf32>
    tpu.vector_store %arg10[%c64, %c0_137], %119 {strides = array<i32>} : memref<144x896xf32, #tpu.memory_space<vmem>>, vector<8x896xf32>,
    %c0_138 = arith.constant 0 : index
    %c128_139 = arith.constant 128 : index
    %121 = vector.load %arg2[%c0_138, %c128_139] : memref<16x1280xf32, #tpu.memory_space<vmem>>, vector<16x72xf32>
    %c0_140 = arith.constant 0 : index
    %c0_141 = arith.constant 0 : index
    %122 = vector.load %arg10[%c0_140, %c0_141] : memref<144x896xf32, #tpu.memory_space<vmem>>, vector<72x896xf32>
    %cst_142 = arith.constant dense<0.000000e+00> : vector<16x896xf32>
    %123 = tpu.matmul %121, %122, %cst_142 {dimension_numbers = #tpu.dot_dimension_numbers<[1], [0], [0], [1], [0, 0, 1, 1], [], []>} : vector<16x72xf32>, vector<72x896xf32>, vector<16x896xf32> -> vector<16x896xf32>
    %c0_143 = arith.constant 0 : index
    %c2_144 = arith.constant 2 : index
    %124 = vector.load %arg3[%c0_143, %c2_144] : memref<16x16xf32, #tpu.memory_space<vmem>>, vector<16x1xf32>
    %c0_145 = arith.constant 0 : index
    %c3_146 = arith.constant 3 : index
    %125 = vector.load %arg3[%c0_145, %c3_146] : memref<16x16xf32, #tpu.memory_space<vmem>>, vector<16x1xf32>
    %cst_147 = arith.constant 0.000000e+00 : f32
    %126 = vector.broadcast %cst_147 : f32 to vector<16x896xf32>
    %127 = arith.maximumf %123, %126 : vector<16x896xf32>
    %128 = vector.broadcast %124 : vector<16x1xf32> to vector<16x896xf32>
    %129 = arith.mulf %128, %127 : vector<16x896xf32>
    %130 = vector.broadcast %125 : vector<16x1xf32> to vector<16x896xf32>
    %131 = arith.addf %129, %130 : vector<16x896xf32>
    %c0_148 = arith.constant 0 : index
    %c256 = arith.constant 256 : index
    %132 = vector.load %arg2[%c0_148, %c256] : memref<16x1280xf32, #tpu.memory_space<vmem>>, vector<8x16xf32>
    %cst_149 = arith.constant dense<0.000000e+00> : vector<8x896xf32>
    %133 = tpu.matmul %132, %131, %cst_149 {dimension_numbers = #tpu.dot_dimension_numbers<[1], [0], [0], [1], [0, 0, 1, 1], [], []>} : vector<8x16xf32>, vector<16x896xf32>, vector<8x896xf32> -> vector<8x896xf32>
    %c0_150 = arith.constant 0 : index
    %c128_151 = arith.constant 128 : index
    %134 = vector.load %arg7[%c0_150, %c128_151] : memref<8x1152xf32, #tpu.memory_space<vmem>>, vector<8x896xf32>
    tpu.vector_store %arg7[%c0_150, %c128_151], %133 {strides = array<i32>} : memref<8x1152xf32, #tpu.memory_space<vmem>>, vector<8x896xf32>,
    %c0_152 = arith.constant 0 : index
    %c128_153 = arith.constant 128 : index
    %135 = vector.load %arg7[%c0_152, %c128_153] : memref<8x1152xf32, #tpu.memory_space<vmem>>, vector<8x896xf32>
    %c0_154 = arith.constant 0 : index
    %c0_155 = arith.constant 0 : index
    %136 = vector.load %arg10[%c0_154, %c0_155] : memref<144x896xf32, #tpu.memory_space<vmem>>, vector<8x896xf32>
    tpu.vector_store %arg10[%c0_154, %c0_155], %135 {strides = array<i32>} : memref<144x896xf32, #tpu.memory_space<vmem>>, vector<8x896xf32>,
    %c0_156 = arith.constant 0 : index
    %c130_157 = arith.constant 130 : index
    %137 = vector.load %arg7[%c0_156, %c130_157] : memref<8x1152xf32, #tpu.memory_space<vmem>>, vector<8x896xf32>
    %c8_158 = arith.constant 8 : index
    %c0_159 = arith.constant 0 : index
    %138 = vector.load %arg10[%c8_158, %c0_159] : memref<144x896xf32, #tpu.memory_space<vmem>>, vector<8x896xf32>
    tpu.vector_store %arg10[%c8_158, %c0_159], %137 {strides = array<i32>} : memref<144x896xf32, #tpu.memory_space<vmem>>, vector<8x896xf32>,
    %c0_160 = arith.constant 0 : index
    %c132 = arith.constant 132 : index
    %139 = vector.load %arg7[%c0_160, %c132] : memref<8x1152xf32, #tpu.memory_space<vmem>>, vector<8x896xf32>
    %c16_161 = arith.constant 16 : index
    %c0_162 = arith.constant 0 : index
    %140 = vector.load %arg10[%c16_161, %c0_162] : memref<144x896xf32, #tpu.memory_space<vmem>>, vector<8x896xf32>
    tpu.vector_store %arg10[%c16_161, %c0_162], %139 {strides = array<i32>} : memref<144x896xf32, #tpu.memory_space<vmem>>, vector<8x896xf32>,
    %c0_163 = arith.constant 0 : index
    %c184_164 = arith.constant 184 : index
    %141 = vector.load %arg7[%c0_163, %c184_164] : memref<8x1152xf32, #tpu.memory_space<vmem>>, vector<8x896xf32>
    %c24_165 = arith.constant 24 : index
    %c0_166 = arith.constant 0 : index
    %142 = vector.load %arg10[%c24_165, %c0_166] : memref<144x896xf32, #tpu.memory_space<vmem>>, vector<8x896xf32>
    tpu.vector_store %arg10[%c24_165, %c0_166], %141 {strides = array<i32>} : memref<144x896xf32, #tpu.memory_space<vmem>>, vector<8x896xf32>,
    %c0_167 = arith.constant 0 : index
    %c186_168 = arith.constant 186 : index
    %143 = vector.load %arg7[%c0_167, %c186_168] : memref<8x1152xf32, #tpu.memory_space<vmem>>, vector<8x896xf32>
    %c32_169 = arith.constant 32 : index
    %c0_170 = arith.constant 0 : index
    %144 = vector.load %arg10[%c32_169, %c0_170] : memref<144x896xf32, #tpu.memory_space<vmem>>, vector<8x896xf32>
    tpu.vector_store %arg10[%c32_169, %c0_170], %143 {strides = array<i32>} : memref<144x896xf32, #tpu.memory_space<vmem>>, vector<8x896xf32>,
    %c0_171 = arith.constant 0 : index
    %c188 = arith.constant 188 : index
    %145 = vector.load %arg7[%c0_171, %c188] : memref<8x1152xf32, #tpu.memory_space<vmem>>, vector<8x896xf32>
    %c40_172 = arith.constant 40 : index
    %c0_173 = arith.constant 0 : index
    %146 = vector.load %arg10[%c40_172, %c0_173] : memref<144x896xf32, #tpu.memory_space<vmem>>, vector<8x896xf32>
    tpu.vector_store %arg10[%c40_172, %c0_173], %145 {strides = array<i32>} : memref<144x896xf32, #tpu.memory_space<vmem>>, vector<8x896xf32>,
    %c0_174 = arith.constant 0 : index
    %c240 = arith.constant 240 : index
    %147 = vector.load %arg7[%c0_174, %c240] : memref<8x1152xf32, #tpu.memory_space<vmem>>, vector<8x896xf32>
    %c48_175 = arith.constant 48 : index
    %c0_176 = arith.constant 0 : index
    %148 = vector.load %arg10[%c48_175, %c0_176] : memref<144x896xf32, #tpu.memory_space<vmem>>, vector<8x896xf32>
    tpu.vector_store %arg10[%c48_175, %c0_176], %147 {strides = array<i32>} : memref<144x896xf32, #tpu.memory_space<vmem>>, vector<8x896xf32>,
    %c0_177 = arith.constant 0 : index
    %c242 = arith.constant 242 : index
    %149 = vector.load %arg7[%c0_177, %c242] : memref<8x1152xf32, #tpu.memory_space<vmem>>, vector<8x896xf32>
    %c56_178 = arith.constant 56 : index
    %c0_179 = arith.constant 0 : index
    %150 = vector.load %arg10[%c56_178, %c0_179] : memref<144x896xf32, #tpu.memory_space<vmem>>, vector<8x896xf32>
    tpu.vector_store %arg10[%c56_178, %c0_179], %149 {strides = array<i32>} : memref<144x896xf32, #tpu.memory_space<vmem>>, vector<8x896xf32>,
    %c0_180 = arith.constant 0 : index
    %c244 = arith.constant 244 : index
    %151 = vector.load %arg7[%c0_180, %c244] : memref<8x1152xf32, #tpu.memory_space<vmem>>, vector<8x896xf32>
    %c64_181 = arith.constant 64 : index
    %c0_182 = arith.constant 0 : index
    %152 = vector.load %arg10[%c64_181, %c0_182] : memref<144x896xf32, #tpu.memory_space<vmem>>, vector<8x896xf32>
    tpu.vector_store %arg10[%c64_181, %c0_182], %151 {strides = array<i32>} : memref<144x896xf32, #tpu.memory_space<vmem>>, vector<8x896xf32>,
    %c0_183 = arith.constant 0 : index
    %c384 = arith.constant 384 : index
    %153 = vector.load %arg2[%c0_183, %c384] : memref<16x1280xf32, #tpu.memory_space<vmem>>, vector<16x72xf32>
    %c0_184 = arith.constant 0 : index
    %c0_185 = arith.constant 0 : index
    %154 = vector.load %arg10[%c0_184, %c0_185] : memref<144x896xf32, #tpu.memory_space<vmem>>, vector<72x896xf32>
    %cst_186 = arith.constant dense<0.000000e+00> : vector<16x896xf32>
    %155 = tpu.matmul %153, %154, %cst_186 {dimension_numbers = #tpu.dot_dimension_numbers<[1], [0], [0], [1], [0, 0, 1, 1], [], []>} : vector<16x72xf32>, vector<72x896xf32>, vector<16x896xf32> -> vector<16x896xf32>
    %c0_187 = arith.constant 0 : index
    %c4_188 = arith.constant 4 : index
    %156 = vector.load %arg3[%c0_187, %c4_188] : memref<16x16xf32, #tpu.memory_space<vmem>>, vector<16x1xf32>
    %c0_189 = arith.constant 0 : index
    %c5_190 = arith.constant 5 : index
    %157 = vector.load %arg3[%c0_189, %c5_190] : memref<16x16xf32, #tpu.memory_space<vmem>>, vector<16x1xf32>
    %cst_191 = arith.constant 0.000000e+00 : f32
    %158 = vector.broadcast %cst_191 : f32 to vector<16x896xf32>
    %159 = arith.maximumf %155, %158 : vector<16x896xf32>
    %160 = vector.broadcast %156 : vector<16x1xf32> to vector<16x896xf32>
    %161 = arith.mulf %160, %159 : vector<16x896xf32>
    %162 = vector.broadcast %157 : vector<16x1xf32> to vector<16x896xf32>
    %163 = arith.addf %161, %162 : vector<16x896xf32>
    %c0_192 = arith.constant 0 : index
    %c128_193 = arith.constant 128 : index
    %164 = vector.load %arg8[%c0_192, %c128_193] : memref<16x1152xf32, #tpu.memory_space<vmem>>, vector<16x896xf32>
    tpu.vector_store %arg8[%c0_192, %c128_193], %163 {strides = array<i32>} : memref<16x1152xf32, #tpu.memory_space<vmem>>, vector<16x896xf32>,
    %c0_194 = arith.constant 0 : index
    %c128_195 = arith.constant 128 : index
    %165 = vector.load %arg8[%c0_194, %c128_195] : memref<16x1152xf32, #tpu.memory_space<vmem>>, vector<16x896xf32>
    %c0_196 = arith.constant 0 : index
    %c0_197 = arith.constant 0 : index
    %166 = vector.load %arg10[%c0_196, %c0_197] : memref<144x896xf32, #tpu.memory_space<vmem>>, vector<16x896xf32>
    tpu.vector_store %arg10[%c0_196, %c0_197], %165 {strides = array<i32>} : memref<144x896xf32, #tpu.memory_space<vmem>>, vector<16x896xf32>,
    %c0_198 = arith.constant 0 : index
    %c130_199 = arith.constant 130 : index
    %167 = vector.load %arg8[%c0_198, %c130_199] : memref<16x1152xf32, #tpu.memory_space<vmem>>, vector<16x896xf32>
    %c16_200 = arith.constant 16 : index
    %c0_201 = arith.constant 0 : index
    %168 = vector.load %arg10[%c16_200, %c0_201] : memref<144x896xf32, #tpu.memory_space<vmem>>, vector<16x896xf32>
    tpu.vector_store %arg10[%c16_200, %c0_201], %167 {strides = array<i32>} : memref<144x896xf32, #tpu.memory_space<vmem>>, vector<16x896xf32>,
    %c0_202 = arith.constant 0 : index
    %c132_203 = arith.constant 132 : index
    %169 = vector.load %arg8[%c0_202, %c132_203] : memref<16x1152xf32, #tpu.memory_space<vmem>>, vector<16x896xf32>
    %c32_204 = arith.constant 32 : index
    %c0_205 = arith.constant 0 : index
    %170 = vector.load %arg10[%c32_204, %c0_205] : memref<144x896xf32, #tpu.memory_space<vmem>>, vector<16x896xf32>
    tpu.vector_store %arg10[%c32_204, %c0_205], %169 {strides = array<i32>} : memref<144x896xf32, #tpu.memory_space<vmem>>, vector<16x896xf32>,
    %c0_206 = arith.constant 0 : index
    %c184_207 = arith.constant 184 : index
    %171 = vector.load %arg8[%c0_206, %c184_207] : memref<16x1152xf32, #tpu.memory_space<vmem>>, vector<16x896xf32>
    %c48_208 = arith.constant 48 : index
    %c0_209 = arith.constant 0 : index
    %172 = vector.load %arg10[%c48_208, %c0_209] : memref<144x896xf32, #tpu.memory_space<vmem>>, vector<16x896xf32>
    tpu.vector_store %arg10[%c48_208, %c0_209], %171 {strides = array<i32>} : memref<144x896xf32, #tpu.memory_space<vmem>>, vector<16x896xf32>,
    %c0_210 = arith.constant 0 : index
    %c186_211 = arith.constant 186 : index
    %173 = vector.load %arg8[%c0_210, %c186_211] : memref<16x1152xf32, #tpu.memory_space<vmem>>, vector<16x896xf32>
    %c64_212 = arith.constant 64 : index
    %c0_213 = arith.constant 0 : index
    %174 = vector.load %arg10[%c64_212, %c0_213] : memref<144x896xf32, #tpu.memory_space<vmem>>, vector<16x896xf32>
    tpu.vector_store %arg10[%c64_212, %c0_213], %173 {strides = array<i32>} : memref<144x896xf32, #tpu.memory_space<vmem>>, vector<16x896xf32>,
    %c0_214 = arith.constant 0 : index
    %c188_215 = arith.constant 188 : index
    %175 = vector.load %arg8[%c0_214, %c188_215] : memref<16x1152xf32, #tpu.memory_space<vmem>>, vector<16x896xf32>
    %c80 = arith.constant 80 : index
    %c0_216 = arith.constant 0 : index
    %176 = vector.load %arg10[%c80, %c0_216] : memref<144x896xf32, #tpu.memory_space<vmem>>, vector<16x896xf32>
    tpu.vector_store %arg10[%c80, %c0_216], %175 {strides = array<i32>} : memref<144x896xf32, #tpu.memory_space<vmem>>, vector<16x896xf32>,
    %c0_217 = arith.constant 0 : index
    %c240_218 = arith.constant 240 : index
    %177 = vector.load %arg8[%c0_217, %c240_218] : memref<16x1152xf32, #tpu.memory_space<vmem>>, vector<16x896xf32>
    %c96 = arith.constant 96 : index
    %c0_219 = arith.constant 0 : index
    %178 = vector.load %arg10[%c96, %c0_219] : memref<144x896xf32, #tpu.memory_space<vmem>>, vector<16x896xf32>
    tpu.vector_store %arg10[%c96, %c0_219], %177 {strides = array<i32>} : memref<144x896xf32, #tpu.memory_space<vmem>>, vector<16x896xf32>,
    %c0_220 = arith.constant 0 : index
    %c242_221 = arith.constant 242 : index
    %179 = vector.load %arg8[%c0_220, %c242_221] : memref<16x1152xf32, #tpu.memory_space<vmem>>, vector<16x896xf32>
    %c112_222 = arith.constant 112 : index
    %c0_223 = arith.constant 0 : index
    %180 = vector.load %arg10[%c112_222, %c0_223] : memref<144x896xf32, #tpu.memory_space<vmem>>, vector<16x896xf32>
    tpu.vector_store %arg10[%c112_222, %c0_223], %179 {strides = array<i32>} : memref<144x896xf32, #tpu.memory_space<vmem>>, vector<16x896xf32>,
    %c0_224 = arith.constant 0 : index
    %c244_225 = arith.constant 244 : index
    %181 = vector.load %arg8[%c0_224, %c244_225] : memref<16x1152xf32, #tpu.memory_space<vmem>>, vector<16x896xf32>
    %c128_226 = arith.constant 128 : index
    %c0_227 = arith.constant 0 : index
    %182 = vector.load %arg10[%c128_226, %c0_227] : memref<144x896xf32, #tpu.memory_space<vmem>>, vector<16x896xf32>
    tpu.vector_store %arg10[%c128_226, %c0_227], %181 {strides = array<i32>} : memref<144x896xf32, #tpu.memory_space<vmem>>, vector<16x896xf32>,
    %c0_228 = arith.constant 0 : index
    %c512 = arith.constant 512 : index
    %183 = vector.load %arg2[%c0_228, %c512] : memref<16x1280xf32, #tpu.memory_space<vmem>>, vector<16x144xf32>
    %c0_229 = arith.constant 0 : index
    %c0_230 = arith.constant 0 : index
    %184 = vector.load %arg10[%c0_229, %c0_230] : memref<144x896xf32, #tpu.memory_space<vmem>>, vector<144x896xf32>
    %cst_231 = arith.constant dense<0.000000e+00> : vector<16x896xf32>
    %185 = tpu.matmul %183, %184, %cst_231 {dimension_numbers = #tpu.dot_dimension_numbers<[1], [0], [0], [1], [0, 0, 1, 1], [], []>} : vector<16x144xf32>, vector<144x896xf32>, vector<16x896xf32> -> vector<16x896xf32>
    %c0_232 = arith.constant 0 : index
    %c6_233 = arith.constant 6 : index
    %186 = vector.load %arg3[%c0_232, %c6_233] : memref<16x16xf32, #tpu.memory_space<vmem>>, vector<16x1xf32>
    %c0_234 = arith.constant 0 : index
    %c7_235 = arith.constant 7 : index
    %187 = vector.load %arg3[%c0_234, %c7_235] : memref<16x16xf32, #tpu.memory_space<vmem>>, vector<16x1xf32>
    %cst_236 = arith.constant 0.000000e+00 : f32
    %188 = vector.broadcast %cst_236 : f32 to vector<16x896xf32>
    %189 = arith.maximumf %185, %188 : vector<16x896xf32>
    %190 = vector.broadcast %186 : vector<16x1xf32> to vector<16x896xf32>
    %191 = arith.mulf %190, %189 : vector<16x896xf32>
    %192 = vector.broadcast %187 : vector<16x1xf32> to vector<16x896xf32>
    %193 = arith.addf %191, %192 : vector<16x896xf32>
    %c0_237 = arith.constant 0 : index
    %c0_238 = arith.constant 0 : index
    %194 = vector.load %arg4[%c0_237, %c0_238] : memref<1x896xf32, #tpu.memory_space<vmem>>, vector<1x896xf32>
    %195 = vector.broadcast %194 : vector<1x896xf32> to vector<16x896xf32>
    %196 = arith.mulf %193, %195 : vector<16x896xf32>
    %c0_239 = arith.constant 0 : index
    %c128_240 = arith.constant 128 : index
    %197 = vector.load %arg9[%c0_239, %c128_240] : memref<16x1152xf32, #tpu.memory_space<vmem>>, vector<16x896xf32>
    tpu.vector_store %arg9[%c0_239, %c128_240], %196 {strides = array<i32>} : memref<16x1152xf32, #tpu.memory_space<vmem>>, vector<16x896xf32>,
    %c0_241 = arith.constant 0 : index
    %c70 = arith.constant 70 : index
    %198 = vector.load %arg9[%c0_241, %c70] : memref<16x1152xf32, #tpu.memory_space<vmem>>, vector<16x896xf32>
    %c0_242 = arith.constant 0 : index
    %c0_243 = arith.constant 0 : index
    %199 = vector.load %arg10[%c0_242, %c0_243] : memref<144x896xf32, #tpu.memory_space<vmem>>, vector<16x896xf32>
    tpu.vector_store %arg10[%c0_242, %c0_243], %198 {strides = array<i32>} : memref<144x896xf32, #tpu.memory_space<vmem>>, vector<16x896xf32>,
    %c0_244 = arith.constant 0 : index
    %c72 = arith.constant 72 : index
    %200 = vector.load %arg9[%c0_244, %c72] : memref<16x1152xf32, #tpu.memory_space<vmem>>, vector<16x896xf32>
    %c16_245 = arith.constant 16 : index
    %c0_246 = arith.constant 0 : index
    %201 = vector.load %arg10[%c16_245, %c0_246] : memref<144x896xf32, #tpu.memory_space<vmem>>, vector<16x896xf32>
    tpu.vector_store %arg10[%c16_245, %c0_246], %200 {strides = array<i32>} : memref<144x896xf32, #tpu.memory_space<vmem>>, vector<16x896xf32>,
    %c0_247 = arith.constant 0 : index
    %c74 = arith.constant 74 : index
    %202 = vector.load %arg9[%c0_247, %c74] : memref<16x1152xf32, #tpu.memory_space<vmem>>, vector<16x896xf32>
    %c32_248 = arith.constant 32 : index
    %c0_249 = arith.constant 0 : index
    %203 = vector.load %arg10[%c32_248, %c0_249] : memref<144x896xf32, #tpu.memory_space<vmem>>, vector<16x896xf32>
    tpu.vector_store %arg10[%c32_248, %c0_249], %202 {strides = array<i32>} : memref<144x896xf32, #tpu.memory_space<vmem>>, vector<16x896xf32>,
    %c0_250 = arith.constant 0 : index
    %c126 = arith.constant 126 : index
    %204 = vector.load %arg9[%c0_250, %c126] : memref<16x1152xf32, #tpu.memory_space<vmem>>, vector<16x896xf32>
    %c48_251 = arith.constant 48 : index
    %c0_252 = arith.constant 0 : index
    %205 = vector.load %arg10[%c48_251, %c0_252] : memref<144x896xf32, #tpu.memory_space<vmem>>, vector<16x896xf32>
    tpu.vector_store %arg10[%c48_251, %c0_252], %204 {strides = array<i32>} : memref<144x896xf32, #tpu.memory_space<vmem>>, vector<16x896xf32>,
    %c0_253 = arith.constant 0 : index
    %c128_254 = arith.constant 128 : index
    %206 = vector.load %arg9[%c0_253, %c128_254] : memref<16x1152xf32, #tpu.memory_space<vmem>>, vector<16x896xf32>
    %c64_255 = arith.constant 64 : index
    %c0_256 = arith.constant 0 : index
    %207 = vector.load %arg10[%c64_255, %c0_256] : memref<144x896xf32, #tpu.memory_space<vmem>>, vector<16x896xf32>
    tpu.vector_store %arg10[%c64_255, %c0_256], %206 {strides = array<i32>} : memref<144x896xf32, #tpu.memory_space<vmem>>, vector<16x896xf32>,
    %c0_257 = arith.constant 0 : index
    %c130_258 = arith.constant 130 : index
    %208 = vector.load %arg9[%c0_257, %c130_258] : memref<16x1152xf32, #tpu.memory_space<vmem>>, vector<16x896xf32>
    %c80_259 = arith.constant 80 : index
    %c0_260 = arith.constant 0 : index
    %209 = vector.load %arg10[%c80_259, %c0_260] : memref<144x896xf32, #tpu.memory_space<vmem>>, vector<16x896xf32>
    tpu.vector_store %arg10[%c80_259, %c0_260], %208 {strides = array<i32>} : memref<144x896xf32, #tpu.memory_space<vmem>>, vector<16x896xf32>,
    %c0_261 = arith.constant 0 : index
    %c182 = arith.constant 182 : index
    %210 = vector.load %arg9[%c0_261, %c182] : memref<16x1152xf32, #tpu.memory_space<vmem>>, vector<16x896xf32>
    %c96_262 = arith.constant 96 : index
    %c0_263 = arith.constant 0 : index
    %211 = vector.load %arg10[%c96_262, %c0_263] : memref<144x896xf32, #tpu.memory_space<vmem>>, vector<16x896xf32>
    tpu.vector_store %arg10[%c96_262, %c0_263], %210 {strides = array<i32>} : memref<144x896xf32, #tpu.memory_space<vmem>>, vector<16x896xf32>,
    %c0_264 = arith.constant 0 : index
    %c184_265 = arith.constant 184 : index
    %212 = vector.load %arg9[%c0_264, %c184_265] : memref<16x1152xf32, #tpu.memory_space<vmem>>, vector<16x896xf32>
    %c112_266 = arith.constant 112 : index
    %c0_267 = arith.constant 0 : index
    %213 = vector.load %arg10[%c112_266, %c0_267] : memref<144x896xf32, #tpu.memory_space<vmem>>, vector<16x896xf32>
    tpu.vector_store %arg10[%c112_266, %c0_267], %212 {strides = array<i32>} : memref<144x896xf32, #tpu.memory_space<vmem>>, vector<16x896xf32>,
    %c0_268 = arith.constant 0 : index
    %c186_269 = arith.constant 186 : index
    %214 = vector.load %arg9[%c0_268, %c186_269] : memref<16x1152xf32, #tpu.memory_space<vmem>>, vector<16x896xf32>
    %c128_270 = arith.constant 128 : index
    %c0_271 = arith.constant 0 : index
    %215 = vector.load %arg10[%c128_270, %c0_271] : memref<144x896xf32, #tpu.memory_space<vmem>>, vector<16x896xf32>
    tpu.vector_store %arg10[%c128_270, %c0_271], %214 {strides = array<i32>} : memref<144x896xf32, #tpu.memory_space<vmem>>, vector<16x896xf32>,
    %c0_272 = arith.constant 0 : index
    %c768 = arith.constant 768 : index
    %216 = vector.load %arg2[%c0_272, %c768] : memref<16x1280xf32, #tpu.memory_space<vmem>>, vector<16x144xf32>
    %c0_273 = arith.constant 0 : index
    %c0_274 = arith.constant 0 : index
    %217 = vector.load %arg10[%c0_273, %c0_274] : memref<144x896xf32, #tpu.memory_space<vmem>>, vector<144x896xf32>
    %cst_275 = arith.constant dense<0.000000e+00> : vector<16x896xf32>
    %218 = tpu.matmul %216, %217, %cst_275 {dimension_numbers = #tpu.dot_dimension_numbers<[1], [0], [0], [1], [0, 0, 1, 1], [], []>} : vector<16x144xf32>, vector<144x896xf32>, vector<16x896xf32> -> vector<16x896xf32>
    %c0_276 = arith.constant 0 : index
    %c8_277 = arith.constant 8 : index
    %219 = vector.load %arg3[%c0_276, %c8_277] : memref<16x16xf32, #tpu.memory_space<vmem>>, vector<16x1xf32>
    %c0_278 = arith.constant 0 : index
    %c9_279 = arith.constant 9 : index
    %220 = vector.load %arg3[%c0_278, %c9_279] : memref<16x16xf32, #tpu.memory_space<vmem>>, vector<16x1xf32>
    %cst_280 = arith.constant 0.000000e+00 : f32
    %221 = vector.broadcast %cst_280 : f32 to vector<16x896xf32>
    %222 = arith.maximumf %218, %221 : vector<16x896xf32>
    %223 = vector.broadcast %219 : vector<16x1xf32> to vector<16x896xf32>
    %224 = arith.mulf %223, %222 : vector<16x896xf32>
    %225 = vector.broadcast %220 : vector<16x1xf32> to vector<16x896xf32>
    %226 = arith.addf %224, %225 : vector<16x896xf32>
    %c0_281 = arith.constant 0 : index
    %c1024_282 = arith.constant 1024 : index
    %227 = vector.load %arg2[%c0_281, %c1024_282] : memref<16x1280xf32, #tpu.memory_space<vmem>>, vector<10x16xf32>
    %cst_283 = arith.constant dense<0.000000e+00> : vector<10x896xf32>
    %228 = tpu.matmul %227, %226, %cst_283 {dimension_numbers = #tpu.dot_dimension_numbers<[1], [0], [0], [1], [0, 0, 1, 1], [], []>} : vector<10x16xf32>, vector<16x896xf32>, vector<10x896xf32> -> vector<10x896xf32>
    %c0_284 = arith.constant 0 : index
    %c10_285 = arith.constant 10 : index
    %229 = vector.load %arg3[%c0_284, %c10_285] : memref<16x16xf32, #tpu.memory_space<vmem>>, vector<10x1xf32>
    %c0_286 = arith.constant 0 : index
    %c11_287 = arith.constant 11 : index
    %230 = vector.load %arg3[%c0_286, %c11_287] : memref<16x16xf32, #tpu.memory_space<vmem>>, vector<10x1xf32>
    %cst_288 = arith.constant 0.000000e+00 : f32
    %231 = vector.broadcast %cst_288 : f32 to vector<10x896xf32>
    %232 = arith.maximumf %228, %231 : vector<10x896xf32>
    %233 = vector.broadcast %229 : vector<10x1xf32> to vector<10x896xf32>
    %234 = arith.mulf %233, %232 : vector<10x896xf32>
    %235 = vector.broadcast %230 : vector<10x1xf32> to vector<10x896xf32>
    %236 = arith.addf %234, %235 : vector<10x896xf32>
    %c0_289 = arith.constant 0 : index
    %c1152 = arith.constant 1152 : index
    %237 = vector.load %arg2[%c0_289, %c1152] : memref<16x1280xf32, #tpu.memory_space<vmem>>, vector<10x10xf32>
    %c0_290 = arith.constant 0 : index
    %c0_291 = arith.constant 0 : index
    %238 = vector.load %arg4[%c0_290, %c0_291] : memref<1x896xf32, #tpu.memory_space<vmem>>, vector<1x896xf32>
    %239 = vector.broadcast %238 : vector<1x896xf32> to vector<10x896xf32>
    %240 = arith.mulf %236, %239 : vector<10x896xf32>
    %cst_292 = arith.constant dense<0.000000e+00> : vector<10x896xf32>
    %241 = tpu.matmul %237, %240, %cst_292 {dimension_numbers = #tpu.dot_dimension_numbers<[1], [0], [0], [1], [0, 0, 1, 1], [], []>} : vector<10x10xf32>, vector<10x896xf32>, vector<10x896xf32> -> vector<10x896xf32>
    %cst_293 = arith.constant dense<0.000000e+00> : vector<10xf32>
    %242 = vector.multi_reduction <add>, %241, %cst_293 [1] : vector<10x896xf32> to vector<10xf32>
    %243 = vector.shape_cast %242 : vector<10xf32> to vector<10x1xf32>
    %c0_294 = arith.constant 0 : index
    %c0_295 = arith.constant 0 : index
    %c0_296 = arith.constant 0 : index
    %244 = vector.load %arg5[%c0_294, %c0_295, %c0_296] : memref<1x10x1xf32, #tpu.memory_space<vmem>>, vector<1x10x1xf32>
    %245 = vector.shape_cast %244 : vector<1x10x1xf32> to vector<10x1xf32>
    %246 = vector.shape_cast %243 : vector<10x1xf32> to vector<1x10x1xf32>
    tpu.vector_store %arg5[%c0_294, %c0_295, %c0_296], %246 {strides = array<i32>} : memref<1x10x1xf32, #tpu.memory_space<vmem>>, vector<1x10x1xf32>,
    return
  }
  func.func @transform_0(%arg0: i32) -> (i32, i32, i32) {
    %c0_i32 = arith.constant 0 : i32
    %c0_i32_0 = arith.constant 0 : i32
    %c0_i32_1 = arith.constant 0 : i32
    return %arg0, %c0_i32, %c0_i32_0 : i32, i32, i32
  }
  func.func @transform_1(%arg0: i32) -> (i32, i32) {
    %c0_i32 = arith.constant 0 : i32
    %c0_i32_0 = arith.constant 0 : i32
    %c0_i32_1 = arith.constant 0 : i32
    return %c0_i32, %c0_i32_0 : i32, i32
  }
  func.func @transform_2(%arg0: i32) -> (i32, i32) {
    %c0_i32 = arith.constant 0 : i32
    %c0_i32_0 = arith.constant 0 : i32
    %c0_i32_1 = arith.constant 0 : i32
    return %c0_i32, %c0_i32_0 : i32, i32
  }
  func.func @transform_3(%arg0: i32) -> (i32, i32) {
    %c0_i32 = arith.constant 0 : i32
    %c0_i32_0 = arith.constant 0 : i32
    %c0_i32_1 = arith.constant 0 : i32
    return %c0_i32, %c0_i32_0 : i32, i32
  }
  func.func @transform_4(%arg0: i32) -> (i32, i32, i32) {
    %c0_i32 = arith.constant 0 : i32
    %c0_i32_0 = arith.constant 0 : i32
    %c0_i32_1 = arith.constant 0 : i32
    return %arg0, %c0_i32, %c0_i32_0 : i32, i32, i32
  }
}

</mosaic_0001>

<bundles_post_ra>
// kernel: forward_pallas.1
= control target key start
LH: loop header
LB: loop body
LE: loop exit
PB: predicated region body
PF: predicated region fallthrough
CT: control target
= control target key end

     0   :  { %s6066_s15 = smov 0   ;;  %s9067_s0 = inlined_call_operand.vmem [shape: f32[2,1,1024], index: 0, kind: input, shape index: {}]   ;;  %s9068_s1 = inlined_call_operand.vmem [shape: f32[16,1280], index: 1, kind: input, shape index: {}]   ;;  %s9069_s2 = inlined_call_operand.vmem [shape: f32[16,16], index: 2, kind: input, shape index: {}]   ;;  %s9070_s3 = inlined_call_operand.vmem [shape: f32[1,896], index: 3, kind: input, shape index: {}]   ;;  %s9071_s4 = inlined_call_operand.vmem [shape: f32[2,10,1], index: 4, kind: output, shape index: {}]  }
   0x1 LB: > { %s5716_s16 = sadd.s32 4294967295, %s5997_s15   ;;  %p5720_p0 = scmp.ge.s32.totalorder %s5997_s15, 1  ;;  %s5997_s15 = sphi %s6066_s15, %s14_s15  }
   0x2   : > { %p161_p1 = scmp.lt.s32.totalorder %s5997_s15, 3 }
   0x4   : > { %p162_p2 = pnand %p5720_p0, %p161_p1 }
   0x6   : > { %165 = sbr.rel (%p162_p2) target bundleno = 2622 (0xa3e), region = 36 }
   0xb   : > { %p186_p3 = scmp.lt.s32.totalorder %s5716_s16, 1  ;;  %s5999_s21 = smov 12   ;;  %v208_v1 = vlaneseq  ;;  %vm417_vm1 = vcmask 326656   ;;  %vm428_vm2 = vcmask 130048   ;;  %vm461_vm3 = vcmask 105472  }
   0xc   : > { %s6000_s22 = smov 42   ;;  %s6001_s23 = smov 40   ;;  %vm472_vm4 = vcmask 97280   ;;  %vm395_vm5 = vcmask 343040   ;;  %vm318_vm6 = vcmask 588800   ;;  %vm406_vm7 = vcmask 334848  }
   0xd   : > { %s9153_s16 = smov (!%p186_p3, %s5716_s16), 1  ;;  %s6002_s24 = smov 41   ;;  %vm6084_vm0 = vcmp.lt.s32.totalorder %v208_v1, 896  ;;  %vm384_vm8 = vcmask 351232   ;;  %vm511_vm9 = vcmask 1040384   ;;  %vm351_vm10 = vcmask 564224  }
   0xe   : > { %s5721_s17 = sshll.u32 %s9153_s16, 3  ;;  %s6003_s25 = smov 43   ;;  %vm450_vm11 = vcmask 113664   ;;  %vm439_vm12 = vcmask 121856   ;;  %vm219_vm13 = vcmask 1039360   ;;  %vm307_vm14 = vcmask 785408  }
   0xf   : > { %s189_s20 = scalar_lea.vmem %s9067_s0, %s5721_s17  ;;  %s6004_s26 = smov 16   ;;  %vm296_vm15 = vcmask 793600  }
  0x10   : > { %v467_v0 = vld [vmem:[%s189_s20] sm:$0xff]  ;;  %s6005_s27 = smov 14   ;;  %s6006_s28 = smov 15  }
  0x11   : > { %469 = vrot.lane.b32.xlu0 %v467_v0, %s5999_s21  ;;  %392 = vrot.lane.b32.xlu1 %v467_v0, %s6000_s22  ;;  %s6007_s29 = smov 13   ;;  %s6008_s30 = smov 96   ;;  %212 = vst.msk [vmem:[#allocation6] ss:$8 sm:$0xf] %vm6084_vm0, %v467_v0 }
  0x12   : > { %414 = vrot.lane.b32.xlu2 %v467_v0, %s6001_s23  ;;  %s6009_s5 = smov 97   ;;  %s6010_s6 = smov 72   ;;  %213 = vst.msk [vmem:[#allocation6] ss:$8 sm:$0x70] %vm6084_vm0, %v467_v0 }
  0x13   : > { %s6011_s7 = smov 70   ;;  %s6012_s8 = smov 71  }
  0x14   : > { %s6013_s9 = smov 69   ;;  %s6014_s10 = smov 44  }
  0x15   : > { %s6015_s11 = smov 68   ;;  %s6016_s12 = smov 127  }
  0x16   : > { %s6017_s13 = smov 125   ;;  %s6018_s14 = smov 126  }
  0x17   : > { %s6019_s17 = smov 124   ;;  %s6020_s18 = smov 99  }
  0x18   : > { %s6021_s19 = smov 100   ;;  %s6022_s20 = smov 98  }
  0x19   : > { %403 = vrot.lane.b32.xlu1 %v467_v0, %s6002_s24  ;;  %381 = vrot.lane.b32.xlu0 %v467_v0, %s6003_s25  ;;  %s6032_s22 = smov 54   ;;  %s6033_s23 = smov 58  }
  0x1a   : > { %425 = vrot.lane.b32.xlu2 %v467_v0, %s6004_s26  ;;  %s6034_s24 = smov 2   ;;  %s6035_s25 = smov 56  }
  0x21   : > { %447 = vrot.lane.b32.xlu1 %v467_v0, %s6005_s27  ;;  %436 = vrot.lane.b32.xlu0 %v467_v0, %s6006_s28  ;;  %s6036_s28 = smov 74  }
  0x22   : > { %458 = vrot.lane.b32.xlu2 %v467_v0, %s6007_s29 }
  0x29   : > { %304 = vrot.lane.b32.xlu1 %v467_v0, %s6008_s30  ;;  %293 = vrot.lane.b32.xlu0 %v467_v0, %s6009_s5 }
  0x2a   : > { %315 = vrot.lane.b32.xlu2 %v467_v0, %s6010_s6 }
  0x31   : > { %337 = vrot.lane.b32.xlu1 %v467_v0, %s6011_s7  ;;  %326 = vrot.lane.b32.xlu0 %v467_v0, %s6012_s8 }
  0x32   : > { %348 = vrot.lane.b32.xlu2 %v467_v0, %s6013_s9 }
  0x39   : > { %370 = vrot.lane.b32.xlu1 %v467_v0, %s6014_s10  ;;  %359 = vrot.lane.b32.xlu0 %v467_v0, %s6015_s11 }
  0x3a   : > { %216 = vrot.lane.b32.xlu2 %v467_v0, %s6016_s12 }
  0x41   : > { %238 = vrot.lane.b32.xlu1 %v467_v0, %s6017_s13  ;;  %227 = vrot.lane.b32.xlu0 %v467_v0, %s6018_s14 }
  0x42   : > { %249 = vrot.lane.b32.xlu2 %v467_v0, %s6019_s17 }
  0x49   : > { %271 = vrot.lane.b32.xlu1 %v467_v0, %s6020_s18  ;;  %260 = vrot.lane.b32.xlu0 %v467_v0, %s6021_s19 }
  0x4a   : > { %282 = vrot.lane.b32.xlu2 %v467_v0, %s6022_s20 }
  0x6c   : > { %v415_v3 = vpop.permute.xlu2 %414 }
  0x6d   : > { %v416_v4 = vrot.slane %v415_v3, 1 }
  0x6f   : > { %v418_v5 = vsel %vm417_vm1, %v415_v3, %v416_v4  ;;  %vm252_vm1 = vcmask 1014784  }
  0x70   : > { %421 = vst.msk [vmem:[#allocation6 + $0x73] ss:$8 sm:$0xf] %vm6084_vm0, %v418_v5 }
  0x71   : > { %422 = vst.msk [vmem:[#allocation6 + $0x73] ss:$8 sm:$0x70] %vm6084_vm0, %v418_v5 }
  0x74   : > { %v426_v6 = vpop.permute.xlu2 %425 }
  0x75   : > { %v427_v7 = vrot.slane %v426_v6, 1 }
  0x77   : > { %v429_v8 = vsel %vm428_vm2, %v426_v6, %v427_v7 }
  0x78   : > { %432 = vst.msk [vmem:[#allocation6 + $0x74] ss:$8 sm:$0xf] %vm6084_vm0, %v429_v8 }
  0x79   : > { %433 = vst.msk [vmem:[#allocation6 + $0x74] ss:$8 sm:$0x70] %vm6084_vm0, %v429_v8 }
  0x7c   : > { %v459_v9 = vpop.permute.xlu2 %458 }
  0x7d   : > { %v460_v10 = vrot.slane %v459_v9, 1 }
  0x7f   : > { %v462_v11 = vsel %vm461_vm3, %v459_v9, %v460_v10  ;;  %vm340_vm3 = vcmask 572416  }
  0x80   : > { %465 = vst.msk [vmem:[#allocation6 + $0x77] ss:$8 sm:$0xf] %vm6084_vm0, %v462_v11 }
  0x81   : > { %466 = vst.msk [vmem:[#allocation6 + $0x77] ss:$8 sm:$0x70] %vm6084_vm0, %v462_v11 }
  0x83   : > { %v470_v12 = vpop.permute.xlu0 %469  ;;  %v393_v13 = vpop.permute.xlu1 %392 }
  0x84   : > { %v471_v14 = vrot.slane %v470_v12, 1  ;;  %v394_v15 = vrot.slane %v393_v13, 1  ;;  %v316_v16 = vpop.permute.xlu2 %315 }
  0x85   : > { %v317_v17 = vrot.slane %v316_v16, 1 }
  0x86   : > { %v473_v18 = vsel %vm472_vm4, %v470_v12, %v471_v14  ;;  %v396_v19 = vsel %vm395_vm5, %v393_v13, %v394_v15  ;;  %vm329_vm5 = vcmask 580608   ;;  %v6201_v14 = vld [vmem:[%s9069_s2] sm:$0xff] }
  0x87   : > { %476 = vst.msk [vmem:[#allocation6 + $0xa8] ss:$8 sm:$0xf] %vm6084_vm0, %v473_v18  ;;  %v319_v20 = vsel %vm318_vm6, %v316_v16, %v317_v17 }
  0x88   : > { %477 = vst.msk [vmem:[#allocation6 + $0xa8] ss:$8 sm:$0x70] %vm6084_vm0, %v473_v18  ;;  %v6023_v18 = vmov 0  }
  0x89   : > { %399 = vst.msk [vmem:[#allocation6 + $0x71] ss:$8 sm:$0xf] %vm6084_vm0, %v396_v19  ;;  %5889 = vset.pattern.permute.xlu0 %v6023_v18 }
  0x8a   : > { %400 = vst.msk [vmem:[#allocation6 + $0x71] ss:$8 sm:$0x70] %vm6084_vm0, %v396_v19  ;;  %683 = vperm.xlu0 %5889, %v6201_v14  }
  0x8b   : > { %v404_v21 = vpop.permute.xlu1 %403  ;;  %v382_v22 = vpop.permute.xlu0 %381  ;;  %322 = vst.msk [vmem:[#allocation6 + $0x3a] ss:$8 sm:$0xf] %vm6084_vm0, %v319_v20 }
  0x8c   : > { %v405_v23 = vrot.slane %v404_v21, 1  ;;  %v383_v24 = vrot.slane %v382_v22, 1  ;;  %323 = vst.msk [vmem:[#allocation6 + $0x3a] ss:$8 sm:$0x70] %vm6084_vm0, %v319_v20  ;;  %v349_v25 = vpop.permute.xlu2 %348 }
  0x8d   : > { %v350_v26 = vrot.slane %v349_v25, 1 }
  0x8e   : > { %v407_v27 = vsel %vm406_vm7, %v404_v21, %v405_v23  ;;  %v385_v28 = vsel %vm384_vm8, %v382_v22, %v383_v24  ;;  %v500_v29 = vld [vmem:[#allocation6 + $0xa8] sm:$0x1]  ;;  %v502_v30 = vld [vmem:[#allocation6 + $0xb8] sm:$0x1]  ;;  %v503_v31 = vld [vmem:[#allocation6 + $0xc0] sm:$0x1] }
  0x8f   : > { %410 = vst.msk [vmem:[#allocation6 + $0x72] ss:$8 sm:$0xf] %vm6084_vm0, %v407_v27  ;;  %5724 = vmatpush.msk.msra.mxu1 %vm511_vm9, %v500_v29  ;;  %5728 = vmatpush.msk.msra.mxu2 %vm511_vm9, %v502_v30  ;;  %v504_v32 = vld [vmem:[#allocation6 + $0xc8] sm:$0x1]  ;;  %v352_v33 = vsel %vm351_vm10, %v349_v25, %v350_v26  ;;  %vm285_vm7 = vcmask 801792  }
  0x90   : > { %411 = vst.msk [vmem:[#allocation6 + $0x72] ss:$8 sm:$0x70] %vm6084_vm0, %v407_v27  ;;  %5730 = vmatpush.msk.msra.mxu3 %vm511_vm9, %v503_v31  ;;  %5732 = vmatpush.msk.msra.mxu0 %vm511_vm9, %v504_v32  ;;  %vm373_vm8 = vcmask 359424   ;;  %vm362_vm10 = vcmask 556032   ;;  %v6024_v22 = vmov 1  }
  0x91   : > { %388 = vst.msk [vmem:[#allocation6 + $0x70] ss:$8 sm:$0xf] %vm6084_vm0, %v385_v28  ;;  %5890 = vset.pattern.permute.xlu1 %v6024_v22  ;;  %v9072_v25 = vmov 0.0   ;;  %v478_v29 = vld [vmem:[%s9068_s1] sm:$0xff] }
  0x92   : > { %389 = vst.msk [vmem:[#allocation6 + $0x70] ss:$8 sm:$0x70] %vm6084_vm0, %v385_v28  ;;  %694 = vperm.xlu1 %5890, %v6201_v14   ;;  %1126 = vrot.lane.b32.xlu2 %v9072_v25, %s6011_s7  ;;  %v6026_v28 = vmov 2  }
  0x93   : > { %v448_v34 = vpop.permute.xlu1 %447  ;;  %v437_v35 = vpop.permute.xlu0 %436  ;;  %355 = vst.msk [vmem:[#allocation6 + $0x3d] ss:$8 sm:$0xf] %vm6084_vm0, %v352_v33  ;;  %5892 = vset.pattern.permute.xlu2 %v6026_v28  ;;  %1020 = vrot.lane.b32.xlu0 %v9072_v25, %s6010_s6 }
  0x94   : > { %v449_v36 = vrot.slane %v448_v34, 1  ;;  %v438_v37 = vrot.slane %v437_v35, 1  ;;  %356 = vst.msk [vmem:[#allocation6 + $0x3d] ss:$8 sm:$0x70] %vm6084_vm0, %v352_v33  ;;  %v217_v38 = vpop.permute.xlu2 %216 }
  0x95   : > { %v218_v39 = vrot.slane %v217_v38, 1  ;;  %v501_v33 = vld [vmem:[#allocation6 + $0xb0] sm:$0x1] }
  0x96   : > { %v451_v40 = vsel %vm450_vm11, %v448_v34, %v449_v36  ;;  %v440_v41 = vsel %vm439_vm12, %v437_v35, %v438_v37  ;;  %vm241_vm12 = vcmask 1022976   ;;  %v506_v34 = vld [vmem:[#allocation6 + $0xd8] sm:$0x1] }
  0x97   : > { %454 = vst.msk [vmem:[#allocation6 + $0x76] ss:$8 sm:$0xf] %vm6084_vm0, %v451_v40  ;;  %v220_v42 = vsel %vm219_vm13, %v217_v38, %v218_v39 }
  0x98   : > { %455 = vst.msk [vmem:[#allocation6 + $0x76] ss:$8 sm:$0x70] %vm6084_vm0, %v451_v40 }
  0x99   : > { %443 = vst.msk [vmem:[#allocation6 + $0x75] ss:$8 sm:$0xf] %vm6084_vm0, %v440_v41 }
  0x9a   : > { %444 = vst.msk [vmem:[#allocation6 + $0x75] ss:$8 sm:$0x70] %vm6084_vm0, %v440_v41  ;;  %1073 = vrot.lane.b32.xlu1 %v9072_v25, %s6012_s8  ;;  %967 = vrot.lane.b32.xlu2 %v9072_v25, %s6022_s20  ;;  %v505_v41 = vld [vmem:[#allocation6 + $0xd0] sm:$0x1] }
  0x9b   : > { %v305_v43 = vpop.permute.xlu1 %304  ;;  %v294_v44 = vpop.permute.xlu0 %293  ;;  %223 = vst.msk [vmem:[#allocation6 + $0x1] ss:$8 sm:$0xf] %vm6084_vm0, %v220_v42  ;;  %5891 = vset.pattern.permute.xlu1 %v6026_v28  ;;  %914 = vrot.lane.b32.xlu0 %v9072_v25, %s6020_s18 }
  0x9c   : > { %v306_v45 = vrot.slane %v305_v43, 1  ;;  %v295_v46 = vrot.slane %v294_v44, 1  ;;  %224 = vst.msk [vmem:[#allocation6 + $0x1] ss:$8 sm:$0x70] %vm6084_vm0, %v220_v42  ;;  %v250_v47 = vpop.permute.xlu2 %249  ;;  %v6248_v42 = vld [vmem:[%s9069_s2 + $0x8] sm:$0xff] }
  0x9d   : > { %v251_v48 = vrot.slane %v250_v47, 1 }
  0x9e   : > { %v308_v49 = vsel %vm307_vm14, %v305_v43, %v306_v45  ;;  %v297_v50 = vsel %vm296_vm15, %v294_v44, %v295_v46  ;;  %vm230_vm14 = vcmask 1031168   ;;  %vm274_vm15 = vcmask 809984  }
  0x9f   : > { %311 = vst.msk [vmem:[#allocation6 + $0x39] ss:$8 sm:$0xf] %vm6084_vm0, %v308_v49  ;;  %v253_v54 = vsel %vm252_vm1, %v250_v47, %v251_v48 }
  0xa0   : > { %312 = vst.msk [vmem:[#allocation6 + $0x39] ss:$8 sm:$0x70] %vm6084_vm0, %v308_v49  ;;  %v493_v51 = vld [vmem:[#allocation6 + $0x70] sm:$0xff]  ;;  %v495_v52 = vld [vmem:[#allocation6 + $0x80] sm:$0xff]  ;;  %v496_v53 = vld [vmem:[#allocation6 + $0x88] sm:$0xff] }
  0xa1   : > { %300 = vst.msk [vmem:[#allocation6 + $0x38] ss:$8 sm:$0xf] %vm6084_vm0, %v297_v50  ;;  %546 = vmatpush.msra.mxu1 %v493_v51  ;;  %586 = vmatpush.msra.mxu2 %v495_v52  ;;  %v497_v55 = vld [vmem:[#allocation6 + $0x90] sm:$0xff]  ;;  %v494_v35 = vld [vmem:[#allocation6 + $0x78] sm:$0xff]  ;;  %v499_v36 = vld [vmem:[#allocation6 + $0xa0] sm:$0xff] }
  0xa2   : > { %301 = vst.msk [vmem:[#allocation6 + $0x38] ss:$8 sm:$0x70] %vm6084_vm0, %v297_v50  ;;  %606 = vmatpush.msra.mxu3 %v496_v53  ;;  %626 = vmatpush.msra.mxu0 %v497_v55  ;;  %v498_v43 = vld [vmem:[#allocation6 + $0x98] sm:$0xff] }
  0xa3   : > { %v338_v56 = vpop.permute.xlu1 %337  ;;  %v327_v57 = vpop.permute.xlu0 %326  ;;  %256 = vst.msk [vmem:[#allocation6 + $0x4] ss:$8 sm:$0xf] %vm6084_vm0, %v253_v54  ;;  %861 = vrot.lane.b32.xlu1 %v9072_v25, %s6021_s19  ;;  %808 = vrot.lane.b32.xlu2 %v9072_v25, %s6018_s14 }
  0xa4   : > { %v339_v58 = vrot.slane %v338_v56, 1  ;;  %v328_v59 = vrot.slane %v327_v57, 1  ;;  %257 = vst.msk [vmem:[#allocation6 + $0x4] ss:$8 sm:$0x70] %vm6084_vm0, %v253_v54  ;;  %v283_v60 = vpop.permute.xlu2 %282  ;;  %755 = vrot.lane.b32.xlu0 %v9072_v25, %s6016_s12 }
  0xa5   : > { %v284_v61 = vrot.slane %v283_v60, 1 }
  0xa6   : > { %v341_v62 = vsel %vm340_vm3, %v338_v56, %v339_v58  ;;  %v330_v63 = vsel %vm329_vm5, %v327_v57, %v328_v59 }
  0xa7   : > { %344 = vst.msk [vmem:[#allocation6 + $0x3c] ss:$8 sm:$0xf] %vm6084_vm0, %v341_v62  ;;  %v286_v0 = vsel %vm285_vm7, %v283_v60, %v284_v61 }
  0xa8   : > { %345 = vst.msk [vmem:[#allocation6 + $0x3c] ss:$8 sm:$0x70] %vm6084_vm0, %v341_v62 }
  0xa9   : > { %333 = vst.msk [vmem:[#allocation6 + $0x3b] ss:$8 sm:$0xf] %vm6084_vm0, %v330_v63 }
  0xaa   : > { %334 = vst.msk [vmem:[#allocation6 + $0x3b] ss:$8 sm:$0x70] %vm6084_vm0, %v330_v63 }
  0xab   : > { %v371_v1 = vpop.permute.xlu1 %370  ;;  %v360_v3 = vpop.permute.xlu0 %359  ;;  %289 = vst.msk [vmem:[#allocation6 + $0x7] ss:$8 sm:$0xf] %vm6084_vm0, %v286_v0  ;;  %1404 = vperm.xlu1 %5891, %v6248_v42   ;;  %1399 = vperm.xlu2 %5892, %v6201_v14  }
  0xac   : > { %v372_v4 = vrot.slane %v371_v1, 1  ;;  %v361_v5 = vrot.slane %v360_v3, 1  ;;  %290 = vst.msk [vmem:[#allocation6 + $0x7] ss:$8 sm:$0x70] %vm6084_vm0, %v286_v0 }
  0xae   : > { %v374_v6 = vsel %vm373_vm8, %v371_v1, %v372_v4  ;;  %v363_v7 = vsel %vm362_vm10, %v360_v3, %v361_v5  ;;  %vm263_vm8 = vcmask 818176  }
  0xaf   : > { %377 = vst.msk [vmem:[#allocation6 + $0x3f] ss:$8 sm:$0xf] %vm6084_vm0, %v374_v6 }
  0xb0   : > { %378 = vst.msk [vmem:[#allocation6 + $0x3f] ss:$8 sm:$0x70] %vm6084_vm0, %v374_v6 }
  0xb1   : > { %366 = vst.msk [vmem:[#allocation6 + $0x3e] ss:$8 sm:$0xf] %vm6084_vm0, %v363_v7 }
  0xb2   : > { %367 = vst.msk [vmem:[#allocation6 + $0x3e] ss:$8 sm:$0x70] %vm6084_vm0, %v363_v7 }
  0xb3   : > { %v239_v8 = vpop.permute.xlu1 %238  ;;  %v228_v9 = vpop.permute.xlu0 %227 }
  0xb4   : > { %v240_v10 = vrot.slane %v239_v8, 1  ;;  %v229_v11 = vrot.slane %v228_v9, 1 }
  0xb6   : > { %v242_v12 = vsel %vm241_vm12, %v239_v8, %v240_v10  ;;  %v231_v13 = vsel %vm230_vm14, %v228_v9, %v229_v11  ;;  %vm507_vm12 = vcmask 203776  }
  0xb7   : > { %245 = vst.msk [vmem:[#allocation6 + $0x3] ss:$8 sm:$0xf] %vm6084_vm0, %v242_v12 }
  0xb8   : > { %246 = vst.msk [vmem:[#allocation6 + $0x3] ss:$8 sm:$0x70] %vm6084_vm0, %v242_v12  ;;  %v486_v15 = vld [vmem:[#allocation6 + $0x38] sm:$0xff]  ;;  %v488_v16 = vld [vmem:[#allocation6 + $0x48] sm:$0xff]  ;;  %v489_v17 = vld [vmem:[#allocation6 + $0x50] sm:$0xff] }
  0xb9   : > { %234 = vst.msk [vmem:[#allocation6 + $0x2] ss:$8 sm:$0xf] %vm6084_vm0, %v231_v13  ;;  %547 = vmatpush.msra.mxu1 %v486_v15  ;;  %587 = vmatpush.msra.mxu2 %v488_v16  ;;  %v490_v19 = vld [vmem:[#allocation6 + $0x58] sm:$0xff]  ;;  %v487_v37 = vld [vmem:[#allocation6 + $0x40] sm:$0xff]  ;;  %v492_v38 = vld [vmem:[#allocation6 + $0x68] sm:$0xff] }
  0xba   : > { %235 = vst.msk [vmem:[#allocation6 + $0x2] ss:$8 sm:$0x70] %vm6084_vm0, %v231_v13  ;;  %607 = vmatpush.msra.mxu3 %v489_v17  ;;  %627 = vmatpush.msra.mxu0 %v490_v19  ;;  %v491_v44 = vld [vmem:[#allocation6 + $0x60] sm:$0xff] }
  0xbb   : > { %v272_v20 = vpop.permute.xlu1 %271  ;;  %v261_v21 = vpop.permute.xlu0 %260 }
  0xbc   : > { %v273_v23 = vrot.slane %v272_v20, 1  ;;  %v262_v24 = vrot.slane %v261_v21, 1 }
  0xbe   : > { %v275_v26 = vsel %vm274_vm15, %v272_v20, %v273_v23  ;;  %v264_v27 = vsel %vm263_vm8, %v261_v21, %v262_v24 }
  0xbf   : > { %278 = vst.msk [vmem:[#allocation6 + $0x6] ss:$8 sm:$0xf] %vm6084_vm0, %v275_v26 }
  0xc0   : > { %279 = vst.msk [vmem:[#allocation6 + $0x6] ss:$8 sm:$0x70] %vm6084_vm0, %v275_v26 }
  0xc1   : > { %267 = vst.msk [vmem:[#allocation6 + $0x5] ss:$8 sm:$0xf] %vm6084_vm0, %v264_v27 }
  0xc2   : > { %268 = vst.msk [vmem:[#allocation6 + $0x5] ss:$8 sm:$0x70] %vm6084_vm0, %v264_v27  ;;  %vm4165_vm0 = vcmask 15360  }
  0xc8   : > { %v479_v30 = vld [vmem:[#allocation6] sm:$0xff]  ;;  %v481_v31 = vld [vmem:[#allocation6 + $0x10] sm:$0xff]  ;;  %v482_v32 = vld [vmem:[#allocation6 + $0x18] sm:$0xff] }
  0xc9   : > { %548 = vmatpush.msra.mxu1 %v479_v30  ;;  %588 = vmatpush.msra.mxu2 %v481_v31  ;;  %v483_v2 = vld [vmem:[#allocation6 + $0x20] sm:$0xff]  ;;  %v480_v39 = vld [vmem:[#allocation6 + $0x8] sm:$0xff]  ;;  %v485_v40 = vld [vmem:[#allocation6 + $0x30] sm:$0xff] }
  0xca   : > { %608 = vmatpush.msra.mxu3 %v482_v32  ;;  %628 = vmatpush.msra.mxu0 %v483_v2  ;;  %v484_v45 = vld [vmem:[#allocation6 + $0x28] sm:$0xff] }
  0xcb   : > { %5725 = vmatmul.msk.f32.vlgmr.msra.gmra.mxu1 %vm507_vm12, %v478_v29  ;;  %5729 = vmatmul.msk.f32.vlgmr.msra.gmra.mxu2 %vm507_vm12, %v478_v29 }
  0xcc   : > { %5726 = vmatpush.msk.msrb.mxu1 %vm511_vm9, %v501_v33  ;;  %5731 = vmatmul.msk.f32.vlgmr.msra.gmra.mxu3 %vm507_vm12, %v478_v29 }
  0xcd   : > { %5733 = vmatmul.msk.f32.vlgmr.msra.gmra.mxu0 %vm507_vm12, %v478_v29  ;;  %5736 = vmatpush.msk.msrb.mxu2 %vm511_vm9, %v506_v34 }
  0xce   : > { %566 = vmatpush.msrb.mxu1 %v494_v35 }
  0xcf   : > { %666 = vmatpush.msrb.mxu2 %v499_v36 }
  0xd0   : > { %567 = vmatpush.msrb.mxu1 %v487_v37 }
  0xd1   : > { %667 = vmatpush.msrb.mxu2 %v492_v38 }
  0xd2   : > { %568 = vmatpush.msrb.mxu1 %v480_v39 }
  0xd3   : > { %668 = vmatpush.msrb.mxu2 %v485_v40  ;;  %5727 = vmatmul.msk.f32.vlgmr.msrb.gmra.mxu1 %vm507_vm12, %v478_v29 }
  0xd4   : > { %5734 = vmatpush.msk.msra.mxu1 %vm511_vm9, %v505_v41  ;;  %5737 = vmatmul.msk.f32.vlgmr.msrb.gmra.mxu2 %vm507_vm12, %v478_v29  ;;  %vm3844_vm9 = vcmask 474112  }
  0xd6   : > { %646 = vmatpush.msra.mxu1 %v498_v43 }
  0xd8   : > { %647 = vmatpush.msra.mxu1 %v491_v44 }
  0xda   : > { %648 = vmatpush.msra.mxu1 %v484_v45 }
  0xdb   : > { %5735 = vmatmul.msk.f32.vlgmr.msra.gmra.mxu1 %vm507_vm12, %v478_v29 }
  0xec   : > { %v6319_v0 = vpop.permute.xlu2 %1126 }
  0xf4   : > { %v6327_v3 = vpop.permute.xlu2 %967 }
  0xfc   : > { %v6257_v47 = vpop.permute.xlu0 %683 }
  0xfd   : > { %v6339_v7 = vpop.permute.xlu2 %808 }
 0x104   : > { %v6259_v49 = vpop.permute.xlu1 %694 }
 0x105   : > { %v6353_v8 = vpop.permute.xlu2 %1399  ;;  %v6357_v11 = vpop.permute.xlu0 %1020 }
 0x10c   : > { %v6355_v10 = vpop.permute.xlu1 %1073 }
 0x10d   : > { %v6373_v18 = vpop.permute.xlu0 %914 }
 0x115   : > { %v6371_v17 = vpop.permute.xlu1 %861 }
 0x116   : > { %v6389_v21 = vpop.permute.xlu0 %755 }
 0x11d   : > { %v6387_v20 = vpop.permute.xlu1 %1404 }
 0x148   : > { %v550_v46 = vpop.f32.mrf.mxu1 }
 0x149   : > { %v674_v48 = vmax.f32 %v550_v46, 0.0 }
 0x14a   : > { %v630_v52 = vpop.f32.mrf.mxu0 }
 0x14b   : > { %v686_v50 = vmul.f32 %v6257_v47, %v674_v48  ;;  %v678_v53 = vmax.f32 %v630_v52, 0.0 }
 0x14d   : > { %v6263_v51 = vadd.f32 %v6259_v49, %v686_v50  ;;  %v690_v54 = vmul.f32 %v6257_v47, %v678_v53 }
 0x14e   : > { %v590_v56 = vpop.f32.mrf.mxu2 }
 0x14f   : > { %953 = vrot.lane.b32.xlu0 %v6263_v51, %s6022_s20  ;;  %1006 = vrot.lane.b32.xlu1 %v6263_v51, %s6010_s6  ;;  %v6279_v55 = vadd.f32 %v6259_v49, %v690_v54  ;;  %v676_v57 = vmax.f32 %v590_v56, 0.0  ;;  %v610_v60 = vpop.f32.mrf.mxu3 }
 0x150   : > { %1112 = vrot.lane.b32.xlu2 %v6263_v51, %s6011_s7  ;;  %v677_v61 = vmax.f32 %v610_v60, 0.0  ;;  %v570_v1 = vpop.f32.mrf.mxu1 }
 0x151   : > { %v688_v58 = vmul.f32 %v6257_v47, %v676_v57  ;;  %v675_v4 = vmax.f32 %v570_v1, 0.0 }
 0x152   : > { %v689_v62 = vmul.f32 %v6257_v47, %v677_v61 }
 0x153   : > { %v6295_v59 = vadd.f32 %v6259_v49, %v688_v58  ;;  %v687_v5 = vmul.f32 %v6257_v47, %v675_v4 }
 0x154   : > { %v6311_v63 = vadd.f32 %v6259_v49, %v689_v62 }
 0x155   : > { %v6337_v6 = vadd.f32 %v6259_v49, %v687_v5 }
 0x157   : > { %794 = vrot.lane.b32.xlu0 %v6263_v51, %s6018_s14  ;;  %847 = vrot.lane.b32.xlu1 %v6263_v51, %s6021_s19  ;;  %v670_v9 = vpop.f32.mrf.mxu2 }
 0x158   : > { %1059 = vrot.lane.b32.xlu2 %v6263_v51, %s6012_s8  ;;  %v680_v12 = vmax.f32 %v670_v9, 0.0  ;;  %v650_v22 = vpop.f32.mrf.mxu1 }
 0x159   : > { %v679_v24 = vmax.f32 %v650_v22, 0.0 }
 0x15a   : > { %v692_v13 = vmul.f32 %v6257_v47, %v680_v12 }
 0x15b   : > { %v691_v26 = vmul.f32 %v6257_v47, %v679_v24 }
 0x15c   : > { %v6369_v16 = vadd.f32 %v6259_v49, %v692_v13  ;;  %v6027_v13 = vmov 3  }
 0x15d   : > { %v6409_v30 = vadd.f32 %v6259_v49, %v691_v26  ;;  %5894 = vset.pattern.permute.xlu1 %v6027_v13  ;;  %5893 = vset.pattern.permute.xlu0 %v6027_v13 }
 0x15f   : > { %1067 = vrot.lane.b32.xlu0 %v6279_v55, %s6012_s8  ;;  %1120 = vrot.lane.b32.xlu1 %v6279_v55, %s6011_s7 }
 0x160   : > { %900 = vrot.lane.b32.xlu2 %v6263_v51, %s6020_s18 }
 0x167   : > { %855 = vrot.lane.b32.xlu0 %v6279_v55, %s6021_s19  ;;  %1014 = vrot.lane.b32.xlu1 %v6279_v55, %s6010_s6 }
 0x168   : > { %741 = vrot.lane.b32.xlu2 %v6263_v51, %s6016_s12 }
 0x16f   : > { %1010 = vrot.lane.b32.xlu0 %v6295_v59, %s6010_s6  ;;  %908 = vrot.lane.b32.xlu1 %v6279_v55, %s6020_s18 }
 0x170   : > { %961 = vrot.lane.b32.xlu2 %v6279_v55, %s6022_s20 }
 0x177   : > { %904 = vrot.lane.b32.xlu0 %v6295_v59, %s6020_s18  ;;  %749 = vrot.lane.b32.xlu1 %v6279_v55, %s6016_s12 }
 0x178   : > { %802 = vrot.lane.b32.xlu2 %v6279_v55, %s6018_s14 }
 0x17f   : > { %1012 = vrot.lane.b32.xlu0 %v6311_v63, %s6010_s6  ;;  %1116 = vrot.lane.b32.xlu1 %v6295_v59, %s6011_s7 }
 0x180   : > { %1063 = vrot.lane.b32.xlu2 %v6295_v59, %s6012_s8 }
 0x187   : > { %745 = vrot.lane.b32.xlu0 %v6295_v59, %s6016_s12  ;;  %957 = vrot.lane.b32.xlu1 %v6295_v59, %s6022_s20 }
 0x188   : > { %1118 = vrot.lane.b32.xlu2 %v6311_v63, %s6011_s7 }
 0x18f   : > { %800 = vrot.lane.b32.xlu0 %v6311_v63, %s6018_s14  ;;  %1065 = vrot.lane.b32.xlu1 %v6311_v63, %s6012_s8 }
 0x190   : > { %851 = vrot.lane.b32.xlu2 %v6295_v59, %s6021_s19 }
 0x197   : > { %798 = vrot.lane.b32.xlu1 %v6295_v59, %s6018_s14  ;;  %1061 = vrot.lane.b32.xlu0 %v6337_v6, %s6012_s8 }
 0x198   : > { %959 = vrot.lane.b32.xlu2 %v6311_v63, %s6022_s20 }
 0x19f   : > { %906 = vrot.lane.b32.xlu1 %v6311_v63, %s6020_s18  ;;  %902 = vrot.lane.b32.xlu0 %v6337_v6, %s6020_s18 }
 0x1a0   : > { %853 = vrot.lane.b32.xlu2 %v6311_v63, %s6021_s19 }
 0x1a7   : > { %743 = vrot.lane.b32.xlu0 %v6337_v6, %s6016_s12  ;;  %1114 = vrot.lane.b32.xlu1 %v6337_v6, %s6011_s7 }
 0x1a8   : > { %747 = vrot.lane.b32.xlu2 %v6311_v63, %s6016_s12 }
 0x1aa   : > { %v6366_v15 = vpop.permute.xlu2 %1112 }
 0x1af   : > { %1124 = vrot.lane.b32.xlu0 %v6369_v16, %s6011_s7  ;;  %955 = vrot.lane.b32.xlu1 %v6337_v6, %s6022_s20 }
 0x1b0   : > { %1008 = vrot.lane.b32.xlu2 %v6337_v6, %s6010_s6 }
 0x1b2   : > { %v6381_v19 = vpop.permute.xlu2 %1059 }
 0x1b7   : > { %965 = vrot.lane.b32.xlu0 %v6369_v16, %s6022_s20  ;;  %796 = vrot.lane.b32.xlu1 %v6337_v6, %s6018_s14 }
 0x1b8   : > { %849 = vrot.lane.b32.xlu2 %v6337_v6, %s6021_s19 }
 0x1ba   : > { %v6393_v23 = vpop.permute.xlu2 %900 }
 0x1bf   : > { %859 = vrot.lane.b32.xlu0 %v6369_v16, %s6021_s19  ;;  %1071 = vrot.lane.b32.xlu1 %v6369_v16, %s6012_s8 }
 0x1c0   : > { %1018 = vrot.lane.b32.xlu2 %v6369_v16, %s6010_s6 }
 0x1c1   : > { %v6402_v27 = vpop.permute.xlu0 %953  ;;  %v6404_v28 = vpop.permute.xlu1 %1006 }
 0x1c2   : > { %v6406_v29 = vpop.permute.xlu2 %741 }
 0x1c7   : > { %912 = vrot.lane.b32.xlu1 %v6369_v16, %s6020_s18  ;;  %1122 = vrot.lane.b32.xlu0 %v6409_v30, %s6011_s7 }
 0x1c8   : > { %806 = vrot.lane.b32.xlu2 %v6369_v16, %s6018_s14 }
 0x1c9   : > { %v6417_v31 = vpop.permute.xlu0 %794  ;;  %v6419_v32 = vpop.permute.xlu1 %847 }
 0x1ca   : > { %v6421_v2 = vpop.permute.xlu2 %961 }
 0x1cf   : > { %753 = vrot.lane.b32.xlu1 %v6369_v16, %s6016_s12  ;;  %963 = vrot.lane.b32.xlu0 %v6409_v30, %s6022_s20 }
 0x1d0   : > { %1069 = vrot.lane.b32.xlu2 %v6409_v30, %s6012_s8 }
 0x1d1   : > { %v6429_v33 = vpop.permute.xlu0 %1067  ;;  %v6431_v34 = vpop.permute.xlu1 %1120 }
 0x1d2   : > { %v6433_v35 = vpop.permute.xlu2 %802 }
 0x1d7   : > { %1016 = vrot.lane.b32.xlu1 %v6409_v30, %s6010_s6  ;;  %857 = vrot.lane.b32.xlu0 %v6409_v30, %s6021_s19 }
 0x1d8   : > { %910 = vrot.lane.b32.xlu2 %v6409_v30, %s6020_s18 }
 0x1d9   : > { %v6441_v36 = vpop.permute.xlu0 %855  ;;  %v6443_v37 = vpop.permute.xlu1 %1014 }
 0x1da   : > { %v6445_v38 = vpop.permute.xlu2 %1063 }
 0x1df   : > { %804 = vrot.lane.b32.xlu1 %v6409_v30, %s6018_s14  ;;  %1426 = vperm.xlu0 %5893, %v6248_v42  }
 0x1e0   : > { %751 = vrot.lane.b32.xlu2 %v6409_v30, %s6016_s12 }
 0x1e1   : > { %v6451_v39 = vpop.permute.xlu0 %1010  ;;  %v6453_v40 = vpop.permute.xlu1 %908 }
 0x1e2   : > { %v1119_v41 = vpop.permute.xlu2 %1118 }
 0x1e3   : > { %v1131_v43 = vsel %vm340_vm3, %v1119_v41, %v6431_v34 }
 0x1e4   : > { %1296 = vmatpush.msra.mxu2 %v1131_v43 }
 0x1e7   : > { %1422 = vperm.xlu1 %5894, %v6201_v14   ;;  %5901 = vrot.lane.b32.xlu0 %v9072_v25, %s6004_s26 }
 0x1e8   : > { %2009 = vrot.lane.b32.xlu2 %v9072_v25, %s5999_s21 }
 0x1e9   : > { %v6459_v44 = vpop.permute.xlu0 %904  ;;  %v6461_v45 = vpop.permute.xlu1 %749 }
 0x1ea   : > { %v6463_v46 = vpop.permute.xlu2 %851 }
 0x1ef   : > { %5896 = vrot.lane.b32.xlu1 %v9072_v25, %s6005_s27  ;;  %1797 = vrot.lane.b32.xlu0 %v9072_v25, %s6011_s7 }
 0x1f0   : > { %1850 = vrot.lane.b32.xlu2 %v9072_v25, %s6015_s11 }
 0x1f1   : > { %v1013_v47 = vpop.permute.xlu0 %1012  ;;  %v1117_v48 = vpop.permute.xlu1 %1116 }
 0x1f2   : > { %v1130_v49 = vsel %vm340_vm3, %v1117_v48, %v1119_v41  ;;  %v960_v50 = vpop.permute.xlu2 %959  ;;  %v1024_v61 = vsel %vm318_vm6, %v6451_v39, %v1013_v47  ;;  %v1025_v62 = vsel %vm318_vm6, %v1013_v47, %v6443_v37 }
 0x1f3   : > { %1273 = vmatpush.msrb.mxu1 %v1130_v49  ;;  %v972_v1 = vsel %vm285_vm7, %v960_v50, %v6421_v2 }
 0x1f7   : > { %1744 = vrot.lane.b32.xlu1 %v9072_v25, %s6010_s6  ;;  %1638 = vrot.lane.b32.xlu0 %v9072_v25, %s6018_s14 }
 0x1f8   : > { %1691 = vrot.lane.b32.xlu2 %v9072_v25, %s6019_s17 }
 0x1f9   : > { %v6470_v52 = vpop.permute.xlu0 %745  ;;  %v6472_v53 = vpop.permute.xlu1 %957 }
 0x1fa   : > { %v854_v54 = vpop.permute.xlu2 %853  ;;  %v971_v4 = vsel %vm285_vm7, %v6472_v53, %v960_v50 }
 0x1fb   : > { %v865_v47 = vsel %vm263_vm8, %v6463_v46, %v854_v54  ;;  %v866_v49 = vsel %vm263_vm8, %v854_v54, %v6441_v36 }
 0x201   : > { %v801_v56 = vpop.permute.xlu0 %800  ;;  %v1066_v57 = vpop.permute.xlu1 %1065 }
 0x202   : > { %v1077_v58 = vsel %vm329_vm5, %v6445_v38, %v1066_v57  ;;  %v1078_v60 = vsel %vm329_vm5, %v1066_v57, %v6429_v33  ;;  %v748_v5 = vpop.permute.xlu2 %747  ;;  %v813_v42 = vsel %vm230_vm14, %v801_v56, %v6433_v35 }
 0x203   : > { %1274 = vmatpush.msrb.mxu1 %v1077_v58  ;;  %1297 = vmatpush.msra.mxu2 %v1078_v60  ;;  %v759_v57 = vsel %vm219_vm13, %v6470_v52, %v748_v5  ;;  %v760_v58 = vsel %vm219_vm13, %v748_v5, %v6461_v45 }
 0x205   : > { %1275 = vmatpush.msrb.mxu1 %v1024_v61  ;;  %1298 = vmatpush.msra.mxu2 %v1025_v62 }
 0x207   : > { %1276 = vmatpush.msrb.mxu1 %v971_v4  ;;  %1299 = vmatpush.msra.mxu2 %v972_v1 }
 0x209   : > { %v6486_v9 = vpop.permute.xlu1 %798  ;;  %v1062_v12 = vpop.permute.xlu0 %1061 }
 0x20a   : > { %v1009_v22 = vpop.permute.xlu2 %1008  ;;  %v812_v50 = vsel %vm230_vm14, %v6486_v9, %v801_v56  ;;  %v6512_v56 = vld [vmem:[%s9068_s1 + $0x8] sm:$0xff]  ;;  %v1075_v4 = vsel %vm329_vm5, %v6381_v19, %v1062_v12  ;;  %v1076_v5 = vsel %vm329_vm5, %v1062_v12, %v6445_v38 }
 0x211   : > { %v907_v24 = vpop.permute.xlu1 %906  ;;  %v903_v26 = vpop.permute.xlu0 %902 }
 0x212   : > { %v918_v41 = vsel %vm274_vm15, %v6459_v44, %v907_v24  ;;  %v919_v43 = vsel %vm274_vm15, %v907_v24, %v6453_v40  ;;  %v850_v54 = vpop.permute.xlu2 %849  ;;  %v916_v13 = vsel %vm274_vm15, %v6393_v23, %v903_v26 }
 0x213   : > { %1277 = vmatpush.msrb.mxu1 %v918_v41  ;;  %1300 = vmatpush.msra.mxu2 %v919_v43 }
 0x215   : > { %1278 = vmatpush.msrb.mxu1 %v865_v47  ;;  %1301 = vmatpush.msra.mxu2 %v866_v49 }
 0x217   : > { %1279 = vmatpush.msrb.mxu1 %v812_v50  ;;  %1302 = vmatpush.msra.mxu2 %v813_v42 }
 0x219   : > { %v744_v60 = vpop.permute.xlu0 %743  ;;  %v1115_v61 = vpop.permute.xlu1 %1114  ;;  %1280 = vmatpush.msrb.mxu1 %v759_v57  ;;  %1303 = vmatpush.msra.mxu2 %v760_v58 }
 0x21a   : > { %v1128_v62 = vsel %vm340_vm3, %v6366_v15, %v1115_v61  ;;  %v1129_v1 = vsel %vm340_vm3, %v1115_v61, %v1117_v48  ;;  %v1022_v15 = vsel %vm318_vm6, %v6404_v28, %v1009_v22  ;;  %v6537_v28 = vld [vmem:[%s9068_s1 + $0x58] sm:$0xff] }
 0x21b   : > { %1227 = vmatpush.msrb.mxu3 %v1128_v62  ;;  %1250 = vmatpush.msrb.mxu0 %v1129_v1 }
 0x21c   : > { %1281 = vmatpush.msrb.mxu1 %v6295_v59  ;;  %1304 = vmatpush.msra.mxu2 %v6311_v63  ;;  %v1023_v59 = vsel %vm318_vm6, %v1009_v22, %v6451_v39  ;;  %v6539_v39 = vpop.permute.xlu2 %1018 }
 0x21d   : > { %5742 = vmatmul.msk.f32.vlgmr.msrb.gmra.mxu1 %vm318_vm6, %v6512_v56  ;;  %5744 = vmatmul.msk.f32.vlgmr.msra.gmra.mxu2 %vm318_vm6, %v6512_v56 }
 0x21e   : > { %1228 = vmatpush.msrb.mxu3 %v1075_v4  ;;  %1251 = vmatpush.msrb.mxu0 %v1076_v5 }
 0x220   : > { %1229 = vmatpush.msrb.mxu3 %v1022_v15  ;;  %1252 = vmatpush.msrb.mxu0 %v1023_v59 }
 0x221   : > { %v1125_v63 = vpop.permute.xlu0 %1124  ;;  %v956_v19 = vpop.permute.xlu1 %955 }
 0x222   : > { %v1134_v38 = vsel %vm340_vm3, %v1125_v63, %v6319_v0  ;;  %v969_v48 = vsel %vm285_vm7, %v6402_v27, %v956_v19  ;;  %v970_v12 = vsel %vm285_vm7, %v956_v19, %v6472_v53  ;;  %v917_v0 = vsel %vm274_vm15, %v903_v26, %v6459_v44 }
 0x223   : > { %1230 = vmatpush.msrb.mxu3 %v969_v48  ;;  %1253 = vmatpush.msrb.mxu0 %v970_v12  ;;  %v863_v27 = vsel %vm263_vm8, %v6419_v32, %v850_v54  ;;  %v864_v53 = vsel %vm263_vm8, %v850_v54, %v6463_v46  ;;  %v757_v26 = vsel %vm219_vm13, %v6406_v29, %v744_v60  ;;  %v6637_v48 = vld [vmem:[%s9068_s1 + $0x10] sm:$0xff] }
 0x224   : > { %1365 = vmatpush.msra.mxu1 %v1134_v38  ;;  %v758_v32 = vsel %vm219_vm13, %v744_v60, %v6470_v52  ;;  %v807_v46 = vpop.permute.xlu2 %806  ;;  %v1028_v52 = vsel %vm318_vm6, %v6539_v39, %v6357_v11 }
 0x225   : > { %5743 = vmatmul.msk.f32.gmra.mxu1 %vm318_vm6, %v6537_v28  ;;  %5745 = vmatmul.msk.f32.gmra.mxu2 %vm318_vm6, %v6537_v28 }
 0x226   : > { %1231 = vmatpush.msrb.mxu3 %v916_v13  ;;  %1254 = vmatpush.msrb.mxu0 %v917_v0 }
 0x228   : > { %1232 = vmatpush.msrb.mxu3 %v863_v27  ;;  %1255 = vmatpush.msrb.mxu0 %v864_v53 }
 0x229   : > { %v966_v23 = vpop.permute.xlu0 %965  ;;  %v797_v22 = vpop.permute.xlu1 %796 }
 0x22a   : > { %v810_v44 = vsel %vm230_vm14, %v6417_v31, %v797_v22  ;;  %v811_v24 = vsel %vm230_vm14, %v797_v22, %v6486_v9 }
 0x22b   : > { %1233 = vmatpush.msrb.mxu3 %v810_v44  ;;  %1256 = vmatpush.msrb.mxu0 %v811_v24 }
 0x22d   : > { %1234 = vmatpush.msrb.mxu3 %v757_v26  ;;  %1257 = vmatpush.msrb.mxu0 %v758_v32 }
 0x22f   : > { %1235 = vmatpush.msrb.mxu3 %v6263_v51  ;;  %1258 = vmatpush.msrb.mxu0 %v6337_v6  ;;  %v975_v51 = vsel %vm285_vm7, %v966_v23, %v6327_v3  ;;  %v1070_v6 = vpop.permute.xlu2 %1069 }
 0x230   : > { %5738 = vmatmul.msk.f32.vlgmr.msrb.gmra.mxu3 %vm318_vm6, %v6512_v56  ;;  %5740 = vmatmul.msk.f32.vlgmr.msrb.gmra.mxu0 %vm318_vm6, %v6512_v56  ;;  %v1079_v3 = vsel %vm329_vm5, %v6429_v33, %v1070_v6 }
 0x231   : > { %v860_v31 = vpop.permute.xlu0 %859  ;;  %v1072_v9 = vpop.permute.xlu1 %1071 }
 0x232   : > { %v1081_v29 = vsel %vm329_vm5, %v1072_v9, %v6355_v10  ;;  %v1080_v49 = vsel %vm329_vm5, %v1070_v6, %v1072_v9  ;;  %v869_v42 = vsel %vm263_vm8, %v860_v31, %v6371_v17  ;;  %v6028_v9 = vmov 4  }
 0x233   : > { %1366 = vmatpush.msra.mxu1 %v1081_v29  ;;  %5906 = vset.pattern.permute.xlu2 %v6028_v9 }
 0x234   : > { %5905 = vset.pattern.permute.xlu1 %v6028_v9  ;;  %2282 = vperm.xlu2 %5906, %v6201_v14  }
 0x235   : > { %1367 = vmatpush.msra.mxu1 %v1028_v52 }
 0x237   : > { %1368 = vmatpush.msra.mxu1 %v975_v51  ;;  %v911_v33 = vpop.permute.xlu2 %910 }
 0x238   : > { %5739 = vmatmul.msk.f32.gmra.mxu3 %vm318_vm6, %v6537_v28  ;;  %5741 = vmatmul.msk.f32.gmra.mxu0 %vm318_vm6, %v6537_v28 }
 0x239   : > { %v913_v41 = vpop.permute.xlu1 %912  ;;  %v1123_v43 = vpop.permute.xlu0 %1122 }
 0x23a   : > { %v922_v10 = vsel %vm274_vm15, %v913_v41, %v6373_v18  ;;  %v1132_v11 = vsel %vm340_vm3, %v6431_v34, %v1123_v43  ;;  %v1133_v47 = vsel %vm340_vm3, %v1123_v43, %v1125_v63  ;;  %v816_v18 = vsel %vm230_vm14, %v807_v46, %v6339_v7 }
 0x23b   : > { %1319 = vmatpush.msra.mxu3 %v1132_v11  ;;  %1342 = vmatpush.msra.mxu0 %v1133_v47  ;;  %v921_v54 = vsel %vm274_vm15, %v911_v33, %v913_v41 }
 0x23c   : > { %1369 = vmatpush.msra.mxu1 %v922_v10  ;;  %2944 = vrot.lane.b32.xlu2 %v9072_v25, %s6004_s26 }
 0x23d   : > { %1320 = vmatpush.msra.mxu3 %v1079_v3  ;;  %1343 = vmatpush.msra.mxu0 %v1080_v49 }
 0x23e   : > { %1370 = vmatpush.msra.mxu1 %v869_v42 }
 0x23f   : > { %v752_v62 = vpop.permute.xlu2 %751 }
 0x240   : > { %1371 = vmatpush.msra.mxu1 %v816_v18  ;;  %v761_v5 = vsel %vm219_vm13, %v6461_v45, %v752_v62 }
 0x241   : > { %v754_v34 = vpop.permute.xlu1 %753  ;;  %v964_v57 = vpop.permute.xlu0 %963 }
 0x242   : > { %v763_v50 = vsel %vm219_vm13, %v754_v34, %v6389_v21  ;;  %v973_v21 = vsel %vm285_vm7, %v6421_v2, %v964_v57  ;;  %v974_v60 = vsel %vm285_vm7, %v964_v57, %v966_v23  ;;  %v762_v15 = vsel %vm219_vm13, %v752_v62, %v754_v34 }
 0x243   : > { %1372 = vmatpush.msra.mxu1 %v763_v50  ;;  %v6029_v57 = vmov 7   ;;  %vm4058_vm13 = vcmask 441344  }
 0x244   : > { %5941 = vset.pattern.permute.xlu2 %v6029_v57 }
 0x245   : > { %1373 = vmatpush.msra.mxu1 %v6369_v16  ;;  %v920_v16 = vsel %vm274_vm15, %v6453_v40, %v911_v33  ;;  %5915 = vrot.lane.b32.xlu2 %v9072_v25, %s6011_s7 }
 0x246   : > { %5750 = vmatmul.msk.f32.vlgmr.msra.gmra.mxu1 %vm318_vm6, %v6512_v56 }
 0x249   : > { %v1017_v17 = vpop.permute.xlu1 %1016  ;;  %v858_v61 = vpop.permute.xlu0 %857 }
 0x24a   : > { %v1026_v58 = vsel %vm318_vm6, %v6443_v37, %v1017_v17  ;;  %v1027_v7 = vsel %vm318_vm6, %v1017_v17, %v6539_v39  ;;  %v867_v37 = vsel %vm263_vm8, %v6441_v36, %v858_v61  ;;  %v868_v2 = vsel %vm263_vm8, %v858_v61, %v860_v31 }
 0x24b   : > { %1321 = vmatpush.msra.mxu3 %v1026_v58  ;;  %1344 = vmatpush.msra.mxu0 %v1027_v7  ;;  %v6030_v7 = vmov 5  }
 0x24c   : > { %5907 = vset.pattern.permute.xlu0 %v6030_v7 }
 0x24d   : > { %1322 = vmatpush.msra.mxu3 %v973_v21  ;;  %1345 = vmatpush.msra.mxu0 %v974_v60 }
 0x24e   : > { %5751 = vmatmul.msk.f32.gmra.mxu1 %vm318_vm6, %v6537_v28  ;;  %5920 = vrot.lane.b32.xlu2 %v9072_v25, %s6010_s6 }
 0x24f   : > { %1323 = vmatpush.msra.mxu3 %v920_v16  ;;  %1346 = vmatpush.msra.mxu0 %v921_v54  ;;  %v3675_v54 = vld [vmem:[%s9069_s2 + $0x8] sm:$0xff] }
 0x250   : > { %2287 = vperm.xlu1 %5905, %v3675_v54   ;;  %2309 = vperm.xlu0 %5907, %v3675_v54  }
 0x251   : > { %v805_v1 = vpop.permute.xlu1 %804  ;;  %1324 = vmatpush.msra.mxu3 %v867_v37  ;;  %1347 = vmatpush.msra.mxu0 %v868_v2  ;;  %v6626_v63 = vpop.permute.xlu0 %1426 }
 0x252   : > { %v814_v4 = vsel %vm230_vm14, %v6433_v35, %v805_v1  ;;  %v815_v40 = vsel %vm230_vm14, %v805_v1, %v807_v46 }
 0x253   : > { %1325 = vmatpush.msra.mxu3 %v814_v4  ;;  %1348 = vmatpush.msra.mxu0 %v815_v40 }
 0x255   : > { %1326 = vmatpush.msra.mxu3 %v761_v5  ;;  %1349 = vmatpush.msra.mxu0 %v762_v15 }
 0x256   : > { %5930 = vrot.lane.b32.xlu2 %v9072_v25, %s6018_s14 }
 0x257   : > { %1327 = vmatpush.msra.mxu3 %v6279_v55  ;;  %1350 = vmatpush.msra.mxu0 %v6409_v30 }
 0x258   : > { %5746 = vmatmul.msk.f32.vlgmr.msra.gmra.mxu3 %vm318_vm6, %v6512_v56  ;;  %5748 = vmatmul.msk.f32.vlgmr.msra.gmra.mxu0 %vm318_vm6, %v6512_v56 }
 0x259   : > { %v6630_v19 = vpop.permute.xlu1 %1422  ;;  %5908 = vset.pattern.permute.xlu1 %v6030_v7  ;;  %3050 = vrot.lane.b32.xlu0 %v9072_v25, %s6005_s27 }
 0x25a   : > { %2305 = vperm.xlu1 %5908, %v6201_v14   ;;  %v3674_v14 = vld [vmem:[%s9069_s2] sm:$0xff] }
 0x25e   : > { %5935 = vrot.lane.b32.xlu2 %v9072_v25, %s5999_s21 }
 0x260   : > { %5747 = vmatmul.msk.f32.gmra.mxu3 %vm318_vm6, %v6537_v28  ;;  %5749 = vmatmul.msk.f32.gmra.mxu0 %vm318_vm6, %v6537_v28 }
 0x261   : > { %5910 = vrot.lane.b32.xlu0 %v9072_v25, %s6015_s11 }
 0x262   : > { %5925 = vrot.lane.b32.xlu1 %v9072_v25, %s6019_s17 }
 0x266   : > { %3719 = vperm.xlu2 %5941, %v3675_v54  }
 0x26e   : > { %5949 = vrot.lane.b32.xlu2 %v9072_v25, %s6032_s22 }
 0x276   : > { %5959 = vrot.lane.b32.xlu2 %v9072_v25, %s6033_s23 }
 0x27e   : > { %5974 = vrot.lane.b32.xlu2 %v9072_v25, %s6018_s14 }
 0x29a   : > { %v1283_v35 = vpop.f32.mrf.mxu1 }
 0x29b   : > { %v1385_v36 = vmax.f32 %v1283_v35, 0.0 }
 0x29d   : > { %v1409_v55 = vmul.f32 %v6353_v8, %v1385_v36 }
 0x29f   : > { %v1431_v38 = vadd.f32 %v6630_v19, %v1409_v55 }
 0x2a0   : > { %v1306_v28 = vpop.f32.mrf.mxu2 }
 0x2a1   : > { %v1386_v29 = vmax.f32 %v1306_v28, 0.0 }
 0x2a2   : > { %v1286_v45 = vpop.f32.mrf.mxu1 }
 0x2a3   : > { %v1392_v59 = vmax.f32 %v1286_v45, 0.0  ;;  %v1410_v10 = vmul.f32 %v6353_v8, %v1386_v29 }
 0x2a5   : > { %v1416_v30 = vmul.f32 %v6387_v20, %v1392_v59  ;;  %v1432_v3 = vadd.f32 %v6630_v19, %v1410_v10 }
 0x2a7   : > { %v1438_v56 = vadd.f32 %v6626_v63, %v1416_v30 }
 0x2a8   : > { %v1309_v53 = vpop.f32.mrf.mxu2 }
 0x2a9   : > { %1501 = vmatpush.msrb.mxu3 %v1438_v56  ;;  %v1393_v32 = vmax.f32 %v1309_v53, 0.0 }
 0x2ab   : > { %1502 = vmatpush.msrb.mxu3 %v1431_v38  ;;  %v1417_v6 = vmul.f32 %v6387_v20, %v1393_v32 }
 0x2ac   : > { %5754 = vmatmul.msk.f32.vlgmr.msrb.gmra.mxu3 %vm428_vm2, %v6637_v48 }
 0x2ad   : > { %v1260_v12 = vpop.f32.mrf.mxu0  ;;  %v1439_v47 = vadd.f32 %v6626_v63, %v1417_v6 }
 0x2ae   : > { %v1384_v44 = vmax.f32 %v1260_v12, 0.0 }
 0x2b0   : > { %v1408_v52 = vmul.f32 %v6353_v8, %v1384_v44 }
 0x2b2   : > { %v1430_v11 = vadd.f32 %v6630_v19, %v1408_v52 }
 0x2b3   : > { %v1237_v39 = vpop.f32.mrf.mxu3 }
 0x2b4   : > { %v1383_v0 = vmax.f32 %v1237_v39, 0.0  ;;  %v6771_v39 = vpop.permute.xlu1 %5896 }
 0x2b5   : > { %v1263_v13 = vpop.f32.mrf.mxu0 }
 0x2b6   : > { %v1391_v23 = vmax.f32 %v1263_v13, 0.0  ;;  %v1407_v24 = vmul.f32 %v6353_v8, %v1383_v0  ;;  %v6777_v13 = vpop.permute.xlu0 %5901 }
 0x2b8   : > { %v1415_v46 = vmul.f32 %v6387_v20, %v1391_v23  ;;  %v1429_v51 = vadd.f32 %v6630_v19, %v1407_v24 }
 0x2ba   : > { %v1437_v43 = vadd.f32 %v6626_v63, %v1415_v46 }
 0x2bb   : > { %v1240_v27 = vpop.f32.mrf.mxu3 }
 0x2bc   : > { %v1390_v22 = vmax.f32 %v1240_v27, 0.0  ;;  %v6789_v53 = vpop.permute.xlu1 %1744 }
 0x2be   : > { %v1414_v26 = vmul.f32 %v6387_v20, %v1390_v22  ;;  %v6791_v23 = vpop.permute.xlu0 %1797 }
 0x2c0   : > { %v1436_v31 = vadd.f32 %v6626_v63, %v1414_v26 }
 0x2c2   : > { %1461 = vmatpush.msrb.mxu2 %v1436_v31 }
 0x2c3   : > { %v1375_v41 = vpop.f32.mrf.mxu1 }
 0x2c4   : > { %1462 = vmatpush.msrb.mxu2 %v1429_v51  ;;  %v1389_v49 = vmax.f32 %v1375_v41, 0.0  ;;  %v6803_v24 = vpop.permute.xlu1 %2287 }
 0x2c5   : > { %5752 = vmatmul.msk.f32.vlgmr.msrb.gmra.mxu2 %vm428_vm2, %v6637_v48 }
 0x2c6   : > { %1481 = vmatpush.msra.mxu2 %v1437_v43  ;;  %v1413_v34 = vmul.f32 %v6353_v8, %v1389_v49  ;;  %v6807_v26 = vpop.permute.xlu0 %1638 }
 0x2c8   : > { %1482 = vmatpush.msra.mxu2 %v1430_v11  ;;  %v1435_v17 = vadd.f32 %v6630_v19, %v1413_v34 }
 0x2ca   : > { %1521 = vmatpush.msrb.mxu2 %v1439_v47 }
 0x2cb   : > { %v1378_v42 = vpop.f32.mrf.mxu1 }
 0x2cc   : > { %1522 = vmatpush.msrb.mxu2 %v1432_v3  ;;  %v1396_v18 = vmax.f32 %v1378_v42, 0.0  ;;  %v6817_v46 = vpop.permute.xlu1 %2305 }
 0x2cd   : > { %5753 = vmatmul.msk.f32.vlgmr.msra.gmra.mxu2 %vm428_vm2, %v6637_v48 }
 0x2ce   : > { %v1420_v50 = vmul.f32 %v6387_v20, %v1396_v18  ;;  %v6819_v31 = vpop.permute.xlu0 %2309 }
 0x2d0   : > { %v1442_v33 = vadd.f32 %v6626_v63, %v1420_v50 }
 0x2d2   : > { %1581 = vmatpush.msra.mxu3 %v1442_v33 }
 0x2d4   : > { %1582 = vmatpush.msra.mxu3 %v1435_v17  ;;  %v6831_v52 = vpop.permute.xlu1 %5925 }
 0x2d5   : > { %v1352_v58 = vpop.f32.mrf.mxu0  ;;  %5758 = vmatmul.msk.f32.vlgmr.msra.gmra.mxu3 %vm428_vm2, %v6637_v48  ;;  %5755 = vmatmul.msk.f32.vlgmr.msrb.gmra.mxu2 %vm428_vm2, %v6637_v48  ;;  %9109 = vst [vmem:[#allocation15_spill] sm:$0xff] %v6831_v52 }
 0x2d6   : > { %v1388_v60 = vmax.f32 %v1352_v58, 0.0  ;;  %v6837_v51 = vpop.permute.xlu0 %3050 }
 0x2d8   : > { %v1412_v37 = vmul.f32 %v6353_v8, %v1388_v60 }
 0x2da   : > { %v1434_v5 = vadd.f32 %v6630_v19, %v1412_v37 }
 0x2db   : > { %v1329_v21 = vpop.f32.mrf.mxu3 }
 0x2dc   : > { %v1387_v62 = vmax.f32 %v1329_v21, 0.0 }
 0x2dd   : > { %v1355_v61 = vpop.f32.mrf.mxu0 }
 0x2de   : > { %v1395_v16 = vmax.f32 %v1355_v61, 0.0  ;;  %v1411_v15 = vmul.f32 %v6353_v8, %v1387_v62  ;;  %v6031_v8 = vmov 6   ;;  %v6851_v10 = vpop.permute.xlu0 %5910 }
 0x2df   : > { %5939 = vset.pattern.permute.xlu0 %v6031_v8  ;;  %5940 = vset.pattern.permute.xlu1 %v6031_v8  ;;  %9110 = vst [vmem:[#allocation16_spill] sm:$0xff] %v6851_v10 }
 0x2e0   : > { %v1419_v2 = vmul.f32 %v6387_v20, %v1395_v16  ;;  %v1433_v45 = vadd.f32 %v6630_v19, %v1411_v15  ;;  %3692 = vperm.xlu1 %5940, %v3674_v14   ;;  %3697 = vperm.xlu0 %5939, %v3675_v54  }
 0x2e2   : > { %v1441_v1 = vadd.f32 %v6626_v63, %v1419_v2 }
 0x2e3   : > { %v1332_v4 = vpop.f32.mrf.mxu3 }
 0x2e4   : > { %v1394_v40 = vmax.f32 %v1332_v4, 0.0  ;;  %1561 = vmatpush.msrb.mxu1 %v1441_v1 }
 0x2e6   : > { %v1418_v35 = vmul.f32 %v6387_v20, %v1394_v40  ;;  %1562 = vmatpush.msrb.mxu1 %v1434_v5  ;;  %v6715_v20 = vpop.permute.xlu2 %2009 }
 0x2e7   : > { %5757 = vmatmul.msk.f32.vlgmr.msrb.gmra.mxu1 %vm428_vm2, %v6637_v48 }
 0x2e8   : > { %v1440_v36 = vadd.f32 %v6626_v63, %v1418_v35  ;;  %5942 = vset.pattern.permute.xlu1 %v6029_v57  ;;  %5944 = vrot.lane.b32.xlu0 %v9072_v25, %s6034_s24 }
 0x2e9   : > { %3715 = vperm.xlu1 %5942, %v3674_v14  }
 0x2ea   : > { %1541 = vmatpush.msrb.mxu0 %v1440_v36 }
 0x2ec   : > { %1542 = vmatpush.msrb.mxu0 %v1433_v45 }
 0x2ed   : > { %5756 = vmatmul.msk.f32.vlgmr.msrb.gmra.mxu0 %vm428_vm2, %v6637_v48 }
 0x2ee   : > { %v6719_v59 = vpop.permute.xlu2 %1850 }
 0x2f1   : > { %5954 = vrot.lane.b32.xlu1 %v9072_v25, %s6035_s25 }
 0x2f6   : > { %v6725_v63 = vpop.permute.xlu2 %1691 }
 0x2f9   : > { %5964 = vrot.lane.b32.xlu1 %v9072_v25, %s6010_s6 }
 0x2fe   : > { %v6729_v55 = vpop.permute.xlu2 %2282 }
 0x301   : > { %5969 = vrot.lane.b32.xlu1 %v9072_v25, %s6036_s28 }
 0x306   : > { %v6737_v19 = vpop.permute.xlu2 %2944 }
 0x307   : > { %9101 = vst [vmem:[#allocation7_spill] sm:$0xff] %v6737_v19 }
 0x30e   : > { %v6745_v56 = vpop.permute.xlu2 %5915 }
 0x30f   : > { %9102 = vst [vmem:[#allocation8_spill] sm:$0xff] %v6745_v56 }
 0x316   : > { %v6749_v38 = vpop.permute.xlu2 %5920 }
 0x317   : > { %9103 = vst [vmem:[#allocation9_spill] sm:$0xff] %v6749_v38 }
 0x31e   : > { %v6759_v12 = vpop.permute.xlu2 %5930 }
 0x31f   : > { %9104 = vst [vmem:[#allocation10_spill] sm:$0xff] %v6759_v12 }
 0x326   : > { %v6767_v28 = vpop.permute.xlu2 %5935 }
 0x327   : > { %9105 = vst [vmem:[#allocation11_spill] sm:$0xff] %v6767_v28 }
 0x32e   : > { %v6779_v0 = vpop.permute.xlu2 %3719 }
 0x32f   : > { %v6733_v30 = vpop.f32.mrf.mxu3 }
 0x330   : > { %1628 = vrot.lane.b32.xlu2 %v6733_v30, %s6018_s14  ;;  %1787 = vrot.lane.b32.xlu0 %v6733_v30, %s6011_s7 }
 0x331   : > { %1734 = vrot.lane.b32.xlu1 %v6733_v30, %s6010_s6 }
 0x336   : > { %v6793_v22 = vpop.permute.xlu2 %5949 }
 0x337   : > { %9106 = vst [vmem:[#allocation12_spill] sm:$0xff] %v6793_v22 }
 0x338   : > { %1999 = vrot.lane.b32.xlu2 %v6733_v30, %s5999_s21 }
 0x33e   : > { %v6809_v32 = vpop.permute.xlu2 %5959 }
 0x33f   : > { %9107 = vst [vmem:[#allocation13_spill] sm:$0xff] %v6809_v32 }
 0x340   : > { %1946 = vrot.lane.b32.xlu2 %v6733_v30, %s6005_s27 }
 0x346   : > { %v6823_v9 = vpop.permute.xlu2 %5974 }
 0x347   : > { %9108 = vst [vmem:[#allocation14_spill] sm:$0xff] %v6823_v9 }
 0x348   : > { %1893 = vrot.lane.b32.xlu2 %v6733_v30, %s6004_s26  ;;  %v6753_v48 = vpop.f32.mrf.mxu2 }
 0x349   : > { %1995 = vrot.lane.b32.xlu0 %v6753_v48, %s5999_s21  ;;  %1889 = vrot.lane.b32.xlu1 %v6753_v48, %s6004_s26 }
 0x350   : > { %1840 = vrot.lane.b32.xlu2 %v6733_v30, %s6015_s11  ;;  %v6801_v44 = vpop.f32.mrf.mxu2 }
 0x351   : > { %1836 = vrot.lane.b32.xlu0 %v6753_v48, %s6015_s11 }
 0x352   : > { %v6847_v41 = vpop.permute.xlu1 %3692  ;;  %v6865_v3 = vpop.permute.xlu0 %3697 }
 0x358   : > { %1681 = vrot.lane.b32.xlu2 %v6733_v30, %s6019_s17  ;;  %v6829_v29 = vpop.f32.mrf.mxu3  ;;  %v6889_v57 = vpop.f32.mrf.mxu2 }
 0x359   : > { %1783 = vrot.lane.b32.xlu0 %v6753_v48, %s6011_s7 }
 0x35a   : > { %v6879_v34 = vpop.permute.xlu0 %5944 }
 0x35b   : > { %v6861_v47 = vpop.permute.xlu1 %3715  ;;  %9112 = vst [vmem:[#allocation18_spill] sm:$0xff] %v6879_v34 }
 0x360   : > { %1624 = vrot.lane.b32.xlu2 %v6753_v48, %s6018_s14 }
 0x361   : > { %1730 = vrot.lane.b32.xlu0 %v6753_v48, %s6010_s6 }
 0x363   : > { %v6877_v18 = vpop.permute.xlu1 %5954 }
 0x364   : > { %v6781_v27 = vpop.f32.mrf.mxu1  ;;  %9111 = vst [vmem:[#allocation17_spill] sm:$0xff] %v6877_v18 }
 0x365   : > { %1899 = vrot.lane.b32.xlu1 %v6781_v27, %s6004_s26 }
 0x368   : > { %1942 = vrot.lane.b32.xlu2 %v6753_v48, %s6005_s27 }
 0x369   : > { %1677 = vrot.lane.b32.xlu0 %v6753_v48, %s6019_s17 }
 0x36a   : > { %v6867_v49 = vpop.f32.mrf.mxu0 }
 0x36b   : > { %v6891_v33 = vpop.permute.xlu1 %5964 }
 0x36c   : > { %9113 = vst [vmem:[#allocation19_spill] sm:$0xff] %v6891_v33 }
 0x36d   : > { %1740 = vrot.lane.b32.xlu1 %v6781_v27, %s6010_s6 }
 0x370   : > { %1634 = vrot.lane.b32.xlu2 %v6781_v27, %s6018_s14 }
 0x371   : > { %1952 = vrot.lane.b32.xlu0 %v6781_v27, %s6005_s27 }
 0x373   : > { %v6907_v7 = vpop.permute.xlu1 %5969 }
 0x374   : > { %9114 = vst [vmem:[#allocation20_spill] sm:$0xff] %v6907_v7 }
 0x375   : > { %1626 = vrot.lane.b32.xlu1 %v6801_v44, %s6018_s14 }
 0x378   : > { %2005 = vrot.lane.b32.xlu2 %v6781_v27, %s5999_s21 }
 0x379   : > { %1793 = vrot.lane.b32.xlu0 %v6781_v27, %s6011_s7 }
 0x37d   : > { %1997 = vrot.lane.b32.xlu1 %v6801_v44, %s5999_s21 }
 0x380   : > { %1846 = vrot.lane.b32.xlu2 %v6781_v27, %s6015_s11 }
 0x381   : > { %1944 = vrot.lane.b32.xlu0 %v6801_v44, %s6005_s27 }
 0x385   : > { %1838 = vrot.lane.b32.xlu1 %v6801_v44, %s6015_s11 }
 0x388   : > { %1687 = vrot.lane.b32.xlu2 %v6781_v27, %s6019_s17 }
 0x389   : > { %2007 = vrot.lane.b32.xlu0 %v6829_v29, %s5999_s21 }
 0x38a   : > { %v6839_v6 = vpop.permute.xlu2 %1628 }
 0x38d   : > { %1785 = vrot.lane.b32.xlu1 %v6801_v44, %s6011_s7 }
 0x390   : > { %1891 = vrot.lane.b32.xlu2 %v6801_v44, %s6004_s26 }
 0x391   : > { %1848 = vrot.lane.b32.xlu0 %v6829_v29, %s6015_s11 }
 0x392   : > { %v6849_v43 = vpop.permute.xlu2 %1999 }
 0x395   : > { %1732 = vrot.lane.b32.xlu1 %v6801_v44, %s6010_s6 }
 0x398   : > { %1901 = vrot.lane.b32.xlu2 %v6829_v29, %s6004_s26 }
 0x399   : > { %1742 = vrot.lane.b32.xlu0 %v6829_v29, %s6010_s6 }
 0x39a   : > { %v6859_v11 = vpop.permute.xlu2 %1946 }
 0x39d   : > { %1679 = vrot.lane.b32.xlu1 %v6801_v44, %s6019_s17 }
 0x3a0   : > { %1689 = vrot.lane.b32.xlu2 %v6829_v29, %s6019_s17 }
 0x3a1   : > { %1950 = vrot.lane.b32.xlu0 %v6867_v49, %s6005_s27 }
 0x3a2   : > { %v6873_v42 = vpop.permute.xlu2 %1893  ;;  %v6897_v17 = vpop.permute.xlu0 %1787 }
 0x3a3   : > { %v6917_v54 = vpop.permute.xlu1 %1734 }
 0x3a5   : > { %1954 = vrot.lane.b32.xlu1 %v6829_v29, %s6005_s27 }
 0x3a8   : > { %1897 = vrot.lane.b32.xlu2 %v6867_v49, %s6004_s26 }
 0x3a9   : > { %1791 = vrot.lane.b32.xlu0 %v6867_v49, %s6011_s7 }
 0x3aa   : > { %v6885_v50 = vpop.permute.xlu2 %1840 }
 0x3ad   : > { %1795 = vrot.lane.b32.xlu1 %v6829_v29, %s6011_s7 }
 0x3b0   : > { %1738 = vrot.lane.b32.xlu2 %v6867_v49, %s6010_s6 }
 0x3b1   : > { %1630 = vrot.lane.b32.xlu0 %v6889_v57, %s6018_s14 }
 0x3b2   : > { %v6899_v58 = vpop.permute.xlu2 %1681 }
 0x3b5   : > { %1636 = vrot.lane.b32.xlu1 %v6829_v29, %s6018_s14 }
 0x3b8   : > { %1948 = vrot.lane.b32.xlu2 %v6889_v57, %s6005_s27 }
 0x3b9   : > { %2001 = vrot.lane.b32.xlu0 %v6889_v57, %s5999_s21 }
 0x3ba   : > { %v6909_v21 = vpop.permute.xlu2 %1624 }
 0x3bb   : > { %v1996_v60 = vpop.permute.xlu0 %1995  ;;  %v1890_v62 = vpop.permute.xlu1 %1889 }
 0x3bd   : > { %1632 = vrot.lane.b32.xlu1 %v6867_v49, %s6018_s14 }
 0x3c0   : > { %1789 = vrot.lane.b32.xlu2 %v6889_v57, %s6011_s7 }
 0x3c1   : > { %1842 = vrot.lane.b32.xlu0 %v6889_v57, %s6015_s11 }
 0x3c2   : > { %v1943_v61 = vpop.permute.xlu2 %1942 }
 0x3c3   : > { %v1837_v16 = vpop.permute.xlu0 %1836 }
 0x3c5   : > { %2003 = vrot.lane.b32.xlu1 %v6867_v49, %s5999_s21 }
 0x3c9   : > { %1683 = vrot.lane.b32.xlu0 %v6889_v57, %s6019_s17 }
 0x3ca   : > { %v6923_v37 = vpop.permute.xlu2 %1634 }
 0x3cb   : > { %v1784_v2 = vpop.permute.xlu0 %1783 }
 0x3cd   : > { %1844 = vrot.lane.b32.xlu1 %v6867_v49, %s6015_s11 }
 0x3d2   : > { %v6927_v4 = vpop.permute.xlu2 %2005 }
 0x3d3   : > { %v1731_v1 = vpop.permute.xlu0 %1730 }
 0x3d5   : > { %1685 = vrot.lane.b32.xlu1 %v6867_v49, %s6019_s17 }
 0x3d7   : > { %v6931_v40 = vpop.permute.xlu1 %1899 }
 0x3da   : > { %v6935_v15 = vpop.permute.xlu2 %1846 }
 0x3db   : > { %v1678_v5 = vpop.permute.xlu0 %1677 }
 0x3dd   : > { %1895 = vrot.lane.b32.xlu1 %v6889_v57, %s6004_s26 }
 0x3df   : > { %v6937_v35 = vpop.permute.xlu1 %1740 }
 0x3e2   : > { %v6943_v8 = vpop.permute.xlu2 %1687 }
 0x3e3   : > { %v6939_v36 = vpop.permute.xlu0 %1952 }
 0x3e5   : > { %1736 = vrot.lane.b32.xlu1 %v6889_v57, %s6010_s6 }
 0x3e7   : > { %v1627_v45 = vpop.permute.xlu1 %1626 }
 0x3ea   : > { %v1892_v33 = vpop.permute.xlu2 %1891 }
 0x3eb   : > { %v6945_v14 = vpop.permute.xlu0 %1793  ;;  %v1905_v34 = vsel %vm428_vm2, %v1890_v62, %v1892_v33  ;;  %v1906_v12 = vsel %vm428_vm2, %v1892_v33, %v6873_v42 }
 0x3ef   : > { %v1998_v25 = vpop.permute.xlu1 %1997 }
 0x3f0   : > { %v2011_v7 = vsel %vm472_vm4, %v1996_v60, %v1998_v25  ;;  %v2012_v9 = vsel %vm472_vm4, %v1998_v25, %v6849_v43 }
 0x3f1   : > { %2110 = vmatpush.msra.mxu2 %v2011_v7  ;;  %2133 = vmatpush.msra.mxu0 %v2012_v9 }
 0x3f2   : > { %v6964_v33 = vpop.permute.xlu2 %1901 }
 0x3f3   : > { %v1945_v22 = vpop.permute.xlu0 %1944 }
 0x3f4   : > { %v1958_v32 = vsel %vm450_vm11, %v1943_v61, %v1945_v22  ;;  %v1959_v18 = vsel %vm450_vm11, %v1945_v22, %v6859_v11 }
 0x3f5   : > { %2111 = vmatpush.msra.mxu2 %v1958_v32  ;;  %2134 = vmatpush.msra.mxu0 %v1959_v18 }
 0x3f7   : > { %v1839_v60 = vpop.permute.xlu1 %1838  ;;  %2112 = vmatpush.msra.mxu2 %v1905_v34  ;;  %2135 = vmatpush.msra.mxu0 %v1906_v12 }
 0x3f8   : > { %v1852_v25 = vsel %vm362_vm10, %v1837_v16, %v1839_v60  ;;  %v1853_v9 = vsel %vm362_vm10, %v1839_v60, %v6885_v50 }
 0x3f9   : > { %2113 = vmatpush.msra.mxu2 %v1852_v25  ;;  %2136 = vmatpush.msra.mxu0 %v1853_v9 }
 0x3fb   : > { %v6959_v7 = vpop.permute.xlu0 %2007 }
 0x3ff   : > { %v1786_v22 = vpop.permute.xlu1 %1785 }
 0x400   : > { %v1799_v32 = vsel %vm340_vm3, %v1784_v2, %v1786_v22  ;;  %v1800_v18 = vsel %vm340_vm3, %v1786_v22, %v6897_v17  ;;  %v6973_v2 = vpop.permute.xlu2 %1689  ;;  %v1641_v22 = vsel %vm230_vm14, %v1627_v45, %v6839_v6 }
 0x401   : > { %2114 = vmatpush.msra.mxu2 %v1799_v32  ;;  %2137 = vmatpush.msra.mxu0 %v1800_v18  ;;  %v6985_v18 = vld [vmem:[%s9068_s1 + $0x18] sm:$0xff] }
 0x403   : > { %v6966_v12 = vpop.permute.xlu0 %1848 }
 0x407   : > { %v1733_v34 = vpop.permute.xlu1 %1732 }
 0x408   : > { %v1746_v61 = vsel %vm318_vm6, %v1731_v1, %v1733_v34  ;;  %v1747_v16 = vsel %vm318_vm6, %v1733_v34, %v6917_v54  ;;  %v1640_v1 = vsel %vm230_vm14, %v6909_v21, %v1627_v45  ;;  %v6996_v21 = vpop.permute.xlu2 %1897 }
 0x409   : > { %2115 = vmatpush.msra.mxu2 %v1746_v61  ;;  %2138 = vmatpush.msra.mxu0 %v1747_v16  ;;  %v7011_v61 = vld [vmem:[%s9068_s1 + $0x68] sm:$0xff]  ;;  %v1857_v16 = vsel %vm362_vm10, %v6935_v15, %v6966_v12 }
 0x40b   : > { %v6971_v62 = vpop.permute.xlu0 %1742 }
 0x40f   : > { %v1680_v60 = vpop.permute.xlu1 %1679 }
 0x410   : > { %v1693_v25 = vsel %vm252_vm1, %v1678_v5, %v1680_v60  ;;  %v1694_v9 = vsel %vm252_vm1, %v1680_v60, %v6899_v58  ;;  %v2016_v5 = vsel %vm472_vm4, %v6927_v4, %v6959_v7 }
 0x411   : > { %2116 = vmatpush.msra.mxu2 %v1693_v25  ;;  %2139 = vmatpush.msra.mxu0 %v1694_v9  ;;  %v7025_v9 = vpop.permute.xlu2 %1738 }
 0x413   : > { %v1951_v32 = vpop.permute.xlu0 %1950  ;;  %2117 = vmatpush.msra.mxu2 %v1640_v1  ;;  %2140 = vmatpush.msra.mxu0 %v1641_v22  ;;  %v1751_v1 = vsel %vm318_vm6, %v6937_v35, %v6971_v62 }
 0x415   : > { %2118 = vmatpush.msra.mxu2 %v6753_v48  ;;  %2141 = vmatpush.msra.mxu0 %v6801_v44  ;;  %v1910_v44 = vsel %vm428_vm2, %v6931_v40, %v6964_v33 }
 0x416   : > { %5759 = vmatmul.msk.f32.vlgmr.msra.gmra.mxu2 %vm318_vm6, %v6985_v18  ;;  %5761 = vmatmul.msk.f32.vlgmr.msra.gmra.mxu0 %vm318_vm6, %v6985_v18 }
 0x417   : > { %v6998_v45 = vpop.permute.xlu1 %1954  ;;  %2225 = vmatpush.msrb.mxu0 %v2016_v5  ;;  %v1698_v5 = vsel %vm252_vm1, %v6943_v8, %v6973_v2 }
 0x418   : > { %v1963_v48 = vsel %vm450_vm11, %v6939_v36, %v6998_v45 }
 0x419   : > { %2226 = vmatpush.msrb.mxu0 %v1963_v48 }
 0x41b   : > { %v7006_v34 = vpop.permute.xlu0 %1791  ;;  %2227 = vmatpush.msrb.mxu0 %v1910_v44 }
 0x41d   : > { %2228 = vmatpush.msrb.mxu0 %v1857_v16  ;;  %v1949_v16 = vpop.permute.xlu2 %1948 }
 0x41e   : > { %5760 = vmatmul.msk.f32.gmra.mxu2 %vm318_vm6, %v7011_v61  ;;  %5762 = vmatmul.msk.f32.gmra.mxu0 %vm318_vm6, %v7011_v61 }
 0x41f   : > { %v7020_v60 = vpop.permute.xlu1 %1795 }
 0x420   : > { %v1804_v25 = vsel %vm340_vm3, %v6945_v14, %v7020_v60 }
 0x421   : > { %2229 = vmatpush.msrb.mxu0 %v1804_v25 }
 0x423   : > { %v7030_v22 = vpop.permute.xlu0 %1630  ;;  %2230 = vmatpush.msrb.mxu0 %v1751_v1  ;;  %v1960_v1 = vsel %vm450_vm11, %v6859_v11, %v1949_v16  ;;  %v1909_v11 = vsel %vm428_vm2, %v6996_v21, %v6931_v40 }
 0x425   : > { %2231 = vmatpush.msrb.mxu0 %v1698_v5 }
 0x427   : > { %v7035_v48 = vpop.permute.xlu1 %1636 }
 0x428   : > { %v1645_v44 = vsel %vm230_vm14, %v6923_v37, %v7035_v48 }
 0x429   : > { %2232 = vmatpush.msrb.mxu0 %v1645_v44 }
 0x42b   : > { %v2002_v25 = vpop.permute.xlu0 %2001  ;;  %2233 = vmatpush.msrb.mxu0 %v6781_v27 }
 0x42c   : > { %v2013_v52 = vsel %vm472_vm4, %v6849_v43, %v2002_v25  ;;  %5769 = vmatmul.msk.f32.vlgmr.msrb.gmra.mxu0 %vm318_vm6, %v6985_v18  ;;  %v1961_v43 = vsel %vm450_vm11, %v1949_v16, %v1951_v32 }
 0x42d   : > { %2156 = vmatpush.msra.mxu1 %v2013_v52  ;;  %v1962_v52 = vsel %vm450_vm11, %v1951_v32, %v6939_v36 }
 0x42f   : > { %v1633_v5 = vpop.permute.xlu1 %1632  ;;  %2157 = vmatpush.msra.mxu1 %v1960_v1 }
 0x430   : > { %v1644_v32 = vsel %vm230_vm14, %v1633_v5, %v6923_v37 }
 0x434   : > { %5770 = vmatmul.msk.f32.gmra.mxu0 %vm318_vm6, %v7011_v61 }
 0x437   : > { %v2004_v44 = vpop.permute.xlu1 %2003 }
 0x438   : > { %v2014_v38 = vsel %vm472_vm4, %v2002_v25, %v2004_v44  ;;  %v2015_v27 = vsel %vm472_vm4, %v2004_v44, %v6927_v4  ;;  %v1750_v4 = vsel %vm318_vm6, %v7025_v9, %v6937_v35  ;;  %v1790_v44 = vpop.permute.xlu2 %1789 }
 0x439   : > { %2179 = vmatpush.msrb.mxu3 %v2014_v38  ;;  %2202 = vmatpush.msrb.mxu2 %v2015_v27  ;;  %v1803_v38 = vsel %vm340_vm3, %v7006_v34, %v6945_v14  ;;  %v1802_v27 = vsel %vm340_vm3, %v1790_v44, %v7006_v34 }
 0x43b   : > { %2180 = vmatpush.msrb.mxu3 %v1961_v43  ;;  %2203 = vmatpush.msrb.mxu2 %v1962_v52  ;;  %v1642_v52 = vsel %vm230_vm14, %v6839_v6, %v7030_v22  ;;  %v5903_v6 = vunpack.i.l.bf16 %v6777_v13 }
 0x43d   : > { %2204 = vmatpush.msrb.mxu2 %v1909_v11  ;;  %v1643_v11 = vsel %vm230_vm14, %v7030_v22, %v1633_v5 }
 0x43f   : > { %v1845_v1 = vpop.permute.xlu1 %1844 }
 0x440   : > { %v1856_v25 = vsel %vm362_vm10, %v1845_v1, %v6935_v15  ;;  %v1843_v15 = vpop.permute.xlu0 %1842 }
 0x441   : > { %2205 = vmatpush.msrb.mxu2 %v1856_v25  ;;  %v1854_v37 = vsel %vm362_vm10, %v6885_v50, %v1843_v15 }
 0x443   : > { %2206 = vmatpush.msrb.mxu2 %v1803_v38 }
 0x445   : > { %2207 = vmatpush.msrb.mxu2 %v1750_v4 }
 0x447   : > { %v1686_v36 = vpop.permute.xlu1 %1685 }
 0x448   : > { %v1697_v40 = vsel %vm252_vm1, %v1686_v36, %v6943_v8  ;;  %v1855_v8 = vsel %vm362_vm10, %v1843_v15, %v1845_v1 }
 0x449   : > { %2208 = vmatpush.msrb.mxu2 %v1697_v40 }
 0x44b   : > { %2209 = vmatpush.msrb.mxu2 %v1644_v32 }
 0x44d   : > { %2210 = vmatpush.msrb.mxu2 %v6867_v49  ;;  %v1801_v49 = vsel %vm340_vm3, %v6897_v17, %v1790_v44 }
 0x44e   : > { %5767 = vmatmul.msk.f32.vlgmr.msrb.gmra.mxu2 %vm318_vm6, %v6985_v18 }
 0x44f   : > { %v1896_v14 = vpop.permute.xlu1 %1895 }
 0x450   : > { %v1907_v35 = vsel %vm428_vm2, %v6873_v42, %v1896_v14  ;;  %v1908_v16 = vsel %vm428_vm2, %v1896_v14, %v6996_v21  ;;  %v1684_v42 = vpop.permute.xlu0 %1683 }
 0x451   : > { %2158 = vmatpush.msra.mxu1 %v1907_v35  ;;  %2181 = vmatpush.msrb.mxu3 %v1908_v16  ;;  %v1695_v17 = vsel %vm252_vm1, %v6899_v58, %v1684_v42  ;;  %v1696_v34 = vsel %vm252_vm1, %v1684_v42, %v1686_v36  ;;  %v2017_v58 = vsel %vm472_vm4, %v6959_v7, %v6715_v20 }
 0x452   : > { %v1858_v20 = vsel %vm362_vm10, %v6966_v12, %v6719_v59  ;;  %v1805_v7 = vsel %vm340_vm3, %v7020_v60, %v6791_v23  ;;  %v1699_v59 = vsel %vm252_vm1, %v6973_v2, %v6725_v63  ;;  %v1646_v23 = vsel %vm230_vm14, %v7035_v48, %v6807_v26 }
 0x453   : > { %2159 = vmatpush.msra.mxu1 %v1854_v37  ;;  %2182 = vmatpush.msrb.mxu3 %v1855_v8 }
 0x455   : > { %2160 = vmatpush.msra.mxu1 %v1801_v49  ;;  %2183 = vmatpush.msrb.mxu3 %v1802_v27 }
 0x456   : > { %5768 = vmatmul.msk.f32.gmra.mxu2 %vm318_vm6, %v7011_v61 }
 0x457   : > { %v1737_v21 = vpop.permute.xlu1 %1736 }
 0x458   : > { %v1748_v50 = vsel %vm318_vm6, %v6917_v54, %v1737_v21  ;;  %v1749_v43 = vsel %vm318_vm6, %v1737_v21, %v7025_v9  ;;  %v5898_v54 = vunpack.i.l.bf16 %v6771_v39 }
 0x459   : > { %2161 = vmatpush.msra.mxu1 %v1748_v50  ;;  %2184 = vmatpush.msrb.mxu3 %v1749_v43 }
 0x45b   : > { %2162 = vmatpush.msra.mxu1 %v1695_v17  ;;  %2185 = vmatpush.msrb.mxu3 %v1696_v34 }
 0x45d   : > { %2163 = vmatpush.msra.mxu1 %v1642_v52  ;;  %2186 = vmatpush.msrb.mxu3 %v1643_v11 }
 0x45f   : > { %2164 = vmatpush.msra.mxu1 %v6733_v30  ;;  %2187 = vmatpush.msrb.mxu3 %v6889_v57  ;;  %v1964_v30 = vsel %vm450_vm11, %v6998_v45, %v5898_v54  ;;  %v1911_v57 = vsel %vm428_vm2, %v6964_v33, %v5903_v6  ;;  %v1752_v33 = vsel %vm318_vm6, %v6971_v62, %v6789_v53 }
 0x460   : > { %5763 = vmatmul.msk.f32.vlgmr.msra.gmra.mxu1 %vm318_vm6, %v6985_v18  ;;  %5765 = vmatmul.msk.f32.vlgmr.msrb.gmra.mxu3 %vm318_vm6, %v6985_v18 }
 0x461   : > { %2248 = vmatpush.msrb.mxu1 %v2017_v58 }
 0x463   : > { %2249 = vmatpush.msrb.mxu1 %v1964_v30 }
 0x465   : > { %2250 = vmatpush.msrb.mxu1 %v1911_v57 }
 0x467   : > { %2251 = vmatpush.msrb.mxu1 %v1858_v20 }
 0x468   : > { %5764 = vmatmul.msk.f32.gmra.mxu1 %vm318_vm6, %v7011_v61  ;;  %5766 = vmatmul.msk.f32.gmra.mxu3 %vm318_vm6, %v7011_v61 }
 0x469   : > { %2252 = vmatpush.msrb.mxu1 %v1805_v7 }
 0x46b   : > { %2253 = vmatpush.msrb.mxu1 %v1752_v33 }
 0x46d   : > { %2254 = vmatpush.msrb.mxu1 %v1699_v59 }
 0x46f   : > { %2255 = vmatpush.msrb.mxu1 %v1646_v23 }
 0x471   : > { %2256 = vmatpush.msrb.mxu1 %v6829_v29 }
 0x472   : > { %5771 = vmatmul.msk.f32.vlgmr.msrb.gmra.mxu1 %vm318_vm6, %v6985_v18 }
 0x47a   : > { %5772 = vmatmul.msk.f32.gmra.mxu1 %vm318_vm6, %v7011_v61 }
 0x493   : > { %v2143_v53 = vpop.f32.mrf.mxu0 }
 0x494   : > { %v2267_v12 = vmax.f32 %v2143_v53, 0.0 }
 0x496   : > { %v2291_v62 = vmul.f32 %v6729_v55, %v2267_v12 }
 0x498   : > { %v7139_v63 = vadd.f32 %v6817_v46, %v2291_v62 }
 0x499   : > { %v2120_v26 = vpop.f32.mrf.mxu2 }
 0x49a   : > { %2826 = vrot.lane.b32.xlu0 %v7139_v63, %s6015_s11  ;;  %2932 = vrot.lane.b32.xlu2 %v7139_v63, %s6004_s26  ;;  %v2266_v29 = vmax.f32 %v2120_v26, 0.0 }
 0x49b   : > { %2402 = vrot.lane.b32.xlu1 %v7139_v63, %s6018_s14  ;;  %v2146_v2 = vpop.f32.mrf.mxu0 }
 0x49c   : > { %v2290_v18 = vmul.f32 %v6729_v55, %v2266_v29  ;;  %v2274_v48 = vmax.f32 %v2146_v2, 0.0 }
 0x49e   : > { %v7155_v45 = vadd.f32 %v6817_v46, %v2290_v18  ;;  %v2298_v25 = vmul.f32 %v6803_v24, %v2274_v48 }
 0x4a0   : > { %v7180_v36 = vadd.f32 %v6819_v31, %v2298_v25 }
 0x4a1   : > { %v2123_v40 = vpop.f32.mrf.mxu2 }
 0x4a2   : > { %2508 = vrot.lane.b32.xlu0 %v7139_v63, %s6019_s17  ;;  %2614 = vrot.lane.b32.xlu2 %v7139_v63, %s6010_s6  ;;  %v2273_v11 = vmax.f32 %v2123_v40, 0.0 }
 0x4a3   : > { %3038 = vrot.lane.b32.xlu1 %v7139_v63, %s6005_s27 }
 0x4a4   : > { %v2297_v6 = vmul.f32 %v6803_v24, %v2273_v11 }
 0x4a6   : > { %v7236_v33 = vadd.f32 %v6819_v31, %v2297_v6 }
 0x4a9   : > { %v2235_v61 = vpop.f32.mrf.mxu0 }
 0x4aa   : > { %v2271_v60 = vmax.f32 %v2235_v61, 0.0  ;;  %3144 = vrot.lane.b32.xlu2 %v7139_v63, %s5999_s21  ;;  %3036 = vrot.lane.b32.xlu0 %v7155_v45, %s6005_s27 }
 0x4ab   : > { %2720 = vrot.lane.b32.xlu1 %v7139_v63, %s6011_s7 }
 0x4ac   : > { %v2295_v9 = vmul.f32 %v6729_v55, %v2271_v60 }
 0x4ae   : > { %v7165_v22 = vadd.f32 %v6817_v46, %v2295_v9 }
 0x4b0   : > { %2359 = vst [vmem:[#allocation6 + $0x28] sm:$0xff] %v7165_v22 }
 0x4b1   : > { %v2238_v5 = vpop.f32.mrf.mxu0 }
 0x4b2   : > { %v2278_v1 = vmax.f32 %v2238_v5, 0.0  ;;  %2718 = vrot.lane.b32.xlu0 %v7155_v45, %s6011_s7  ;;  %2400 = vrot.lane.b32.xlu2 %v7155_v45, %s6018_s14 }
 0x4b3   : > { %2930 = vrot.lane.b32.xlu1 %v7155_v45, %s6004_s26 }
 0x4b4   : > { %v2302_v38 = vmul.f32 %v6803_v24, %v2278_v1 }
 0x4b6   : > { %v7177_v4 = vadd.f32 %v6819_v31, %v2302_v38 }
 0x4b8   : > { %2366 = vst [vmem:[#allocation6 + $0x60] sm:$0xff] %v7177_v4 }
 0x4ba   : > { %2948 = vrot.lane.b32.xlu0 %v7180_v36, %s6004_s26  ;;  %2824 = vrot.lane.b32.xlu2 %v7155_v45, %s6015_s11 }
 0x4bb   : > { %2612 = vrot.lane.b32.xlu1 %v7155_v45, %s6010_s6 }
 0x4c2   : > { %2630 = vrot.lane.b32.xlu0 %v7180_v36, %s6010_s6  ;;  %2506 = vrot.lane.b32.xlu2 %v7155_v45, %s6019_s17 }
 0x4c3   : > { %3142 = vrot.lane.b32.xlu1 %v7155_v45, %s5999_s21 }
 0x4cb   : > { %2842 = vrot.lane.b32.xlu1 %v7180_v36, %s6015_s11 }
 0x4d1   : > { %v2212_v32 = vpop.f32.mrf.mxu2 }
 0x4d2   : > { %v2270_v15 = vmax.f32 %v2212_v32, 0.0 }
 0x4d3   : > { %2524 = vrot.lane.b32.xlu1 %v7180_v36, %s6019_s17 }
 0x4d4   : > { %v2294_v14 = vmul.f32 %v6729_v55, %v2270_v15 }
 0x4d6   : > { %v7201_v35 = vadd.f32 %v6817_v46, %v2294_v14 }
 0x4d8   : > { %2358 = vst [vmem:[#allocation6 + $0x20] sm:$0xff] %v7201_v35 }
 0x4d9   : > { %v2215_v16 = vpop.f32.mrf.mxu2 }
 0x4da   : > { %v2277_v44 = vmax.f32 %v2215_v16, 0.0 }
 0x4dc   : > { %v2301_v37 = vmul.f32 %v6803_v24, %v2277_v44 }
 0x4dd   : > { %v2166_v8 = vpop.f32.mrf.mxu1 }
 0x4de   : > { %v7206_v49 = vadd.f32 %v6819_v31, %v2301_v37  ;;  %v2268_v27 = vmax.f32 %v2166_v8, 0.0 }
 0x4e0   : > { %2365 = vst [vmem:[#allocation6 + $0x58] sm:$0xff] %v7206_v49  ;;  %v2292_v42 = vmul.f32 %v6729_v55, %v2268_v27 }
 0x4e2   : > { %v7211_v21 = vadd.f32 %v6817_v46, %v2292_v42 }
 0x4e3   : > { %v2189_v50 = vpop.f32.mrf.mxu3 }
 0x4e4   : > { %v2269_v43 = vmax.f32 %v2189_v50, 0.0  ;;  %2828 = vrot.lane.b32.xlu1 %v7211_v21, %s6015_s11  ;;  %2934 = vrot.lane.b32.xlu0 %v7211_v21, %s6004_s26 }
 0x4e5   : > { %2404 = vrot.lane.b32.xlu2 %v7211_v21, %s6018_s14  ;;  %v2169_v17 = vpop.f32.mrf.mxu1 }
 0x4e6   : > { %v2293_v34 = vmul.f32 %v6729_v55, %v2269_v43  ;;  %v2275_v61 = vmax.f32 %v2169_v17, 0.0 }
 0x4e8   : > { %v7221_v52 = vadd.f32 %v6817_v46, %v2293_v34  ;;  %v2299_v48 = vmul.f32 %v6803_v24, %v2275_v61 }
 0x4ea   : > { %2357 = vst [vmem:[#allocation6 + $0x18] sm:$0xff] %v7221_v52  ;;  %v7301_v5 = vadd.f32 %v6819_v31, %v2299_v48 }
 0x4eb   : > { %v2192_v54 = vpop.f32.mrf.mxu3 }
 0x4ec   : > { %v2276_v58 = vmax.f32 %v2192_v54, 0.0  ;;  %2722 = vrot.lane.b32.xlu1 %v7211_v21, %s6011_s7  ;;  %3160 = vrot.lane.b32.xlu0 %v7180_v36, %s5999_s21 }
 0x4ed   : > { %3054 = vrot.lane.b32.xlu2 %v7180_v36, %s6005_s27 }
 0x4ee   : > { %v2300_v30 = vmul.f32 %v6803_v24, %v2276_v58 }
 0x4ef   : > { %v2258_v57 = vpop.f32.mrf.mxu1 }
 0x4f0   : > { %v7233_v20 = vadd.f32 %v6819_v31, %v2300_v30  ;;  %v2272_v7 = vmax.f32 %v2258_v57, 0.0 }
 0x4f2   : > { %2364 = vst [vmem:[#allocation6 + $0x50] sm:$0xff] %v7233_v20  ;;  %v2296_v59 = vmul.f32 %v6729_v55, %v2272_v7 }
 0x4f4   : > { %v7241_v23 = vadd.f32 %v6817_v46, %v2296_v59  ;;  %3052 = vrot.lane.b32.xlu1 %v7236_v33, %s6005_s27  ;;  %2616 = vrot.lane.b32.xlu0 %v7211_v21, %s6010_s6  ;;  %v7265_v46 = vpop.permute.xlu2 %2932 }
 0x4f5   : > { %2736 = vrot.lane.b32.xlu2 %v7180_v36, %s6011_s7 }
 0x4f6   : > { %2360 = vst [vmem:[#allocation6 + $0x30] sm:$0xff] %v7241_v23 }
 0x4f7   : > { %v2261_v53 = vpop.f32.mrf.mxu1 }
 0x4f8   : > { %v2279_v12 = vmax.f32 %v2261_v53, 0.0 }
 0x4fa   : > { %v2303_v62 = vmul.f32 %v6803_v24, %v2279_v12 }
 0x4fc   : > { %v7252_v55 = vadd.f32 %v6819_v31, %v2303_v62  ;;  %2734 = vrot.lane.b32.xlu1 %v7236_v33, %s6011_s7  ;;  %3146 = vrot.lane.b32.xlu0 %v7211_v21, %s5999_s21  ;;  %v7277_v29 = vpop.permute.xlu2 %2614 }
 0x4fd   : > { %2418 = vrot.lane.b32.xlu2 %v7180_v36, %s6018_s14 }
 0x4fe   : > { %2367 = vst [vmem:[#allocation6 + $0x68] sm:$0xff] %v7252_v55 }
 0x504   : > { %2416 = vrot.lane.b32.xlu1 %v7236_v33, %s6018_s14  ;;  %2406 = vrot.lane.b32.xlu0 %v7221_v52, %s6018_s14  ;;  %v7287_v18 = vpop.permute.xlu2 %3144 }
 0x505   : > { %3040 = vrot.lane.b32.xlu2 %v7211_v21, %s6005_s27 }
 0x50c   : > { %2936 = vrot.lane.b32.xlu1 %v7221_v52, %s6004_s26  ;;  %2840 = vrot.lane.b32.xlu0 %v7236_v33, %s6015_s11  ;;  %v7289_v60 = vpop.permute.xlu0 %2826  ;;  %v7303_v1 = vpop.permute.xlu2 %2400 }
 0x50d   : > { %v7273_v26 = vpop.permute.xlu1 %2402  ;;  %2510 = vrot.lane.b32.xlu2 %v7211_v21, %s6019_s17 }
 0x514   : > { %2618 = vrot.lane.b32.xlu1 %v7221_v52, %s6010_s6  ;;  %2522 = vrot.lane.b32.xlu0 %v7236_v33, %s6019_s17  ;;  %v7311_v25 = vpop.permute.xlu0 %2508  ;;  %v7317_v24 = vpop.permute.xlu2 %2824 }
 0x515   : > { %v7283_v2 = vpop.permute.xlu1 %3038  ;;  %2946 = vrot.lane.b32.xlu2 %v7236_v33, %s6004_s26 }
 0x51c   : > { %3148 = vrot.lane.b32.xlu1 %v7221_v52, %s5999_s21  ;;  %3042 = vrot.lane.b32.xlu0 %v7221_v52, %s6005_s27  ;;  %v3037_v31 = vpop.permute.xlu0 %3036  ;;  %v7329_v32 = vpop.permute.xlu2 %2506 }
 0x51d   : > { %v7295_v9 = vpop.permute.xlu1 %2720  ;;  %2628 = vrot.lane.b32.xlu2 %v7236_v33, %s6010_s6  ;;  %v3068_v7 = vsel %vm450_vm11, %v3037_v31, %v7283_v2 }
 0x524   : > { %2512 = vrot.lane.b32.xlu0 %v7221_v52, %s6019_s17  ;;  %2950 = vrot.lane.b32.xlu1 %v7301_v5, %s6004_s26  ;;  %v7331_v15 = vpop.permute.xlu0 %2718 }
 0x525   : > { %2830 = vrot.lane.b32.xlu2 %v7221_v52, %s6015_s11  ;;  %v2931_v38 = vpop.permute.xlu1 %2930 }
 0x526   : > { %v2962_v62 = vsel %vm428_vm2, %v2931_v38, %v7265_v46 }
 0x52c   : > { %3056 = vrot.lane.b32.xlu0 %v7301_v5, %s6005_s27  ;;  %2622 = vrot.lane.b32.xlu1 %v7165_v22, %s6010_s6  ;;  %v7343_v44 = vpop.permute.xlu0 %2948 }
 0x52d   : > { %3158 = vrot.lane.b32.xlu2 %v7236_v33, %s5999_s21  ;;  %v7321_v40 = vpop.permute.xlu1 %2612 }
 0x534   : > { %2738 = vrot.lane.b32.xlu0 %v7301_v5, %s6011_s7  ;;  %3152 = vrot.lane.b32.xlu1 %v7165_v22, %s5999_s21  ;;  %v7361_v27 = vpop.permute.xlu0 %2630 }
 0x535   : > { %2724 = vrot.lane.b32.xlu2 %v7221_v52, %s6011_s7  ;;  %v7333_v14 = vpop.permute.xlu1 %3142 }
 0x53c   : > { %2632 = vrot.lane.b32.xlu0 %v7301_v5, %s6010_s6  ;;  %3058 = vrot.lane.b32.xlu1 %v7233_v20, %s6005_s27 }
 0x53d   : > { %2844 = vrot.lane.b32.xlu2 %v7301_v5, %s6015_s11  ;;  %v7345_v37 = vpop.permute.xlu1 %2842 }
 0x53f   : > { %v7341_v16 = vpop.permute.xlu2 %2404 }
 0x544   : > { %2526 = vrot.lane.b32.xlu0 %v7301_v5, %s6019_s17  ;;  %2740 = vrot.lane.b32.xlu1 %v7233_v20, %s6011_s7 }
 0x545   : > { %2420 = vrot.lane.b32.xlu2 %v7301_v5, %s6018_s14  ;;  %v7363_v42 = vpop.permute.xlu1 %2524 }
 0x547   : > { %v7353_v8 = vpop.permute.xlu2 %3054 }
 0x54c   : > { %3162 = vrot.lane.b32.xlu0 %v7301_v5, %s5999_s21  ;;  %2634 = vrot.lane.b32.xlu1 %v7233_v20, %s6010_s6 }
 0x54d   : > { %3046 = vrot.lane.b32.xlu2 %v7165_v22, %s6005_s27 }
 0x54f   : > { %v7365_v50 = vpop.permute.xlu2 %2736 }
 0x554   : > { %2528 = vrot.lane.b32.xlu1 %v7233_v20, %s6019_s17  ;;  %2940 = vrot.lane.b32.xlu0 %v7165_v22, %s6004_s26 }
 0x555   : > { %2834 = vrot.lane.b32.xlu2 %v7165_v22, %s6015_s11 }
 0x556   : > { %v7373_v43 = vpop.permute.xlu1 %2828  ;;  %v7375_v17 = vpop.permute.xlu0 %2934 }
 0x557   : > { %v7377_v34 = vpop.permute.xlu2 %2418 }
 0x55c   : > { %3164 = vrot.lane.b32.xlu1 %v7233_v20, %s5999_s21  ;;  %2516 = vrot.lane.b32.xlu0 %v7165_v22, %s6019_s17 }
 0x55d   : > { %2728 = vrot.lane.b32.xlu2 %v7165_v22, %s6011_s7 }
 0x55e   : > { %v7385_v52 = vpop.permute.xlu1 %2722  ;;  %v7387_v11 = vpop.permute.xlu0 %3160 }
 0x55f   : > { %v7389_v54 = vpop.permute.xlu2 %3040 }
 0x564   : > { %2832 = vrot.lane.b32.xlu1 %v7201_v35, %s6015_s11  ;;  %2846 = vrot.lane.b32.xlu0 %v7233_v20, %s6015_s11 }
 0x565   : > { %2410 = vrot.lane.b32.xlu2 %v7165_v22, %s6018_s14 }
 0x566   : > { %v3053_v58 = vpop.permute.xlu1 %3052  ;;  %v7397_v6 = vpop.permute.xlu0 %2616 }
 0x567   : > { %v3075_v30 = vsel %vm450_vm11, %v3053_v58, %v7353_v8  ;;  %v7401_v57 = vpop.permute.xlu2 %2510 }
 0x568   : > { %3352 = vmatpush.msra.mxu3 %v3075_v30 }
 0x56a   : > { %3353 = vmatpush.msra.mxu3 %v3068_v7  ;;  %v2856_v7 = vsel %vm362_vm10, %v7317_v24, %v7289_v60 }
 0x56c   : > { %2620 = vrot.lane.b32.xlu1 %v7201_v35, %s6010_s6  ;;  %2422 = vrot.lane.b32.xlu0 %v7233_v20, %s6018_s14 }
 0x56d   : > { %2952 = vrot.lane.b32.xlu2 %v7233_v20, %s6004_s26 }
 0x56e   : > { %v2735_v22 = vpop.permute.xlu1 %2734  ;;  %v7411_v59 = vpop.permute.xlu0 %3146 }
 0x56f   : > { %v2947_v53 = vpop.permute.xlu2 %2946 }
 0x570   : > { %v2969_v12 = vsel %vm428_vm2, %v2947_v53, %v7343_v44  ;;  %v2757_v53 = vsel %vm340_vm3, %v2735_v22, %v7365_v50 }
 0x571   : > { %3354 = vmatpush.msra.mxu3 %v2969_v12  ;;  %v2750_v12 = vsel %vm340_vm3, %v7331_v15, %v7295_v9  ;;  %v3174_v15 = vsel %vm472_vm4, %v7333_v14, %v7287_v18 }
 0x573   : > { %3355 = vmatpush.msra.mxu3 %v2962_v62 }
 0x574   : > { %2514 = vrot.lane.b32.xlu1 %v7201_v35, %s6019_s17  ;;  %2408 = vrot.lane.b32.xlu0 %v7201_v35, %s6018_s14 }
 0x575   : > { %3044 = vrot.lane.b32.xlu2 %v7201_v35, %s6005_s27 }
 0x576   : > { %v2417_v20 = vpop.permute.xlu1 %2416  ;;  %v7423_v61 = vpop.permute.xlu0 %2406 }
 0x577   : > { %9115 = vst [vmem:[#allocation21_spill] sm:$0xff] %v7423_v61  ;;  %v2629_v48 = vpop.permute.xlu2 %2628 }
 0x578   : > { %v2651_v22 = vsel %vm318_vm6, %v2629_v48, %v7361_v27 }
 0x57c   : > { %3048 = vrot.lane.b32.xlu0 %v7241_v23, %s6005_s27  ;;  %2956 = vrot.lane.b32.xlu1 %v7177_v4, %s6004_s26 }
 0x57d   : > { %2938 = vrot.lane.b32.xlu2 %v7201_v35, %s6004_s26 }
 0x57e   : > { %v7431_v38 = vpop.permute.xlu1 %2936  ;;  %v2841_v31 = vpop.permute.xlu0 %2840 }
 0x57f   : > { %v2863_v58 = vsel %vm362_vm10, %v2841_v31, %v7345_v37  ;;  %v7435_v30 = vpop.permute.xlu2 %2830 }
 0x580   : > { %3356 = vmatpush.msra.mxu3 %v2863_v58 }
 0x582   : > { %3357 = vmatpush.msra.mxu3 %v2856_v7  ;;  %v2644_v7 = vsel %vm318_vm6, %v7321_v40, %v7277_v29  ;;  %v2538_v40 = vsel %vm252_vm1, %v7329_v32, %v7311_v25  ;;  %v7495_v32 = vld [vmem:[%s9068_s1 + $0x78] sm:$0xff] }
 0x584   : > { %2942 = vrot.lane.b32.xlu0 %v7241_v23, %s6004_s26  ;;  %2532 = vrot.lane.b32.xlu1 %v7177_v4, %s6019_s17 }
 0x585   : > { %2726 = vrot.lane.b32.xlu2 %v7201_v35, %s6011_s7  ;;  %3358 = vmatpush.msra.mxu3 %v2757_v53  ;;  %v7466_v53 = vld [vmem:[%s9068_s1 + $0x28] sm:$0xff] }
 0x586   : > { %v7451_v62 = vpop.permute.xlu1 %2618  ;;  %v2523_v24 = vpop.permute.xlu0 %2522 }
 0x587   : > { %v3159_v31 = vpop.permute.xlu2 %3158  ;;  %3359 = vmatpush.msra.mxu3 %v2750_v12  ;;  %v2545_v48 = vsel %vm252_vm1, %v2523_v24, %v7363_v42 }
 0x588   : > { %v3181_v58 = vsel %vm472_vm4, %v3159_v31, %v7387_v11  ;;  %v2439_v31 = vsel %vm230_vm14, %v2417_v20, %v7377_v34 }
 0x589   : > { %3360 = vmatpush.msra.mxu3 %v2651_v22  ;;  %3389 = vmatpush.msra.mxu2 %v3181_v58 }
 0x58b   : > { %3361 = vmatpush.msra.mxu3 %v2644_v7  ;;  %3390 = vmatpush.msra.mxu2 %v3174_v15 }
 0x58c   : > { %2638 = vrot.lane.b32.xlu0 %v7177_v4, %s6010_s6  ;;  %2730 = vrot.lane.b32.xlu1 %v7241_v23, %s6011_s7 }
 0x58d   : > { %3150 = vrot.lane.b32.xlu2 %v7201_v35, %s5999_s21  ;;  %3362 = vmatpush.msra.mxu3 %v2545_v48  ;;  %v2432_v35 = vsel %vm230_vm14, %v7303_v1, %v7273_v26  ;;  %v7507_v1 = vld [vmem:[%s9068_s1 + $0x20] sm:$0xff] }
 0x58e   : > { %v7479_v14 = vpop.permute.xlu1 %3148  ;;  %v7481_v12 = vpop.permute.xlu0 %3042  ;;  %5773 = vmatmul.msk.f32.vlgmr.msra.gmra.mxu2 %vm428_vm2, %v7466_v53  ;;  %9116 = vst [vmem:[#allocation22_spill] sm:$0xff] %v7507_v1 }
 0x58f   : > { %v7485_v24 = vpop.permute.xlu2 %2724  ;;  %3363 = vmatpush.msra.mxu3 %v2538_v40  ;;  %v3069_v40 = vsel %vm450_vm11, %v7283_v2, %v7389_v54 }
 0x591   : > { %3364 = vmatpush.msra.mxu3 %v2439_v31 }
 0x593   : > { %3365 = vmatpush.msra.mxu3 %v2432_v35 }
 0x594   : > { %3168 = vrot.lane.b32.xlu0 %v7177_v4, %s5999_s21  ;;  %2426 = vrot.lane.b32.xlu1 %v7177_v4, %s6018_s14 }
 0x595   : > { %3062 = vrot.lane.b32.xlu2 %v7177_v4, %s6005_s27  ;;  %3366 = vmatpush.msra.mxu3 %v7236_v33  ;;  %v7528_v33 = vld [vmem:[%s9068_s1 + $0x70] sm:$0xff] }
 0x596   : > { %v7509_v20 = vpop.permute.xlu0 %2512  ;;  %v7511_v22 = vpop.permute.xlu1 %2950  ;;  %5774 = vmatmul.msk.f32.gmra.mxu2 %vm428_vm2, %v7495_v32  ;;  %9117 = vst [vmem:[#allocation23_spill] sm:$0xff] %v7528_v33 }
 0x597   : > { %v7515_v58 = vpop.permute.xlu2 %2844  ;;  %3367 = vmatpush.msra.mxu3 %v7155_v45  ;;  %v2970_v31 = vsel %vm428_vm2, %v7343_v44, %v7511_v22 }
 0x598   : > { %3368 = vmatmul.f32.vlgmr.msra.gmra.mxu3 %v7507_v1  ;;  %v2864_v44 = vsel %vm362_vm10, %v7345_v37, %v7515_v58  ;;  %v2751_v37 = vsel %vm340_vm3, %v7295_v9, %v7385_v52  ;;  %v2645_v9 = vsel %vm318_vm6, %v7277_v29, %v7397_v6 }
 0x59c   : > { %2624 = vrot.lane.b32.xlu0 %v7241_v23, %s6010_s6  ;;  %3154 = vrot.lane.b32.xlu1 %v7241_v23, %s5999_s21 }
 0x59d   : > { %2850 = vrot.lane.b32.xlu2 %v7177_v4, %s6015_s11 }
 0x59e   : > { %v3057_v7 = vpop.permute.xlu0 %3056  ;;  %v7530_v15 = vpop.permute.xlu1 %2622 }
 0x59f   : > { %v3076_v45 = vsel %vm450_vm11, %v7353_v8, %v3057_v7  ;;  %v7534_v48 = vpop.permute.xlu2 %2420  ;;  %v2963_v8 = vsel %vm428_vm2, %v7265_v46, %v7375_v17 }
 0x5a0   : > { %3371 = vmatmul.f32.gmra.mxu3 %v7528_v33  ;;  %3398 = vmatpush.msra.mxu0 %v3076_v45 }
 0x5a2   : > { %3399 = vmatpush.msra.mxu0 %v3069_v40 }
 0x5a4   : > { %2518 = vrot.lane.b32.xlu0 %v7241_v23, %s6019_s17  ;;  %2848 = vrot.lane.b32.xlu1 %v7206_v49, %s6015_s11 }
 0x5a5   : > { %2744 = vrot.lane.b32.xlu2 %v7177_v4, %s6011_s7  ;;  %3400 = vmatpush.msra.mxu0 %v2970_v31  ;;  %v2857_v4 = vsel %vm362_vm10, %v7289_v60, %v7373_v43 }
 0x5a6   : > { %v7552_v2 = vpop.permute.xlu0 %2738  ;;  %v7554_v35 = vpop.permute.xlu1 %3152 }
 0x5a7   : > { %v7556_v45 = vpop.permute.xlu2 %3046  ;;  %3401 = vmatpush.msra.mxu0 %v2963_v8  ;;  %v2758_v46 = vsel %vm340_vm3, %v7365_v50, %v7552_v2 }
 0x5a9   : > { %3402 = vmatpush.msra.mxu0 %v2864_v44  ;;  %v2539_v44 = vsel %vm252_vm1, %v7311_v25, %v7401_v57 }
 0x5ab   : > { %3403 = vmatpush.msra.mxu0 %v2857_v4  ;;  %v2440_v4 = vsel %vm230_vm14, %v7377_v34, %v7534_v48 }
 0x5ac   : > { %2412 = vrot.lane.b32.xlu0 %v7241_v23, %s6018_s14  ;;  %2636 = vrot.lane.b32.xlu1 %v7206_v49, %s6010_s6 }
 0x5ad   : > { %2836 = vrot.lane.b32.xlu2 %v7241_v23, %s6015_s11  ;;  %3404 = vmatpush.msra.mxu0 %v2758_v46  ;;  %v3070_v23 = vsel %vm450_vm11, %v7389_v54, %v7481_v12 }
 0x5ae   : > { %v7576_v60 = vpop.permute.xlu0 %2632  ;;  %v7578_v40 = vpop.permute.xlu1 %3058 }
 0x5af   : > { %v2652_v50 = vsel %vm318_vm6, %v7361_v27, %v7576_v60  ;;  %v3077_v31 = vsel %vm450_vm11, %v3057_v7, %v7578_v40  ;;  %v7585_v8 = vpop.permute.xlu2 %2834  ;;  %3405 = vmatpush.msra.mxu0 %v2751_v37 }
 0x5b0   : > { %3444 = vmatpush.msrb.mxu2 %v3077_v31  ;;  %v3176_v31 = vsel %vm472_vm4, %v7411_v59, %v7479_v14 }
 0x5b1   : > { %3406 = vmatpush.msra.mxu0 %v2652_v50  ;;  %v3175_v50 = vsel %vm472_vm4, %v7287_v18, %v7411_v59  ;;  %v2964_v18 = vsel %vm428_vm2, %v7375_v17, %v7431_v38 }
 0x5b2   : > { %3445 = vmatpush.msrb.mxu2 %v3070_v23 }
 0x5b3   : > { %3407 = vmatpush.msra.mxu0 %v2645_v9 }
 0x5b4   : > { %3060 = vrot.lane.b32.xlu0 %v7206_v49, %s6005_s27  ;;  %2530 = vrot.lane.b32.xlu1 %v7206_v49, %s6019_s17 }
 0x5b5   : > { %2954 = vrot.lane.b32.xlu2 %v7206_v49, %s6004_s26 }
 0x5b6   : > { %v7599_v27 = vpop.permute.xlu0 %2526  ;;  %v7601_v7 = vpop.permute.xlu1 %2740 }
 0x5b7   : > { %v2546_v54 = vsel %vm252_vm1, %v7363_v42, %v7599_v27  ;;  %v7606_v29 = vpop.permute.xlu2 %2728  ;;  %v2433_v42 = vsel %vm230_vm14, %v7273_v26, %v7341_v16 }
 0x5b8   : > { %3408 = vmatpush.msra.mxu0 %v2546_v54 }
 0x5ba   : > { %3409 = vmatpush.msra.mxu0 %v2539_v44  ;;  %v2858_v44 = vsel %vm362_vm10, %v7373_v43, %v7435_v30 }
 0x5bc   : > { %2742 = vrot.lane.b32.xlu0 %v7206_v49, %s6011_s7  ;;  %3166 = vrot.lane.b32.xlu1 %v7206_v49, %s5999_s21 }
 0x5bd   : > { %2424 = vrot.lane.b32.xlu2 %v7206_v49, %s6018_s14  ;;  %3410 = vmatpush.msra.mxu0 %v2440_v4  ;;  %v2752_v4 = vsel %vm340_vm3, %v7385_v52, %v7485_v24 }
 0x5be   : > { %v3163_v25 = vpop.permute.xlu0 %3162  ;;  %v7623_v46 = vpop.permute.xlu1 %2634 }
 0x5bf   : > { %v3182_v34 = vsel %vm472_vm4, %v7387_v11, %v3163_v25  ;;  %v7627_v37 = vpop.permute.xlu2 %2410  ;;  %3411 = vmatpush.msra.mxu0 %v2433_v42  ;;  %v2653_v43 = vsel %vm318_vm6, %v7576_v60, %v7623_v46 }
 0x5c0   : > { %9118 = vst [vmem:[#allocation24_spill] sm:$0xff] %v7627_v37  ;;  %3435 = vmatpush.msra.mxu1 %v3182_v34  ;;  %v2540_v34 = vsel %vm252_vm1, %v7401_v57, %v7509_v20 }
 0x5c1   : > { %3412 = vmatpush.msra.mxu0 %v7180_v36 }
 0x5c2   : > { %3436 = vmatpush.msra.mxu1 %v3175_v50 }
 0x5c3   : > { %3413 = vmatpush.msra.mxu0 %v7139_v63  ;;  %5775 = vmatmul.msk.f32.vlgmr.msra.gmra.mxu1 %vm428_vm2, %v7466_v53 }
 0x5c4   : > { %3064 = vrot.lane.b32.xlu0 %v7252_v55, %s6005_s27  ;;  %2852 = vrot.lane.b32.xlu1 %v7252_v55, %s6015_s11  ;;  %s5838_s27 = sshll.u32 %s9153_s16, 4 }
 0x5c5   : > { %2746 = vrot.lane.b32.xlu2 %v7252_v55, %s6011_s7  ;;  %3414 = vmatmul.f32.vlgmr.msra.gmra.mxu0 %v7507_v1  ;;  %s194_s11 = scalar_lea.vmem %s9071_s4, %s5838_s27 }
 0x5c6   : > { %v7643_v49 = vpop.permute.xlu1 %2528  ;;  %v7645_v36 = vpop.permute.xlu0 %2940 }
 0x5c7   : > { %v7647_v26 = vpop.permute.xlu2 %2952  ;;  %v2547_v52 = vsel %vm252_vm1, %v7599_v27, %v7643_v49 }
 0x5c8   : > { %v2971_v63 = vsel %vm428_vm2, %v7511_v22, %v7647_v26 }
 0x5c9   : > { %3446 = vmatpush.msrb.mxu2 %v2971_v63  ;;  %v2434_v63 = vsel %vm230_vm14, %v7341_v16, %v7423_v61 }
 0x5cb   : > { %3447 = vmatpush.msrb.mxu2 %v2964_v18  ;;  %5776 = vmatmul.msk.f32.gmra.mxu1 %vm428_vm2, %v7495_v32 }
 0x5cc   : > { %2958 = vrot.lane.b32.xlu0 %v7252_v55, %s6004_s26  ;;  %2534 = vrot.lane.b32.xlu1 %v7252_v55, %s6019_s17 }
 0x5cd   : > { %2640 = vrot.lane.b32.xlu2 %v7252_v55, %s6010_s6  ;;  %3417 = vmatmul.f32.gmra.mxu0 %v7528_v33 }
 0x5ce   : > { %v7664_v11 = vpop.permute.xlu1 %3164  ;;  %v7666_v22 = vpop.permute.xlu0 %2516 }
 0x5cf   : > { %v3183_v17 = vsel %vm472_vm4, %v3163_v25, %v7664_v11  ;;  %v7683_v54 = vpop.permute.xlu2 %3044 }
 0x5d0   : > { %3481 = vmatpush.msrb.mxu3 %v3183_v17 }
 0x5d2   : > { %3482 = vmatpush.msrb.mxu3 %v3176_v31 }
 0x5d3   : > { %5777 = vmatmul.msk.f32.vlgmr.msrb.gmra.mxu3 %vm428_vm2, %v7466_v53 }
 0x5d4   : > { %3170 = vrot.lane.b32.xlu0 %v7252_v55, %s5999_s21  ;;  %2428 = vrot.lane.b32.xlu1 %v7252_v55, %s6018_s14  ;;  %v2759_v55 = vsel %vm340_vm3, %v7552_v2, %v7601_v7  ;;  %v2646_v2 = vsel %vm318_vm6, %v7397_v6, %v7451_v62 }
 0x5d6   : > { %v7679_v23 = vpop.permute.xlu1 %2832  ;;  %v7681_v9 = vpop.permute.xlu0 %2846 }
 0x5d7   : > { %v2865_v59 = vsel %vm362_vm10, %v7515_v58, %v7681_v9  ;;  %v7709_v25 = vpop.permute.xlu2 %2938 }
 0x5d8   : > { %3448 = vmatpush.msrb.mxu2 %v2865_v59 }
 0x5da   : > { %3449 = vmatpush.msrb.mxu2 %v2858_v44 }
 0x5db   : > { %5778 = vmatmul.msk.f32.gmra.mxu3 %vm428_vm2, %v7495_v32 }
 0x5dc   : > { %3450 = vmatpush.msrb.mxu2 %v2759_v55 }
 0x5de   : > { %v7699_v42 = vpop.permute.xlu1 %2620  ;;  %v7701_v58 = vpop.permute.xlu0 %2422  ;;  %3451 = vmatpush.msrb.mxu2 %v2752_v4 }
 0x5df   : > { %v2441_v6 = vsel %vm230_vm14, %v7534_v48, %v7701_v58  ;;  %v7727_v27 = vpop.permute.xlu2 %2726 }
 0x5e0   : > { %3452 = vmatpush.msrb.mxu2 %v2653_v43 }
 0x5e2   : > { %3453 = vmatpush.msrb.mxu2 %v2646_v2 }
 0x5e4   : > { %3454 = vmatpush.msrb.mxu2 %v2547_v52 }
 0x5e6   : > { %v7717_v50 = vpop.permute.xlu1 %2514  ;;  %v7719_v60 = vpop.permute.xlu0 %2408  ;;  %3455 = vmatpush.msrb.mxu2 %v2540_v34 }
 0x5e7   : > { %v7736_v17 = vpop.permute.xlu2 %3150 }
 0x5e8   : > { %3456 = vmatpush.msrb.mxu2 %v2441_v6 }
 0x5ea   : > { %3457 = vmatpush.msrb.mxu2 %v2434_v63 }
 0x5ec   : > { %3458 = vmatpush.msrb.mxu2 %v7301_v5 }
 0x5ee   : > { %v7730_v57 = vpop.permute.xlu0 %3048  ;;  %v7732_v18 = vpop.permute.xlu1 %2956  ;;  %3459 = vmatpush.msrb.mxu2 %v7211_v21 }
 0x5ef   : > { %3460 = vmatmul.f32.vlgmr.msrb.gmra.mxu2 %v7507_v1  ;;  %v7747_v5 = vpop.permute.xlu2 %3062  ;;  %v7768_v1 = vld [vmem:[%s9070_s3] sm:$0xff] }
 0x5f6   : > { %v7738_v48 = vpop.permute.xlu0 %2942  ;;  %v7740_v31 = vpop.permute.xlu1 %2532 }
 0x5f7   : > { %9119 = vst [vmem:[#allocation25_spill] sm:$0xff] %v7738_v48  ;;  %3463 = vmatmul.f32.gmra.mxu2 %v7528_v33  ;;  %v7753_v21 = vpop.permute.xlu2 %2850 }
 0x5fe   : > { %v7743_v16 = vpop.permute.xlu0 %2638  ;;  %v7745_v59 = vpop.permute.xlu1 %2730 }
 0x5ff   : > { %9120 = vst [vmem:[#allocation26_spill] sm:$0xff] %v7745_v59  ;;  %v7759_v2 = vpop.permute.xlu2 %2744 }
 0x606   : > { %v7749_v44 = vpop.permute.xlu0 %3168  ;;  %v7751_v55 = vpop.permute.xlu1 %2426 }
 0x607   : > { %v7763_v59 = vpop.permute.xlu2 %2836 }
 0x608   : > { %9124 = vst [vmem:[#allocation30_spill] sm:$0xff] %v7763_v59 }
 0x60e   : > { %v7755_v4 = vpop.permute.xlu0 %2624  ;;  %v7757_v43 = vpop.permute.xlu1 %3154 }
 0x60f   : > { %9121 = vst [vmem:[#allocation27_spill] sm:$0xff] %v7755_v4 }
 0x610   : > { %9122 = vst [vmem:[#allocation28_spill] sm:$0xff] %v7757_v43 }
 0x611   : > { %v3392_v6 = vpop.f32.mrf.mxu2 }
 0x616   : > { %v7761_v52 = vpop.permute.xlu0 %2518  ;;  %v2849_v34 = vpop.permute.xlu1 %2848 }
 0x617   : > { %9123 = vst [vmem:[#allocation29_spill] sm:$0xff] %v7761_v52  ;;  %v3738_v52 = vperm.slane %v7768_v1, 0 }
 0x619   : > { %v3395_v19 = vpop.f32.mrf.mxu2 }
 0x61b   : > { %v3369_v63 = vpop.f32.mrf.mxu3 }
 0x61c   : > { %v3393_v33 = vadd.f32 %v3392_v6, %v3369_v63 }
 0x61e   : > { %v7770_v56 = vpop.permute.xlu0 %2412  ;;  %v7772_v4 = vpop.permute.xlu1 %2636  ;;  %v3676_v43 = vmax.f32 %v3393_v33, 0.0 }
 0x61f   : > { %9125 = vst [vmem:[#allocation31_spill] sm:$0xff] %v7770_v56  ;;  %v2955_v56 = vpop.permute.xlu2 %2954 }
 0x620   : > { %v3700_v28 = vmul.f32 %v6847_v41, %v3676_v43 }
 0x622   : > { %v3722_v37 = vadd.f32 %v6861_v47, %v3700_v28 }
 0x623   : > { %v3372_v6 = vpop.f32.mrf.mxu3 }
 0x624   : > { %v7777_v63 = vmul.f32 %v3738_v52, %v3722_v37  ;;  %v3396_v59 = vadd.f32 %v3395_v19, %v3372_v6  ;;  %v3071_v19 = vsel %vm450_vm11, %v7481_v12, %v7683_v54  ;;  %v3072_v37 = vsel %vm450_vm11, %v7683_v54, %v7556_v45 }
 0x625   : > { %v2965_v12 = vsel %vm428_vm2, %v7431_v38, %v7709_v25  ;;  %v2966_v54 = vsel %vm428_vm2, %v7709_v25, %v7645_v36  ;;  %v2867_v38 = vsel %vm362_vm10, %v2849_v34, %v7753_v21  ;;  %v2859_v25 = vsel %vm362_vm10, %v7435_v30, %v7679_v23 }
 0x626   : > { %v3061_v10 = vpop.permute.xlu0 %3060  ;;  %v7779_v48 = vpop.permute.xlu1 %2530  ;;  %v3683_v61 = vmax.f32 %v3396_v59, 0.0  ;;  %4481 = vrot.lane.b32.xlu1 %v7777_v63, %s6010_s6 }
 0x627   : > { %v3078_v33 = vsel %vm450_vm11, %v7578_v40, %v3061_v10  ;;  %v3079_v43 = vsel %vm450_vm11, %v3061_v10, %v7747_v5  ;;  %v2972_v10 = vsel %vm428_vm2, %v7647_v26, %v2955_v56 }
 0x628   : > { %v3707_v28 = vmul.f32 %v6865_v3, %v3683_v61  ;;  %3490 = vmatpush.msrb.mxu1 %v3078_v33  ;;  %3536 = vmatpush.msrb.mxu0 %v3079_v43  ;;  %v2973_v61 = vsel %vm428_vm2, %v2955_v56, %v7732_v18  ;;  %v2866_v56 = vsel %vm362_vm10, %v7681_v9, %v2849_v34 }
 0x629   : > { %v3177_v9 = vsel %vm472_vm4, %v7479_v14, %v7736_v17  ;;  %v3178_v34 = vsel %vm472_vm4, %v7736_v17, %v7554_v35  ;;  %v5899_v14 = vunpack.i.h.bf16 %v6771_v39  ;;  %v2654_v39 = vsel %vm318_vm6, %v7623_v46, %v7772_v4 }
 0x62a   : > { %v3729_v59 = vadd.f32 %v6779_v0, %v3707_v28  ;;  %3491 = vmatpush.msrb.mxu1 %v3071_v19  ;;  %3537 = vmatpush.msrb.mxu0 %v3072_v37  ;;  %v2425_v28 = vpop.permute.xlu2 %2424  ;;  %v2647_v37 = vsel %vm318_vm6, %v7451_v62, %v7699_v42  ;;  %v3073_v46 = vsel %vm450_vm11, %v7556_v45, %v7730_v57 }
 0x62b   : > { %v2548_v62 = vsel %vm252_vm1, %v7643_v49, %v7779_v48  ;;  %v2549_v45 = vsel %vm252_vm1, %v7779_v48, %v7740_v31  ;;  %v2542_v49 = vsel %vm252_vm1, %v7717_v50, %v7666_v22 }
 0x62c   : > { %v7799_v40 = vmul.f32 %v3738_v52, %v3729_v59  ;;  %3492 = vmatpush.msrb.mxu1 %v2972_v10  ;;  %3538 = vmatpush.msrb.mxu0 %v2973_v61  ;;  %v2443_v10 = vsel %vm230_vm14, %v2425_v28, %v7751_v55 }
 0x62e   : > { %v2743_v6 = vpop.permute.xlu0 %2742  ;;  %v3167_v33 = vpop.permute.xlu1 %3166  ;;  %4268 = vrot.lane.b32.xlu1 %v7777_v63, %s6018_s14  ;;  %3493 = vmatpush.msrb.mxu1 %v2965_v12 }
 0x62f   : > { %v3184_v26 = vsel %vm472_vm4, %v7664_v11, %v3167_v33  ;;  %v3185_v52 = vsel %vm472_vm4, %v3167_v33, %v7749_v44  ;;  %3539 = vmatpush.msrb.mxu0 %v2966_v54  ;;  %v2860_v11 = vsel %vm362_vm10, %v7679_v23, %v7585_v8  ;;  %v2760_v43 = vsel %vm340_vm3, %v7601_v7, %v2743_v6  ;;  %v9127_v54 = vld [vmem:[#allocation25_spill] sm:$0xff] }
 0x630   : > { %3494 = vmatpush.msrb.mxu1 %v2866_v56  ;;  %3527 = vmatpush.msra.mxu3 %v3184_v26  ;;  %v2761_v30 = vsel %vm340_vm3, %v2743_v6, %v7759_v2  ;;  %v2753_v23 = vsel %vm340_vm3, %v7485_v24, %v7727_v27  ;;  %v2754_v7 = vsel %vm340_vm3, %v7727_v27, %v7606_v29  ;;  %v9129_v56 = vld [vmem:[#allocation24_spill] sm:$0xff] }
 0x631   : > { %3540 = vmatpush.msrb.mxu0 %v2867_v38  ;;  %3573 = vmatpush.msra.mxu2 %v3185_v52  ;;  %v2655_v27 = vsel %vm318_vm6, %v7772_v4, %v7743_v16  ;;  %v3074_v4 = vsel %vm450_vm11, %v7730_v57, %v6837_v51  ;;  %v2541_v51 = vsel %vm252_vm1, %v7509_v20, %v7717_v50  ;;  %v9126_v50 = vld [vmem:[#allocation21_spill] sm:$0xff]  ;;  %v9130_v52 = vld [vmem:[#allocation7_spill] sm:$0xff] }
 0x632   : > { %3495 = vmatpush.msrb.mxu1 %v2859_v25  ;;  %3528 = vmatpush.msra.mxu3 %v3177_v9  ;;  %v2435_v12 = vsel %vm230_vm14, %v9126_v50, %v7719_v60  ;;  %v2747_v6 = vpop.permute.xlu2 %2746  ;;  %v2436_v26 = vsel %vm230_vm14, %v7719_v60, %v9129_v56  ;;  %v2968_v38 = vsel %vm428_vm2, %v9127_v54, %v9130_v52  ;;  %v9137_v50 = vld [vmem:[#allocation9_spill] sm:$0xff]  ;;  %v9138_v52 = vld [vmem:[#allocation15_spill] sm:$0xff] }
 0x633   : > { %3541 = vmatpush.msrb.mxu0 %v2860_v11  ;;  %3574 = vmatpush.msra.mxu2 %v3178_v34  ;;  %v3230_v11 = vld [vmem:[#allocation6 + $0x50] sm:$0xff] }
 0x634   : > { %3496 = vmatpush.msrb.mxu1 %v2760_v43  ;;  %5779 = vmatmul.msk.f32.vlgmr.msra.gmra.mxu3 %vm428_vm2, %v7466_v53  ;;  %v3231_v43 = vld [vmem:[#allocation6 + $0x58] sm:$0xff] }
 0x635   : > { %3542 = vmatpush.msrb.mxu0 %v2761_v30  ;;  %5781 = vmatmul.msk.f32.vlgmr.msra.gmra.mxu2 %vm428_vm2, %v7466_v53 }
 0x636   : > { %v3065_v17 = vpop.permute.xlu0 %3064  ;;  %4135 = vrot.lane.b32.xlu1 %v7777_v63, %s6034_s24  ;;  %3497 = vmatpush.msrb.mxu1 %v2753_v23  ;;  %v2853_v48 = vpop.permute.xlu1 %2852  ;;  %v9131_v23 = vld [vmem:[#allocation11_spill] sm:$0xff] }
 0x637   : > { %v3080_v24 = vsel %vm450_vm11, %v7747_v5, %v3065_v17  ;;  %v3081_v19 = vsel %vm450_vm11, %v3065_v17, %v5899_v14  ;;  %3543 = vmatpush.msrb.mxu0 %v2754_v7  ;;  %v2648_v5 = vsel %vm318_vm6, %v7699_v42, %v7530_v15  ;;  %v5904_v42 = vunpack.i.h.bf16 %v6777_v13  ;;  %v3223_v14 = vld [vmem:[#allocation6 + $0x18] sm:$0xff] }
 0x638   : > { %3498 = vmatpush.msrb.mxu1 %v2654_v39  ;;  %3582 = vmatpush.msrb.mxu3 %v3080_v24  ;;  %v2442_v13 = vsel %vm230_vm14, %v7701_v58, %v2425_v28  ;;  %v2967_v58 = vsel %vm428_vm2, %v7645_v36, %v9127_v54  ;;  %v2868_v9 = vsel %vm362_vm10, %v7753_v21, %v2853_v48  ;;  %v5937_v7 = vunpack.i.l.bf16 %v9131_v23  ;;  %v3224_v21 = vld [vmem:[#allocation6 + $0x20] sm:$0xff]  ;;  %v9132_v28 = vld [vmem:[#allocation30_spill] sm:$0xff] }
 0x639   : > { %3544 = vmatpush.msrb.mxu0 %v2655_v27  ;;  %3628 = vmatpush.msrb.mxu2 %v3081_v19  ;;  %v2861_v39 = vsel %vm362_vm10, %v7585_v8, %v9132_v28  ;;  %v9133_v27 = vld [vmem:[#allocation8_spill] sm:$0xff]  ;;  %v2762_v8 = vsel %vm340_vm3, %v7759_v2, %v2747_v6  ;;  %vm4406_vm11 = vcmask 605184  }
 0x63a   : > { %3499 = vmatpush.msrb.mxu1 %v2647_v37  ;;  %3583 = vmatpush.msrb.mxu3 %v3073_v46  ;;  %v5917_v37 = vunpack.i.l.bf16 %v9133_v27 }
 0x63b   : > { %3545 = vmatpush.msrb.mxu0 %v2648_v5  ;;  %3629 = vmatpush.msrb.mxu2 %v3074_v4  ;;  %v3739_v4 = vperm.slane %v7768_v1, 1 }
 0x63c   : > { %3500 = vmatpush.msrb.mxu1 %v2548_v62  ;;  %5780 = vmatmul.msk.f32.gmra.mxu3 %vm428_vm2, %v7495_v32 }
 0x63d   : > { %3546 = vmatpush.msrb.mxu0 %v2549_v45  ;;  %5782 = vmatmul.msk.f32.gmra.mxu2 %vm428_vm2, %v7495_v32 }
 0x63e   : > { %v2959_v57 = vpop.permute.xlu0 %2958  ;;  %3921 = vrot.lane.b32.xlu1 %v7777_v63, %s6035_s25  ;;  %3501 = vmatpush.msrb.mxu1 %v2541_v51  ;;  %v2535_v45 = vpop.permute.xlu1 %2534  ;;  %v5938_v51 = vunpack.i.h.bf16 %v9131_v23 }
 0x63f   : > { %v2974_v20 = vsel %vm428_vm2, %v7732_v18, %v2959_v57  ;;  %v2975_v59 = vsel %vm428_vm2, %v2959_v57, %v5904_v42  ;;  %3547 = vmatpush.msrb.mxu0 %v2542_v49  ;;  %v9128_v18 = vld [vmem:[#allocation16_spill] sm:$0xff]  ;;  %v9134_v42 = vld [vmem:[#allocation22_spill] sm:$0xff]  ;;  %v2763_v49 = vsel %vm340_vm3, %v2747_v6, %v5917_v37 }
 0x640   : > { %v3438_v61 = vpop.f32.mrf.mxu1  ;;  %3502 = vmatpush.msrb.mxu1 %v2442_v13  ;;  %3584 = vmatpush.msrb.mxu3 %v2974_v20  ;;  %v5912_v33 = vunpack.i.l.bf16 %v9128_v18  ;;  %v5913_v60 = vunpack.i.h.bf16 %v9128_v18  ;;  %v9136_v20 = vld [vmem:[#allocation28_spill] sm:$0xff]  ;;  %v3225_v37 = vld [vmem:[#allocation6 + $0x28] sm:$0xff] }
 0x641   : > { %3548 = vmatpush.msrb.mxu0 %v2443_v10  ;;  %3630 = vmatpush.msrb.mxu2 %v2975_v59  ;;  %v3179_v59 = vsel %vm472_vm4, %v7554_v35, %v9136_v20  ;;  %v2641_v10 = vpop.permute.xlu2 %2640  ;;  %v5923_v35 = vunpack.i.h.bf16 %v9137_v50 }
 0x642   : > { %v3415_v25 = vpop.f32.mrf.mxu0  ;;  %3503 = vmatpush.msrb.mxu1 %v2435_v12  ;;  %3585 = vmatpush.msrb.mxu3 %v2967_v58  ;;  %v2869_v34 = vsel %vm362_vm10, %v2853_v48, %v5912_v33  ;;  %v2862_v24 = vsel %vm362_vm10, %v9132_v28, %v5913_v60  ;;  %v9135_v48 = vld [vmem:[#allocation26_spill] sm:$0xff]  ;;  %v5922_v12 = vunpack.i.l.bf16 %v9137_v50  ;;  %v3180_v58 = vsel %vm472_vm4, %v9136_v20, %v5938_v51  ;;  %v9140_v60 = vld [vmem:[#allocation23_spill] sm:$0xff] }
 0x643   : > { %v3439_v36 = vadd.f32 %v3438_v61, %v3415_v25  ;;  %3549 = vmatpush.msrb.mxu0 %v2436_v26  ;;  %3631 = vmatpush.msrb.mxu2 %v2968_v38  ;;  %v2755_v2 = vsel %vm340_vm3, %v7606_v29, %v9135_v48  ;;  %v2656_v18 = vsel %vm318_vm6, %v7743_v16, %v2641_v10  ;;  %v5927_v38 = vunpack.i.l.bf16 %v9138_v52  ;;  %v9139_v25 = vld [vmem:[#allocation27_spill] sm:$0xff] }
 0x644   : > { %3504 = vmatpush.msrb.mxu1 %v3230_v11  ;;  %3586 = vmatpush.msrb.mxu3 %v2868_v9  ;;  %v2657_v33 = vsel %vm318_vm6, %v2641_v10, %v5922_v12  ;;  %v2649_v9 = vsel %vm318_vm6, %v7530_v15, %v9139_v25  ;;  %v2650_v16 = vsel %vm318_vm6, %v9139_v25, %v5923_v35  ;;  %v5928_v11 = vunpack.i.h.bf16 %v9138_v52  ;;  %v9146_v52 = vld [vmem:[#allocation13_spill] sm:$0xff] }
 0x645   : > { %v3677_v30 = vmax.f32 %v3439_v36, 0.0  ;;  %3550 = vmatpush.msrb.mxu0 %v3231_v43  ;;  %3632 = vmatpush.msrb.mxu2 %v2869_v34  ;;  %v2550_v34 = vsel %vm252_vm1, %v7740_v31, %v2535_v45  ;;  %v2551_v43 = vsel %vm252_vm1, %v2535_v45, %v5927_v38  ;;  %v5962_v38 = vunpack.i.h.bf16 %v9146_v52 }
 0x646   : > { %v3171_v17 = vpop.permute.xlu0 %3170  ;;  %3814 = vrot.lane.b32.xlu1 %v7777_v63, %s6033_s23  ;;  %3505 = vmatpush.msrb.mxu1 %v3223_v14  ;;  %v9141_v14 = vld [vmem:[#allocation29_spill] sm:$0xff] }
 0x647   : > { %v3186_v19 = vsel %vm472_vm4, %v7749_v44, %v3171_v17  ;;  %3551 = vmatpush.msrb.mxu0 %v3224_v21  ;;  %v3187_v46 = vsel %vm472_vm4, %v3171_v17, %v5937_v7  ;;  %v3701_v5 = vmul.f32 %v6847_v41, %v3677_v30  ;;  %3587 = vmatpush.msrb.mxu3 %v2861_v39  ;;  %v5918_v44 = vunpack.i.h.bf16 %v9133_v27  ;;  %v2429_v30 = vpop.permute.xlu1 %2428  ;;  %v9142_v17 = vld [vmem:[#allocation10_spill] sm:$0xff]  ;;  %v9143_v39 = vld [vmem:[#allocation31_spill] sm:$0xff] }
 0x648   : > { %3633 = vmatpush.msrb.mxu2 %v2862_v24  ;;  %v3441_v62 = vpop.f32.mrf.mxu1  ;;  %3506 = vmatmul.f32.vlgmr.msrb.gmra.mxu1 %v9134_v42  ;;  %v2543_v23 = vsel %vm252_vm1, %v7666_v22, %v9141_v14  ;;  %v2544_v7 = vsel %vm252_vm1, %v9141_v14, %v5928_v11  ;;  %v5932_v31 = vunpack.i.l.bf16 %v9142_v17  ;;  %v2444_v21 = vsel %vm230_vm14, %v7751_v55, %v2429_v30  ;;  %v3233_v27 = vld [vmem:[#allocation6 + $0x68] sm:$0xff] }
 0x649   : > { %3552 = vmatmul.f32.vlgmr.msrb.gmra.mxu0 %v9134_v42  ;;  %v3723_v57 = vadd.f32 %v6861_v47, %v3701_v5  ;;  %3588 = vmatpush.msrb.mxu3 %v2762_v8  ;;  %v2756_v54 = vsel %vm340_vm3, %v9135_v48, %v5918_v44  ;;  %v5933_v28 = vunpack.i.h.bf16 %v9142_v17  ;;  %v2437_v24 = vsel %vm230_vm14, %v9129_v56, %v9143_v39 }
 0x64a   : > { %v3418_v13 = vpop.f32.mrf.mxu0  ;;  %3619 = vmatpush.msra.mxu1 %v3186_v19  ;;  %3634 = vmatpush.msrb.mxu2 %v2763_v49  ;;  %v2445_v22 = vsel %vm230_vm14, %v2429_v30, %v5932_v31  ;;  %v3232_v19 = vld [vmem:[#allocation6 + $0x60] sm:$0xff]  ;;  %vm3951_vm4 = vcmask 457728   ;;  %vm5657_vm1 = vcmask 7168  }
 0x64b   : > { %v3442_v61 = vadd.f32 %v3441_v62, %v3418_v13  ;;  %3665 = vmatpush.msra.mxu0 %v3187_v46  ;;  %v7943_v6 = vmul.f32 %v3739_v4, %v3723_v57  ;;  %3589 = vmatpush.msrb.mxu3 %v2755_v2  ;;  %v2438_v55 = vsel %vm230_vm14, %v9143_v39, %v5933_v28  ;;  %v3226_v46 = vld [vmem:[#allocation6 + $0x30] sm:$0xff]  ;;  %v3740_v62 = vperm.slane %v7768_v1, 2 }
 0x64c   : > { %3620 = vmatpush.msra.mxu1 %v3179_v59  ;;  %3635 = vmatpush.msrb.mxu2 %v2756_v54  ;;  %v9144_v59 = vld [vmem:[#allocation18_spill] sm:$0xff] }
 0x64d   : > { %v3684_v29 = vmax.f32 %v3442_v61, 0.0  ;;  %3666 = vmatpush.msra.mxu0 %v3180_v58  ;;  %4376 = vrot.lane.b32.xlu0 %v7943_v6, %s6036_s28  ;;  %v5947_v10 = vunpack.i.h.bf16 %v9144_v59  ;;  %v9145_v58 = vld [vmem:[#allocation17_spill] sm:$0xff] }
 0x64e   : > { %4483 = vrot.lane.b32.xlu2 %v7943_v6, %s6010_s6  ;;  %3590 = vmatpush.msrb.mxu3 %v2656_v18 }
 0x64f   : > { %v3708_v26 = vmul.f32 %v6865_v3, %v3684_v29  ;;  %3636 = vmatpush.msrb.mxu2 %v2657_v33  ;;  %v5957_v29 = vunpack.i.h.bf16 %v9145_v58 }
 0x650   : > { %3591 = vmatpush.msrb.mxu3 %v2649_v9  ;;  %3509 = vmatmul.f32.gmra.mxu1 %v9140_v60 }
 0x651   : > { %v3730_v36 = vadd.f32 %v6779_v0, %v3708_v26  ;;  %3637 = vmatpush.msrb.mxu2 %v2650_v16  ;;  %3555 = vmatmul.f32.gmra.mxu0 %v9140_v60 }
 0x652   : > { %3592 = vmatpush.msrb.mxu3 %v2550_v34 }
 0x653   : > { %v7967_v15 = vmul.f32 %v3739_v4, %v3730_v36  ;;  %3638 = vmatpush.msrb.mxu2 %v2551_v43 }
 0x654   : > { %3593 = vmatpush.msrb.mxu3 %v2543_v23 }
 0x655   : > { %3639 = vmatpush.msrb.mxu2 %v2544_v7  ;;  %4589 = vrot.lane.b32.xlu0 %v7943_v6, %s6011_s7 }
 0x656   : > { %4392 = vrot.lane.b32.xlu1 %v7967_v15, %s6036_s28  ;;  %4270 = vrot.lane.b32.xlu2 %v7943_v6, %s6018_s14 }
 0x657   : > { %3594 = vmatpush.msrb.mxu3 %v2444_v21  ;;  %3640 = vmatpush.msrb.mxu2 %v2445_v22 }
 0x658   : > { %5783 = vmatmul.msk.f32.vlgmr.msra.gmra.mxu1 %vm428_vm2, %v7466_v53 }
 0x659   : > { %3595 = vmatpush.msrb.mxu3 %v2437_v24  ;;  %3641 = vmatpush.msrb.mxu2 %v2438_v55  ;;  %v3741_v55 = vperm.slane %v7768_v1, 3 }
 0x65a   : > { %5785 = vmatmul.msk.f32.vlgmr.msra.gmra.mxu0 %vm428_vm2, %v7466_v53  ;;  %v3484_v53 = vpop.f32.mrf.mxu3 }
 0x65b   : > { %3596 = vmatpush.msrb.mxu3 %v3232_v19  ;;  %3642 = vmatpush.msrb.mxu2 %v3233_v27  ;;  %v3742_v27 = vperm.slane %v7768_v1, 4 }
 0x65d   : > { %3597 = vmatpush.msrb.mxu3 %v3225_v37  ;;  %3643 = vmatpush.msrb.mxu2 %v3226_v46 }
 0x65e   : > { %3923 = vrot.lane.b32.xlu0 %v7943_v6, %s6035_s25  ;;  %4046 = vrot.lane.b32.xlu1 %v7967_v15, %s6032_s22 }
 0x65f   : > { %4137 = vrot.lane.b32.xlu2 %v7943_v6, %s6034_s24  ;;  %3598 = vmatmul.f32.vlgmr.msrb.gmra.mxu3 %v9134_v42 }
 0x660   : > { %3644 = vmatmul.f32.vlgmr.msrb.gmra.mxu2 %v9134_v42  ;;  %5784 = vmatmul.msk.f32.gmra.mxu1 %vm428_vm2, %v7495_v32 }
 0x662   : > { %5786 = vmatmul.msk.f32.gmra.mxu0 %vm428_vm2, %v7495_v32  ;;  %v3487_v8 = vpop.f32.mrf.mxu3 }
 0x666   : > { %4028 = vrot.lane.b32.xlu0 %v7777_v63, %s6032_s22  ;;  %3832 = vrot.lane.b32.xlu1 %v7967_v15, %s6033_s23 }
 0x667   : > { %4030 = vrot.lane.b32.xlu2 %v7943_v6, %s6032_s22  ;;  %3601 = vmatmul.f32.gmra.mxu3 %v9140_v60 }
 0x668   : > { %3647 = vmatmul.f32.gmra.mxu2 %v9140_v60 }
 0x66e   : > { %4499 = vrot.lane.b32.xlu0 %v7967_v15, %s6010_s6  ;;  %4284 = vrot.lane.b32.xlu1 %v7799_v40, %s6018_s14 }
 0x66f   : > { %3816 = vrot.lane.b32.xlu2 %v7943_v6, %s6033_s23 }
 0x672   : > { %v3461_v32 = vpop.f32.mrf.mxu2 }
 0x673   : > { %v3485_v56 = vadd.f32 %v3484_v53, %v3461_v32 }
 0x675   : > { %v3678_v5 = vmax.f32 %v3485_v56, 0.0 }
 0x676   : > { %4605 = vrot.lane.b32.xlu0 %v7967_v15, %s6011_s7  ;;  %4151 = vrot.lane.b32.xlu1 %v7799_v40, %s6034_s24 }
 0x677   : > { %v3702_v4 = vmul.f32 %v6847_v41, %v3678_v5  ;;  %4374 = vrot.lane.b32.xlu2 %v7777_v63, %s6036_s28 }
 0x679   : > { %v3724_v45 = vadd.f32 %v6861_v47, %v3702_v4 }
 0x67a   : > { %v3464_v42 = vpop.f32.mrf.mxu2 }
 0x67b   : > { %v3754_v44 = vmul.f32 %v3740_v62, %v3724_v45  ;;  %v3488_v51 = vadd.f32 %v3487_v8, %v3464_v42 }
 0x67d   : > { %4224 = vst [vmem:[#allocation6 + $0x1d0] sm:$0xff] %v3754_v44  ;;  %v3685_v49 = vmax.f32 %v3488_v51, 0.0 }
 0x67e   : > { %4153 = vrot.lane.b32.xlu0 %v7967_v15, %s6034_s24  ;;  %4378 = vrot.lane.b32.xlu1 %v3754_v44, %s6036_s28 }
 0x67f   : > { %v3709_v57 = vmul.f32 %v6865_v3, %v3685_v49  ;;  %4587 = vrot.lane.b32.xlu2 %v7777_v63, %s6011_s7 }
 0x681   : > { %v3731_v13 = vadd.f32 %v6779_v0, %v3709_v57 }
 0x683   : > { %v8036_v48 = vmul.f32 %v3740_v62, %v3731_v13 }
 0x686   : > { %4390 = vrot.lane.b32.xlu0 %v7799_v40, %s6036_s28 }
 0x687   : > { %4286 = vrot.lane.b32.xlu2 %v7967_v15, %s6018_s14 }
 0x68e   : > { %4044 = vrot.lane.b32.xlu0 %v7799_v40, %s6032_s22 }
 0x68f   : > { %3939 = vrot.lane.b32.xlu2 %v7967_v15, %s6035_s25 }
 0x696   : > { %3830 = vrot.lane.b32.xlu0 %v7799_v40, %s6033_s23 }
 0x697   : > { %4497 = vrot.lane.b32.xlu2 %v7799_v40, %s6010_s6 }
 0x698   : > { %v4482_v2 = vpop.permute.xlu1 %4481 }
 0x69e   : > { %4485 = vrot.lane.b32.xlu0 %v3754_v44, %s6010_s6 }
 0x69f   : > { %4603 = vrot.lane.b32.xlu2 %v7799_v40, %s6011_s7 }
 0x6a0   : > { %v4269_v20 = vpop.permute.xlu1 %4268 }
 0x6a6   : > { %4032 = vrot.lane.b32.xlu0 %v3754_v44, %s6032_s22 }
 0x6a7   : > { %3937 = vrot.lane.b32.xlu2 %v7799_v40, %s6035_s25 }
 0x6a8   : > { %v8057_v61 = vpop.permute.xlu2 %4483  ;;  %v4136_v50 = vpop.permute.xlu1 %4135 }
 0x6a9   : > { %v8061_v12 = vsel %vm318_vm6, %v4482_v2, %v8057_v61  ;;  %v8064_v54 = vsel %vm4165_vm0, %v5947_v10, %v4136_v50 }
 0x6ae   : > { %3818 = vrot.lane.b32.xlu0 %v3754_v44, %s6033_s23 }
 0x6af   : > { %4272 = vrot.lane.b32.xlu2 %v3754_v44, %s6018_s14 }
 0x6b0   : > { %v3922_v35 = vpop.permute.xlu1 %3921  ;;  %v8069_v18 = vpop.permute.xlu2 %4270 }
 0x6b1   : > { %v8072_v33 = vsel %vm3951_vm4, %v5957_v29, %v3922_v35  ;;  %v8076_v26 = vsel %vm230_vm14, %v4269_v20, %v8069_v18 }
 0x6b2   : > { %3980 = vst [vmem:[#allocation6 + $0x70] sm:$0xff] %v8072_v33 }
 0x6b6   : > { %4501 = vrot.lane.b32.xlu0 %v8036_v48, %s6010_s6 }
 0x6b7   : > { %4139 = vrot.lane.b32.xlu2 %v3754_v44, %s6034_s24  ;;  %v3530_v43 = vpop.f32.mrf.mxu3 }
 0x6b8   : > { %v3815_v25 = vpop.permute.xlu1 %3814  ;;  %v3576_v60 = vpop.f32.mrf.mxu2 }
 0x6b9   : > { %v8083_v9 = vpop.permute.xlu2 %4137  ;;  %v8086_v16 = vsel %vm3844_vm9, %v5962_v38, %v3815_v25 }
 0x6ba   : > { %v8090_v36 = vsel %vm4165_vm0, %v4136_v50, %v8083_v9  ;;  %3873 = vst [vmem:[#allocation6] sm:$0xff] %v8086_v16 }
 0x6be   : > { %4155 = vrot.lane.b32.xlu0 %v8036_v48, %s6034_s24 }
 0x6bf   : > { %4591 = vrot.lane.b32.xlu2 %v3754_v44, %s6011_s7  ;;  %v8096_v11 = vpop.permute.xlu0 %4376  ;;  %v3533_v53 = vpop.f32.mrf.mxu3 }
 0x6c0   : > { %v3579_v32 = vpop.f32.mrf.mxu2 }
 0x6c1   : > { %v8098_v34 = vpop.permute.xlu2 %4030 }
 0x6c5   : > { %v3507_v30 = vpop.f32.mrf.mxu1 }
 0x6c6   : > { %v3553_v14 = vpop.f32.mrf.mxu0  ;;  %v3531_v23 = vadd.f32 %v3530_v43, %v3507_v30 }
 0x6c7   : > { %3925 = vrot.lane.b32.xlu2 %v3754_v44, %s6035_s25  ;;  %v3577_v7 = vadd.f32 %v3576_v60, %v3553_v14  ;;  %v8101_v17 = vpop.permute.xlu0 %4589 }
 0x6c8   : > { %v8103_v31 = vpop.permute.xlu1 %4392  ;;  %v3679_v21 = vmax.f32 %v3531_v23, 0.0 }
 0x6c9   : > { %v3680_v28 = vmax.f32 %v3577_v7, 0.0  ;;  %v8105_v22 = vpop.permute.xlu2 %3816 }
 0x6ca   : > { %v8109_v39 = vsel %vm3844_vm9, %v3815_v25, %v8105_v22  ;;  %v3703_v24 = vmul.f32 %v6847_v41, %v3679_v21 }
 0x6cb   : > { %v3704_v19 = vmul.f32 %v6847_v41, %v3680_v28  ;;  %3874 = vst [vmem:[#allocation6 + $0x8] sm:$0xff] %v8109_v39 }
 0x6cc   : > { %v3725_v37 = vadd.f32 %v6861_v47, %v3703_v24 }
 0x6cd   : > { %v3726_v46 = vadd.f32 %v6861_v47, %v3704_v19  ;;  %v3510_v4 = vpop.f32.mrf.mxu1 }
 0x6ce   : > { %v8118_v56 = vmul.f32 %v3741_v55, %v3725_v37  ;;  %v3556_v62 = vpop.f32.mrf.mxu0  ;;  %v3534_v8 = vadd.f32 %v3533_v53, %v3510_v4 }
 0x6cf   : > { %v8120_v5 = vmul.f32 %v3742_v27, %v3726_v46  ;;  %4394 = vrot.lane.b32.xlu2 %v8036_v48, %s6036_s28  ;;  %v3580_v45 = vadd.f32 %v3579_v32, %v3556_v62 }
 0x6d0   : > { %v8124_v42 = vpop.permute.xlu0 %3923  ;;  %v8130_v51 = vpop.permute.xlu1 %4046  ;;  %v3686_v57 = vmax.f32 %v3534_v8, 0.0 }
 0x6d1   : > { %v8128_v44 = vsel %vm3951_vm4, %v3922_v35, %v8124_v42  ;;  %v4375_v49 = vpop.permute.xlu2 %4374  ;;  %4276 = vrot.lane.b32.xlu0 %v8120_v5, %s6018_s14  ;;  %4382 = vrot.lane.b32.xlu1 %v8120_v5, %s6036_s28  ;;  %4226 = vst [vmem:[#allocation6 + $0x1e0] sm:$0xff] %v8120_v5  ;;  %v3687_v13 = vmax.f32 %v3580_v45, 0.0  ;;  %v9147_v35 = vld [vmem:[#allocation12_spill] sm:$0xff]  ;;  %v5946_v45 = vunpack.i.l.bf16 %v9144_v59 }
 0x6d2   : > { %v8139_v2 = vsel %vm4406_vm11, %v4375_v49, %v8096_v11  ;;  %3981 = vst [vmem:[#allocation6 + $0x78] sm:$0xff] %v8128_v44  ;;  %v3710_v20 = vmul.f32 %v6865_v3, %v3686_v57  ;;  %v5952_v38 = vunpack.i.h.bf16 %v9147_v35 }
 0x6d3   : > { %v3711_v10 = vmul.f32 %v6865_v3, %v3687_v13  ;;  %v3743_v13 = vperm.slane %v7768_v1, 5 }
 0x6d4   : > { %v3732_v50 = vadd.f32 %v6779_v0, %v3710_v20 }
 0x6d5   : > { %v3733_v29 = vadd.f32 %v6779_v0, %v3711_v10  ;;  %v3622_v28 = vpop.f32.mrf.mxu1  ;;  %v3744_v10 = vperm.slane %v7768_v1, 6 }
 0x6d6   : > { %v8149_v25 = vmul.f32 %v3741_v55, %v3732_v50 }
 0x6d7   : > { %4288 = vrot.lane.b32.xlu2 %v8036_v48, %s6018_s14  ;;  %v8151_v43 = vmul.f32 %v3742_v27, %v3733_v29  ;;  %v3668_v24 = vpop.f32.mrf.mxu0 }
 0x6d8   : > { %v4029_v60 = vpop.permute.xlu0 %4028  ;;  %v8156_v14 = vpop.permute.xlu1 %3832 }
 0x6d9   : > { %v8154_v30 = vsel %vm4058_vm13, %v5952_v38, %v4029_v60  ;;  %v4588_v23 = vpop.permute.xlu2 %4587  ;;  %4048 = vrot.lane.b32.xlu0 %v8036_v48, %s6032_s22  ;;  %4607 = vrot.lane.b32.xlu1 %v8036_v48, %s6011_s7  ;;  %v8164_v7 = vsel %vm4058_vm13, %v4029_v60, %v8098_v34  ;;  %4233 = vst [vmem:[#allocation6 + $0x218] sm:$0xff] %v8151_v43 }
 0x6da   : > { %v8169_v21 = vsel %vm340_vm3, %v4588_v23, %v8101_v17 }
 0x6dd   : > { %v3625_v49 = vpop.f32.mrf.mxu1 }
 0x6df   : > { %4489 = vrot.lane.b32.xlu2 %v8120_v5, %s6010_s6  ;;  %v3671_v29 = vpop.f32.mrf.mxu0 }
 0x6e0   : > { %v8173_v55 = vpop.permute.xlu0 %4499  ;;  %v4285_v19 = vpop.permute.xlu1 %4284 }
 0x6e1   : > { %v8175_v27 = vpop.permute.xlu2 %4286  ;;  %3834 = vrot.lane.b32.xlu0 %v8036_v48, %s6033_s23  ;;  %3941 = vrot.lane.b32.xlu1 %v8036_v48, %s6035_s25 }
 0x6e2   : > { %v4307_v37 = vsel %vm230_vm14, %v4285_v19, %v8175_v27  ;;  %v3599_v46 = vpop.f32.mrf.mxu3 }
 0x6e3   : > { %v3645_v53 = vpop.f32.mrf.mxu2  ;;  %v3623_v32 = vadd.f32 %v3622_v28, %v3599_v46 }
 0x6e4   : > { %v3669_v4 = vadd.f32 %v3668_v24, %v3645_v53 }
 0x6e5   : > { %v3681_v62 = vmax.f32 %v3623_v32, 0.0 }
 0x6e6   : > { %v3682_v8 = vmax.f32 %v3669_v4, 0.0 }
 0x6e7   : > { %4036 = vrot.lane.b32.xlu2 %v8120_v5, %s6032_s22  ;;  %v3705_v57 = vmul.f32 %v6847_v41, %v3681_v62 }
 0x6e8   : > { %v3706_v20 = vmul.f32 %v6847_v41, %v3682_v8  ;;  %v8190_v50 = vpop.permute.xlu0 %4605  ;;  %v4152_v38 = vpop.permute.xlu1 %4151 }
 0x6e9   : > { %v8192_v60 = vpop.permute.xlu2 %3939  ;;  %4143 = vrot.lane.b32.xlu0 %v8120_v5, %s6034_s24  ;;  %4505 = vrot.lane.b32.xlu1 %v8151_v43, %s6010_s6  ;;  %v3727_v59 = vadd.f32 %v6861_v47, %v3705_v57  ;;  %v4173_v41 = vsel %vm4165_vm0, %v5946_v45, %v4152_v38 }
 0x6ea   : > { %v3728_v23 = vadd.f32 %v6861_v47, %v3706_v20  ;;  %v3602_v28 = vpop.f32.mrf.mxu3 }
 0x6eb   : > { %v3648_v1 = vpop.f32.mrf.mxu2  ;;  %v8201_v24 = vmul.f32 %v3743_v13, %v3727_v59  ;;  %v3626_v46 = vadd.f32 %v3625_v49, %v3602_v28 }
 0x6ec   : > { %v8203_v19 = vmul.f32 %v3744_v10, %v3728_v23  ;;  %v3672_v53 = vadd.f32 %v3671_v29, %v3648_v1 }
 0x6ed   : > { %4227 = vst [vmem:[#allocation6 + $0x1e8] sm:$0xff] %v8201_v24  ;;  %v3688_v32 = vmax.f32 %v3626_v46, 0.0 }
 0x6ee   : > { %v3689_v4 = vmax.f32 %v3672_v53, 0.0  ;;  %4228 = vst [vmem:[#allocation6 + $0x1f0] sm:$0xff] %v8203_v19 }
 0x6ef   : > { %3929 = vrot.lane.b32.xlu2 %v8120_v5, %s6035_s25  ;;  %v3712_v47 = vmul.f32 %v6865_v3, %v3688_v32 }
 0x6f0   : > { %v3713_v62 = vmul.f32 %v6865_v3, %v3689_v4  ;;  %v8211_v8 = vpop.permute.xlu0 %4153  ;;  %v8217_v57 = vpop.permute.xlu1 %4378 }
 0x6f1   : > { %v8215_v45 = vsel %vm4165_vm0, %v4152_v38, %v8211_v8  ;;  %v4498_v49 = vpop.permute.xlu2 %4497  ;;  %4595 = vrot.lane.b32.xlu0 %v8120_v5, %s6011_s7  ;;  %4274 = vrot.lane.b32.xlu1 %v8118_v56, %s6018_s14  ;;  %v3734_v20 = vadd.f32 %v6779_v0, %v3712_v47  ;;  %v8230_v38 = vsel %vm4406_vm11, %v8096_v11, %v8217_v57 }
 0x6f2   : > { %v3735_v29 = vadd.f32 %v6779_v0, %v3713_v62  ;;  %v4520_v3 = vsel %vm318_vm6, %v4498_v49, %v8173_v55 }
 0x6f3   : > { %4797 = vmatpush.msrb.mxu1 %v4520_v3  ;;  %v8232_v59 = vmul.f32 %v3743_v13, %v3734_v20  ;;  %v5956_v13 = vunpack.i.l.bf16 %v9145_v58 }
 0x6f4   : > { %v8234_v23 = vmul.f32 %v3744_v10, %v3735_v29 }
 0x6f5   : > { %4798 = vmatpush.msrb.mxu1 %v8061_v12  ;;  %4234 = vst [vmem:[#allocation6 + $0x220] sm:$0xff] %v8232_v59 }
 0x6f6   : > { %4235 = vst [vmem:[#allocation6 + $0x228] sm:$0xff] %v8234_v23 }
 0x6f7   : > { %3822 = vrot.lane.b32.xlu2 %v8120_v5, %s6033_s23  ;;  %v5951_v5 = vunpack.i.l.bf16 %v9147_v35 }
 0x6f8   : > { %v4391_v0 = vpop.permute.xlu0 %4390 }
 0x6f9   : > { %v4414_v28 = vsel %vm4406_vm11, %v4391_v0, %v8103_v31  ;;  %v4604_v11 = vpop.permute.xlu2 %4603  ;;  %4398 = vrot.lane.b32.xlu1 %v8151_v43, %s6036_s28  ;;  %4487 = vrot.lane.b32.xlu0 %v8118_v56, %s6010_s6 }
 0x6fa   : > { %v4626_v12 = vsel %vm340_vm3, %v4604_v11, %v8190_v50  ;;  %4799 = vmatpush.msrb.mxu1 %v4414_v28 }
 0x6fb   : > { %4834 = vmatpush.msra.mxu3 %v4626_v12 }
 0x6fc   : > { %4800 = vmatpush.msrb.mxu1 %v8139_v2 }
 0x6fd   : > { %4835 = vmatpush.msra.mxu3 %v8169_v21 }
 0x6fe   : > { %4801 = vmatpush.msrb.mxu1 %v4307_v37 }
 0x6ff   : > { %3927 = vrot.lane.b32.xlu2 %v8118_v56, %s6035_s25 }
 0x700   : > { %v4045_v10 = vpop.permute.xlu0 %4044  ;;  %4802 = vmatpush.msrb.mxu1 %v8076_v26  ;;  %v5961_v26 = vunpack.i.l.bf16 %v9146_v52 }
 0x701   : > { %v4066_v1 = vsel %vm4058_vm13, %v5951_v5, %v4045_v10  ;;  %v8259_v46 = vsel %vm4058_vm13, %v4045_v10, %v8130_v51  ;;  %v3938_v2 = vpop.permute.xlu2 %3937  ;;  %4292 = vrot.lane.b32.xlu1 %v8151_v43, %s6018_s14  ;;  %4380 = vrot.lane.b32.xlu0 %v8118_v56, %s6036_s28 }
 0x702   : > { %v3959_v35 = vsel %vm3951_vm4, %v5956_v13, %v3938_v2  ;;  %v8268_v58 = vsel %vm3951_vm4, %v3938_v2, %v8192_v60  ;;  %4803 = vmatpush.msrb.mxu1 %v7799_v40 }
 0x703   : > { %3987 = vst [vmem:[#allocation6 + $0xa8] sm:$0xff] %v3959_v35 }
 0x704   : > { %4804 = vmatpush.msrb.mxu1 %v7777_v63  ;;  %3988 = vst [vmem:[#allocation6 + $0xb0] sm:$0xff] %v8268_v58 }
 0x706   : > { %4805 = vmatpush.msrb.mxu1 %v4173_v41 }
 0x707   : > { %4593 = vrot.lane.b32.xlu2 %v8118_v56, %s6011_s7 }
 0x708   : > { %v3831_v21 = vpop.permute.xlu0 %3830  ;;  %4806 = vmatpush.msrb.mxu1 %v8064_v54 }
 0x709   : > { %v3852_v37 = vsel %vm3844_vm9, %v5961_v26, %v3831_v21  ;;  %v8280_v53 = vsel %vm3844_vm9, %v3831_v21, %v8156_v14  ;;  %v8282_v40 = vpop.permute.xlu2 %4272  ;;  %4034 = vrot.lane.b32.xlu1 %v8118_v56, %s6032_s22  ;;  %4141 = vrot.lane.b32.xlu0 %v8118_v56, %s6034_s24 }
 0x70a   : > { %3880 = vst [vmem:[#allocation6 + $0x38] sm:$0xff] %v3852_v37  ;;  %v4301_v63 = vsel %vm230_vm14, %v8069_v18, %v8282_v40  ;;  %4807 = vmatpush.msrb.mxu1 %v4066_v1 }
 0x70b   : > { %3881 = vst [vmem:[#allocation6 + $0x40] sm:$0xff] %v8280_v53 }
 0x70c   : > { %4808 = vmatpush.msrb.mxu1 %v8154_v30 }
 0x70e   : > { %4809 = vmatpush.msrb.mxu1 %v3959_v35 }
 0x70f   : > { %3945 = vrot.lane.b32.xlu2 %v8151_v43, %s6035_s25 }
 0x710   : > { %v8295_v54 = vpop.permute.xlu0 %4485  ;;  %4810 = vmatpush.msrb.mxu1 %v8072_v33 }
 0x711   : > { %v4514_v52 = vsel %vm318_vm6, %v8057_v61, %v8295_v54  ;;  %v8301_v41 = vpop.permute.xlu2 %4139  ;;  %4159 = vrot.lane.b32.xlu1 %v8151_v43, %s6034_s24  ;;  %3820 = vrot.lane.b32.xlu0 %v8118_v56, %s6033_s23 }
 0x712   : > { %v8310_v18 = vsel %vm4165_vm0, %v8083_v9, %v8301_v41  ;;  %4811 = vmatpush.msrb.mxu1 %v3852_v37 }
 0x714   : > { %4812 = vmatpush.msrb.mxu1 %v8086_v16 }
 0x717   : > { %3838 = vrot.lane.b32.xlu2 %v8151_v43, %s6033_s23 }
 0x718   : > { %v8315_v61 = vpop.permute.xlu0 %4032 }
 0x719   : > { %v8320_v33 = vsel %vm4058_vm13, %v8098_v34, %v8315_v61  ;;  %v8322_v30 = vpop.permute.xlu2 %4591  ;;  %4611 = vrot.lane.b32.xlu1 %v8151_v43, %s6011_s7  ;;  %4052 = vrot.lane.b32.xlu0 %v8151_v43, %s6032_s22 }
 0x71a   : > { %v4620_v9 = vsel %vm340_vm3, %v8101_v17, %v8322_v30 }
 0x71f   : > { %4396 = vrot.lane.b32.xlu2 %v8149_v25, %s6036_s28 }
 0x720   : > { %v8333_v16 = vpop.permute.xlu0 %3818 }
 0x721   : > { %v8338_v34 = vsel %vm3844_vm9, %v8105_v22, %v8333_v16  ;;  %v8340_v32 = vpop.permute.xlu2 %3925  ;;  %4290 = vrot.lane.b32.xlu0 %v8149_v25, %s6018_s14  ;;  %4503 = vrot.lane.b32.xlu1 %v8149_v25, %s6010_s6 }
 0x722   : > { %3875 = vst [vmem:[#allocation6 + $0x10] sm:$0xff] %v8338_v34  ;;  %v8350_v17 = vsel %vm3951_vm4, %v8124_v42, %v8340_v32 }
 0x723   : > { %3982 = vst [vmem:[#allocation6 + $0x80] sm:$0xff] %v8350_v17 }
 0x727   : > { %4157 = vrot.lane.b32.xlu2 %v8149_v25, %s6034_s24 }
 0x728   : > { %v8355_v22 = vpop.permute.xlu0 %4501 }
 0x729   : > { %v4521_v43 = vsel %vm318_vm6, %v8173_v55, %v8355_v22  ;;  %v8360_v4 = vpop.permute.xlu2 %4394  ;;  %4050 = vrot.lane.b32.xlu1 %v8149_v25, %s6032_s22  ;;  %4493 = vrot.lane.b32.xlu0 %v8203_v19, %s6010_s6 }
 0x72a   : > { %v4415_v42 = vsel %vm4406_vm11, %v8103_v31, %v8360_v4  ;;  %4843 = vmatpush.msrb.mxu0 %v4521_v43 }
 0x72c   : > { %4844 = vmatpush.msrb.mxu0 %v4514_v52 }
 0x72e   : > { %4845 = vmatpush.msrb.mxu0 %v4415_v42 }
 0x72f   : > { %3836 = vrot.lane.b32.xlu2 %v8149_v25, %s6033_s23 }
 0x730   : > { %v8371_v47 = vpop.permute.xlu0 %4155  ;;  %4846 = vmatpush.msrb.mxu0 %v8230_v38 }
 0x731   : > { %v8377_v55 = vsel %vm4165_vm0, %v8211_v8, %v8371_v47  ;;  %v8379_v62 = vpop.permute.xlu2 %4288  ;;  %3943 = vrot.lane.b32.xlu1 %v8149_v25, %s6035_s25  ;;  %4386 = vrot.lane.b32.xlu0 %v8203_v19, %s6036_s28 }
 0x732   : > { %v4308_v31 = vsel %vm230_vm14, %v8175_v27, %v8379_v62 }
 0x733   : > { %4847 = vmatpush.msrb.mxu0 %v4308_v31 }
 0x735   : > { %4848 = vmatpush.msrb.mxu0 %v4301_v63 }
 0x737   : > { %4384 = vrot.lane.b32.xlu2 %v8201_v24, %s6036_s28  ;;  %4849 = vmatpush.msrb.mxu0 %v7967_v15 }
 0x739   : > { %v8391_v8 = vpop.permute.xlu2 %4489  ;;  %4609 = vrot.lane.b32.xlu1 %v8149_v25, %s6011_s7  ;;  %4491 = vrot.lane.b32.xlu0 %v8201_v24, %s6010_s6 }
 0x73a   : > { %4850 = vmatpush.msrb.mxu0 %v7943_v6 }
 0x73c   : > { %4851 = vmatpush.msrb.mxu0 %v8215_v45 }
 0x73e   : > { %4852 = vmatpush.msrb.mxu0 %v8090_v36 }
 0x73f   : > { %4278 = vrot.lane.b32.xlu2 %v8201_v24, %s6018_s14 }
 0x740   : > { %4853 = vmatpush.msrb.mxu0 %v8259_v46 }
 0x741   : > { %v8403_v15 = vpop.permute.xlu2 %4036  ;;  %4280 = vrot.lane.b32.xlu1 %v8203_v19, %s6018_s14  ;;  %4509 = vrot.lane.b32.xlu0 %v8234_v23, %s6010_s6 }
 0x742   : > { %4854 = vmatpush.msrb.mxu0 %v8164_v7 }
 0x743   : > { %v8410_v6 = vpop.permute.xlu0 %4276  ;;  %v8412_v27 = vpop.permute.xlu1 %4382 }
 0x744   : > { %4855 = vmatpush.msrb.mxu0 %v8268_v58 }
 0x746   : > { %4856 = vmatpush.msrb.mxu0 %v8128_v44 }
 0x747   : > { %4296 = vrot.lane.b32.xlu2 %v8234_v23, %s6018_s14 }
 0x748   : > { %4857 = vmatpush.msrb.mxu0 %v8280_v53 }
 0x749   : > { %v8419_v36 = vpop.permute.xlu2 %3929  ;;  %4147 = vrot.lane.b32.xlu1 %v8203_v19, %s6034_s24  ;;  %4402 = vrot.lane.b32.xlu0 %v8234_v23, %s6036_s28 }
 0x74a   : > { %4858 = vmatpush.msrb.mxu0 %v8109_v39 }
 0x74b   : > { %v8426_v7 = vpop.permute.xlu0 %4048  ;;  %v8428_v45 = vpop.permute.xlu1 %4607 }
 0x74c   : > { %v8433_v44 = vsel %vm4058_vm13, %v8130_v51, %v8426_v7  ;;  %v4627_v49 = vsel %vm340_vm3, %v8190_v50, %v8428_v45 }
 0x74d   : > { %4880 = vmatpush.msra.mxu2 %v4627_v49 }
 0x74f   : > { %4294 = vrot.lane.b32.xlu2 %v8232_v59, %s6018_s14  ;;  %4881 = vmatpush.msra.mxu2 %v4620_v9 }
 0x751   : > { %v8440_v20 = vpop.permute.xlu2 %3822  ;;  %4597 = vrot.lane.b32.xlu1 %v8201_v24, %s6011_s7  ;;  %4145 = vrot.lane.b32.xlu0 %v8201_v24, %s6034_s24 }
 0x753   : > { %v8446_v39 = vpop.permute.xlu0 %3834  ;;  %v8448_v51 = vpop.permute.xlu1 %3941 }
 0x754   : > { %v8453_v50 = vsel %vm3844_vm9, %v8156_v14, %v8446_v39  ;;  %v8458_v29 = vsel %vm3951_vm4, %v8192_v60, %v8448_v51 }
 0x755   : > { %3882 = vst [vmem:[#allocation6 + $0x48] sm:$0xff] %v8453_v50 }
 0x756   : > { %3989 = vst [vmem:[#allocation6 + $0xb8] sm:$0xff] %v8458_v29 }
 0x757   : > { %4615 = vrot.lane.b32.xlu2 %v8234_v23, %s6011_s7 }
 0x759   : > { %v3928_v3 = vpop.permute.xlu2 %3927  ;;  %4163 = vrot.lane.b32.xlu1 %v8234_v23, %s6034_s24  ;;  %4038 = vrot.lane.b32.xlu0 %v8201_v24, %s6032_s22 }
 0x75a   : > { %v8470_v14 = vsel %vm3951_vm4, %v8340_v32, %v3928_v3  ;;  %v8474_v60 = vsel %vm3951_vm4, %v3928_v3, %v8419_v36 }
 0x75b   : > { %3983 = vst [vmem:[#allocation6 + $0x88] sm:$0xff] %v8470_v14  ;;  %v8477_v38 = vpop.permute.xlu0 %4143  ;;  %v8479_v0 = vpop.permute.xlu1 %4505 }
 0x75c   : > { %3984 = vst [vmem:[#allocation6 + $0x90] sm:$0xff] %v8474_v60 }
 0x75f   : > { %4599 = vrot.lane.b32.xlu2 %v8203_v19, %s6011_s7 }
 0x761   : > { %v4594_v28 = vpop.permute.xlu2 %4593  ;;  %4056 = vrot.lane.b32.xlu1 %v8234_v23, %s6032_s22  ;;  %3931 = vrot.lane.b32.xlu0 %v8201_v24, %s6035_s25 }
 0x762   : > { %v8490_v11 = vsel %vm340_vm3, %v8322_v30, %v4594_v28 }
 0x763   : > { %v8492_v12 = vpop.permute.xlu0 %4595  ;;  %v4275_v5 = vpop.permute.xlu1 %4274 }
 0x764   : > { %v8496_v13 = vsel %vm340_vm3, %v4594_v28, %v8492_v12  ;;  %v8500_v10 = vsel %vm230_vm14, %v8282_v40, %v4275_v5  ;;  %v8504_v1 = vsel %vm230_vm14, %v4275_v5, %v8410_v6 }
 0x767   : > { %3840 = vrot.lane.b32.xlu2 %v8232_v59, %s6033_s23 }
 0x769   : > { %v8508_v46 = vpop.permute.xlu2 %3945  ;;  %3933 = vrot.lane.b32.xlu0 %v8203_v19, %s6035_s25  ;;  %4507 = vrot.lane.b32.xlu1 %v8232_v59, %s6010_s6 }
 0x76b   : > { %v8514_v2 = vpop.permute.xlu1 %4398  ;;  %v4488_v35 = vpop.permute.xlu0 %4487 }
 0x76c   : > { %v4515_v58 = vsel %vm318_vm6, %v8295_v54, %v4488_v35  ;;  %v4516_v26 = vsel %vm318_vm6, %v4488_v35, %v8391_v8 }
 0x76f   : > { %3842 = vrot.lane.b32.xlu2 %v8234_v23, %s6033_s23 }
 0x771   : > { %v8522_v21 = vpop.permute.xlu2 %3838  ;;  %4161 = vrot.lane.b32.xlu0 %v8232_v59, %s6034_s24  ;;  %4400 = vrot.lane.b32.xlu1 %v8232_v59, %s6036_s28 }
 0x773   : > { %v8528_v37 = vpop.permute.xlu1 %4292  ;;  %v4381_v53 = vpop.permute.xlu0 %4380 }
 0x774   : > { %v4409_v40 = vsel %vm4406_vm11, %v8217_v57, %v4381_v53  ;;  %v4410_v63 = vsel %vm4406_vm11, %v4381_v53, %v8412_v27 }
 0x779   : > { %v4397_v54 = vpop.permute.xlu2 %4396  ;;  %4054 = vrot.lane.b32.xlu0 %v8232_v59, %s6032_s22  ;;  %4040 = vrot.lane.b32.xlu1 %v8203_v19, %s6032_s22 }
 0x77a   : > { %v4416_v52 = vsel %vm4406_vm11, %v8360_v4, %v4397_v54  ;;  %v4417_v30 = vsel %vm4406_vm11, %v4397_v54, %v8514_v2 }
 0x77b   : > { %v4035_v9 = vpop.permute.xlu1 %4034  ;;  %v4142_v32 = vpop.permute.xlu0 %4141 }
 0x77c   : > { %v8544_v57 = vsel %vm4058_vm13, %v8315_v61, %v4035_v9  ;;  %v8548_v43 = vsel %vm4058_vm13, %v4035_v9, %v8403_v15  ;;  %v8552_v42 = vsel %vm4165_vm0, %v8301_v41, %v4142_v32  ;;  %v8556_v4 = vsel %vm4165_vm0, %v4142_v32, %v8477_v38 }
 0x781   : > { %v4158_v31 = vpop.permute.xlu2 %4157  ;;  %3947 = vrot.lane.b32.xlu0 %v8232_v59, %s6035_s25  ;;  %4613 = vrot.lane.b32.xlu1 %v8232_v59, %s6011_s7 }
 0x782   : > { %v8564_v61 = vsel %vm4165_vm0, %v8371_v47, %v4158_v31 }
 0x783   : > { %v8566_v49 = vpop.permute.xlu1 %4159  ;;  %v3821_v3 = vpop.permute.xlu0 %3820 }
 0x784   : > { %v8570_v41 = vsel %vm4165_vm0, %v4158_v31, %v8566_v49  ;;  %v8574_v28 = vsel %vm3844_vm9, %v8333_v16, %v3821_v3  ;;  %v8578_v5 = vsel %vm3844_vm9, %v3821_v3, %v8440_v20 }
 0x785   : > { %3876 = vst [vmem:[#allocation6 + $0x18] sm:$0xff] %v8574_v28 }
 0x786   : > { %3877 = vst [vmem:[#allocation6 + $0x20] sm:$0xff] %v8578_v5 }
 0x789   : > { %v3837_v59 = vpop.permute.xlu2 %3836  ;;  %3826 = vrot.lane.b32.xlu0 %v8203_v19, %s6033_s23  ;;  %3949 = vrot.lane.b32.xlu1 %v8234_v23, %s6035_s25 }
 0x78a   : > { %v8588_v47 = vsel %vm3844_vm9, %v8446_v39, %v3837_v59  ;;  %v8592_v16 = vsel %vm3844_vm9, %v3837_v59, %v8522_v21 }
 0x78b   : > { %3883 = vst [vmem:[#allocation6 + $0x50] sm:$0xff] %v8588_v47  ;;  %v8595_v35 = vpop.permute.xlu1 %4611  ;;  %v8597_v53 = vpop.permute.xlu0 %4052 }
 0x78c   : > { %3884 = vst [vmem:[#allocation6 + $0x58] sm:$0xff] %v8592_v16 }
 0x791   : > { %v4385_v19 = vpop.permute.xlu2 %4384  ;;  %3824 = vrot.lane.b32.xlu1 %v8201_v24, %s6033_s23 }
 0x792   : > { %v8604_v23 = vsel %vm4406_vm11, %v8412_v27, %v4385_v19  ;;  %v9148_v27 = vmov 0.0  }
 0x793   : > { %v4291_v39 = vpop.permute.xlu0 %4290  ;;  %v4504_v54 = vpop.permute.xlu1 %4503 }
 0x794   : > { %v4309_v9 = vsel %vm230_vm14, %v8379_v62, %v4291_v39  ;;  %v4310_v32 = vsel %vm230_vm14, %v4291_v39, %v8528_v37  ;;  %v4522_v31 = vsel %vm318_vm6, %v8355_v22, %v4504_v54  ;;  %v4523_v3 = vsel %vm318_vm6, %v4504_v54, %v8479_v0  ;;  %v9149_v62 = vld [vmem:[#allocation19_spill] sm:$0xff] }
 0x795   : > { %4889 = vmatpush.msrb.mxu3 %v4522_v31  ;;  %4935 = vmatpush.msrb.mxu2 %v4523_v3  ;;  %v5967_v59 = vunpack.i.h.bf16 %v9149_v62  ;;  %v4723_v31 = vld [vmem:[#allocation6 + $0x1d0] sm:$0xff]  ;;  %v9151_v3 = vld [vmem:[#allocation20_spill] sm:$0xff] }
 0x797   : > { %4890 = vmatpush.msrb.mxu3 %v4515_v58  ;;  %4936 = vmatpush.msrb.mxu2 %v4516_v26 }
 0x799   : > { %v8614_v24 = vpop.permute.xlu2 %4278  ;;  %5979 = vrot.lane.b32.xlu1 %v9148_v27, %s6011_s7  ;;  %4891 = vmatpush.msrb.mxu3 %v4416_v52  ;;  %v5972_v27 = vunpack.i.h.bf16 %v9151_v3 }
 0x79a   : > { %v8622_v39 = vsel %vm230_vm14, %v8410_v6, %v8614_v24  ;;  %4937 = vmatpush.msrb.mxu2 %v4417_v30  ;;  %v9150_v6 = vld [vmem:[#allocation14_spill] sm:$0xff] }
 0x79b   : > { %v4051_v22 = vpop.permute.xlu1 %4050  ;;  %v4494_v54 = vpop.permute.xlu0 %4493  ;;  %4892 = vmatpush.msrb.mxu3 %v4409_v40  ;;  %v5976_v30 = vunpack.i.l.bf16 %v9150_v6 }
 0x79c   : > { %v4069_v58 = vsel %vm4058_vm13, %v8426_v7, %v4051_v22  ;;  %v8628_v26 = vsel %vm4058_vm13, %v4051_v22, %v8597_v53  ;;  %v8631_v52 = vsel %vm318_vm6, %v4494_v54, %v5967_v59  ;;  %4938 = vmatpush.msrb.mxu2 %v4410_v63 }
 0x79d   : > { %4893 = vmatpush.msrb.mxu3 %v4309_v9 }
 0x79e   : > { %4939 = vmatpush.msrb.mxu2 %v4310_v32 }
 0x79f   : > { %4894 = vmatpush.msrb.mxu3 %v8500_v10 }
 0x7a0   : > { %4940 = vmatpush.msrb.mxu2 %v8504_v1 }
 0x7a1   : > { %v4297_v40 = vpop.permute.xlu2 %4296  ;;  %4895 = vmatpush.msrb.mxu3 %v8036_v48 }
 0x7a2   : > { %v8638_v7 = vsel %vm230_vm14, %v4297_v40, %v5976_v30  ;;  %4941 = vmatpush.msrb.mxu2 %v8149_v25 }
 0x7a3   : > { %v3944_v63 = vpop.permute.xlu1 %3943  ;;  %v4387_v9 = vpop.permute.xlu0 %4386  ;;  %4896 = vmatpush.msrb.mxu3 %v4723_v31 }
 0x7a4   : > { %v3962_v10 = vsel %vm3951_vm4, %v8448_v51, %v3944_v63  ;;  %v8646_v1 = vsel %vm3951_vm4, %v3944_v63, %v8508_v46  ;;  %v8649_v48 = vsel %vm4406_vm11, %v4385_v19, %v4387_v9  ;;  %4942 = vmatpush.msrb.mxu2 %v8118_v56  ;;  %v8653_v25 = vsel %vm4406_vm11, %v4387_v9, %v5972_v27  ;;  %v8769_v63 = vld [vmem:[%s9068_s1 + $0x80] sm:$0xff] }
 0x7a5   : > { %3990 = vst [vmem:[#allocation6 + $0xc0] sm:$0xff] %v3962_v10  ;;  %4897 = vmatpush.msrb.mxu3 %v8377_v55 }
 0x7a6   : > { %3991 = vst [vmem:[#allocation6 + $0xc8] sm:$0xff] %v8646_v1  ;;  %4943 = vmatpush.msrb.mxu2 %v8564_v61 }
 0x7a7   : > { %4898 = vmatpush.msrb.mxu3 %v8310_v18 }
 0x7a8   : > { %4944 = vmatpush.msrb.mxu2 %v8552_v42 }
 0x7a9   : > { %v4295_v51 = vpop.permute.xlu2 %4294  ;;  %4899 = vmatpush.msrb.mxu3 %v8433_v44 }
 0x7aa   : > { %v8663_v56 = vsel %vm230_vm14, %v8528_v37, %v4295_v51  ;;  %v8666_v19 = vsel %vm230_vm14, %v4295_v51, %v4297_v40  ;;  %4945 = vmatpush.msrb.mxu2 %v4069_v58  ;;  %v8752_v40 = vld [vmem:[%s9068_s1 + $0x88] sm:$0xff] }
 0x7ab   : > { %v4610_v55 = vpop.permute.xlu1 %4609  ;;  %v4492_v32 = vpop.permute.xlu0 %4491  ;;  %4900 = vmatpush.msrb.mxu3 %v8320_v33 }
 0x7ac   : > { %v4628_v18 = vsel %vm340_vm3, %v8428_v45, %v4610_v55  ;;  %v4629_v42 = vsel %vm340_vm3, %v4610_v55, %v8595_v35  ;;  %v8675_v44 = vsel %vm318_vm6, %v8391_v8, %v4492_v32  ;;  %v8678_v37 = vsel %vm318_vm6, %v4492_v32, %v4494_v54  ;;  %4946 = vmatpush.msrb.mxu2 %v8544_v57 }
 0x7ad   : > { %4901 = vmatpush.msrb.mxu3 %v8458_v29  ;;  %4926 = vmatpush.msra.mxu1 %v4628_v18  ;;  %v5977_v8 = vunpack.i.h.bf16 %v9150_v6  ;;  %v5966_v45 = vunpack.i.l.bf16 %v9149_v62  ;;  %v8725_v62 = vld [vmem:[%s9068_s1 + $0x30] sm:$0xff] }
 0x7ae   : > { %4972 = vmatpush.msra.mxu0 %v4629_v42  ;;  %4947 = vmatpush.msrb.mxu2 %v3962_v10  ;;  %v6037_v42 = vmov 9  }
 0x7af   : > { %4902 = vmatpush.msrb.mxu3 %v8350_v17  ;;  %4927 = vmatpush.msra.mxu1 %v8490_v11 }
 0x7b0   : > { %4973 = vmatpush.msra.mxu0 %v8496_v13  ;;  %4948 = vmatpush.msrb.mxu2 %v8470_v14  ;;  %v5971_v13 = vunpack.i.l.bf16 %v9151_v3 }
 0x7b1   : > { %v8685_v33 = vpop.permute.xlu2 %4615  ;;  %4903 = vmatpush.msrb.mxu3 %v8453_v50  ;;  %4813 = vmatmul.f32.vlgmr.msrb.gmra.mxu1 %v8725_v62 }
 0x7b2   : > { %4949 = vmatpush.msrb.mxu2 %v8588_v47  ;;  %4859 = vmatmul.f32.vlgmr.msrb.gmra.mxu0 %v8725_v62 }
 0x7b3   : > { %v4281_v29 = vpop.permute.xlu1 %4280  ;;  %v4510_v57 = vpop.permute.xlu0 %4509  ;;  %4904 = vmatpush.msrb.mxu3 %v8338_v34  ;;  %5985 = vset.pattern.permute.xlu1 %v6037_v42 }
 0x7b4   : > { %v8695_v17 = vsel %vm230_vm14, %v8614_v24, %v4281_v29  ;;  %v8698_v11 = vsel %vm230_vm14, %v4281_v29, %v5977_v8  ;;  %v8701_v14 = vsel %vm318_vm6, %v4510_v57, %v5966_v45  ;;  %4950 = vmatpush.msrb.mxu2 %v8574_v28  ;;  %v8716_v24 = vld [vmem:[%s9068_s1 + $0x38] sm:$0xff]  ;;  %v6038_v8 = vmov 8   ;;  %v5120_v45 = vld [vmem:[%s9069_s2 + $0x8] sm:$0xff] }
 0x7b5   : > { %5787 = vmatmul.msk.f32.vlgmr.msra.gmra.mxu3 %vm428_vm2, %v8716_v24  ;;  %5789 = vmatmul.msk.f32.vlgmr.msra.gmra.mxu2 %vm428_vm2, %v8716_v24 }
 0x7b6   : > { %5984 = vset.pattern.permute.xlu0 %v6038_v8  ;;  %5164 = vperm.xlu1 %5985, %v5120_v45  }
 0x7b7   : > { %5983 = vset.pattern.permute.xlu2 %v6038_v8 }
 0x7b8   : > { %5142 = vperm.xlu2 %5983, %v5120_v45  }
 0x7b9   : > { %v8704_v50 = vpop.permute.xlu2 %4599  ;;  %4816 = vmatmul.f32.gmra.mxu1 %v8769_v63 }
 0x7ba   : > { %4862 = vmatmul.f32.gmra.mxu0 %v8769_v63 }
 0x7bb   : > { %v4148_v61 = vpop.permute.xlu1 %4147  ;;  %v8707_v47 = vpop.permute.xlu0 %4402 }
 0x7bc   : > { %v8711_v34 = vsel %vm4406_vm11, %v8707_v47, %v5971_v13 }
 0x7bd   : > { %5788 = vmatmul.msk.f32.gmra.mxu3 %vm428_vm2, %v8752_v40  ;;  %5790 = vmatmul.msk.f32.gmra.mxu2 %vm428_vm2, %v8752_v40 }
 0x7c0   : > { %5986 = vset.pattern.permute.xlu2 %v6037_v42 }
 0x7c1   : > { %v3841_v28 = vpop.permute.xlu2 %3840  ;;  %5791 = vmatmul.msk.f32.vlgmr.msra.gmra.mxu1 %vm428_vm2, %v8716_v24 }
 0x7c2   : > { %v8729_v59 = vsel %vm3844_vm9, %v8522_v21, %v3841_v28  ;;  %5793 = vmatmul.msk.f32.vlgmr.msra.gmra.mxu0 %vm428_vm2, %v8716_v24 }
 0x7c3   : > { %3885 = vst [vmem:[#allocation6 + $0x60] sm:$0xff] %v8729_v59  ;;  %v4598_v22 = vpop.permute.xlu1 %4597  ;;  %v4146_v54 = vpop.permute.xlu0 %4145 }
 0x7c4   : > { %v8736_v58 = vsel %vm340_vm3, %v8492_v12, %v4598_v22  ;;  %v8740_v6 = vsel %vm340_vm3, %v4598_v22, %v8704_v50  ;;  %v8744_v21 = vsel %vm4165_vm0, %v8477_v38, %v4146_v54  ;;  %v8747_v30 = vsel %vm4165_vm0, %v4146_v54, %v4148_v61  ;;  %v4733_v22 = vld [vmem:[#allocation6 + $0x220] sm:$0xff] }
 0x7c5   : > { %4905 = vmatmul.f32.vlgmr.msrb.gmra.mxu3 %v8725_v62  ;;  %4951 = vmatmul.f32.vlgmr.msrb.gmra.mxu2 %v8725_v62 }
 0x7c9   : > { %v3843_v12 = vpop.permute.xlu2 %3842  ;;  %5792 = vmatmul.msk.f32.gmra.mxu1 %vm428_vm2, %v8752_v40 }
 0x7ca   : > { %v8759_v31 = vsel %vm3844_vm9, %v3841_v28, %v3843_v12  ;;  %5794 = vmatmul.msk.f32.gmra.mxu0 %vm428_vm2, %v8752_v40 }
 0x7cb   : > { %3886 = vst [vmem:[#allocation6 + $0x68] sm:$0xff] %v8759_v31  ;;  %v4164_v38 = vpop.permute.xlu1 %4163  ;;  %v4039_v3 = vpop.permute.xlu0 %4038 }
 0x7cc   : > { %v8764_v27 = vsel %vm4058_vm13, %v8403_v15, %v4039_v3 }
 0x7cd   : > { %4908 = vmatmul.f32.gmra.mxu3 %v8769_v63  ;;  %4954 = vmatmul.f32.gmra.mxu2 %v8769_v63 }
 0x7d3   : > { %v4057_v9 = vpop.permute.xlu1 %4056  ;;  %v3932_v10 = vpop.permute.xlu0 %3931 }
 0x7d4   : > { %v8777_v51 = vsel %vm3951_vm4, %v8419_v36, %v3932_v10 }
 0x7d5   : > { %3985 = vst [vmem:[#allocation6 + $0x98] sm:$0xff] %v8777_v51 }
 0x7db   : > { %v3934_v15 = vpop.permute.xlu0 %3933  ;;  %v4508_v55 = vpop.permute.xlu1 %4507 }
 0x7dc   : > { %v8787_v32 = vsel %vm3951_vm4, %v3932_v10, %v3934_v15  ;;  %v4524_v36 = vsel %vm318_vm6, %v8479_v0, %v4508_v55  ;;  %v4525_v18 = vsel %vm318_vm6, %v4508_v55, %v4510_v57  ;;  %v8800_v0 = vld [vmem:[%s9069_s2] sm:$0xff]  ;;  %vm5444_vm6 = vcmask 80896  }
 0x7dd   : > { %3986 = vst [vmem:[#allocation6 + $0xa0] sm:$0xff] %v8787_v32  ;;  %4981 = vmatpush.msrb.mxu1 %v4524_v36  ;;  %5027 = vmatpush.msrb.mxu0 %v4525_v18 }
 0x7de   : > { %5137 = vperm.xlu0 %5984, %v8800_v0   ;;  %5160 = vperm.xlu2 %5986, %v8800_v0  }
 0x7df   : > { %4982 = vmatpush.msrb.mxu1 %v8675_v44  ;;  %5028 = vmatpush.msrb.mxu0 %v8678_v37 }
 0x7e3   : > { %v4162_v44 = vpop.permute.xlu0 %4161  ;;  %v4401_v37 = vpop.permute.xlu1 %4400 }
 0x7e4   : > { %v4178_v29 = vsel %vm4165_vm0, %v8566_v49, %v4162_v44  ;;  %v8811_v57 = vsel %vm4165_vm0, %v4162_v44, %v4164_v38  ;;  %v4418_v13 = vsel %vm4406_vm11, %v8514_v2, %v4401_v37  ;;  %v4419_v61 = vsel %vm4406_vm11, %v4401_v37, %v8707_v47 }
 0x7e5   : > { %4983 = vmatpush.msrb.mxu1 %v4418_v13  ;;  %5029 = vmatpush.msrb.mxu0 %v4419_v61 }
 0x7e7   : > { %4984 = vmatpush.msrb.mxu1 %v8604_v23  ;;  %5030 = vmatpush.msrb.mxu0 %v8649_v48  ;;  %v4732_v48 = vld [vmem:[#allocation6 + $0x218] sm:$0xff] }
 0x7e9   : > { %4985 = vmatpush.msrb.mxu1 %v8663_v56  ;;  %5031 = vmatpush.msrb.mxu0 %v8666_v19  ;;  %v4725_v56 = vld [vmem:[#allocation6 + $0x1e0] sm:$0xff]  ;;  %v4726_v19 = vld [vmem:[#allocation6 + $0x1e8] sm:$0xff] }
 0x7eb   : > { %v4055_v49 = vpop.permute.xlu0 %4054  ;;  %v4041_v28 = vpop.permute.xlu1 %4040  ;;  %4986 = vmatpush.msrb.mxu1 %v8622_v39  ;;  %5032 = vmatpush.msrb.mxu0 %v8695_v17 }
 0x7ec   : > { %v4071_v2 = vsel %vm4058_vm13, %v8597_v53, %v4055_v49  ;;  %v8826_v47 = vsel %vm4058_vm13, %v4055_v49, %v4057_v9  ;;  %v8829_v23 = vsel %vm4058_vm13, %v4039_v3, %v4041_v28 }
 0x7ed   : > { %4987 = vmatpush.msrb.mxu1 %v4732_v48  ;;  %5033 = vmatpush.msrb.mxu0 %v4733_v22 }
 0x7ef   : > { %4988 = vmatpush.msrb.mxu1 %v4725_v56  ;;  %5034 = vmatpush.msrb.mxu0 %v4726_v19 }
 0x7f1   : > { %4989 = vmatpush.msrb.mxu1 %v8570_v41  ;;  %5035 = vmatpush.msrb.mxu0 %v4178_v29 }
 0x7f3   : > { %v3948_v53 = vpop.permute.xlu0 %3947  ;;  %v4614_v39 = vpop.permute.xlu1 %4613  ;;  %4990 = vmatpush.msrb.mxu1 %v8556_v4  ;;  %5036 = vmatpush.msrb.mxu0 %v8744_v21 }
 0x7f4   : > { %v3964_v17 = vsel %vm3951_vm4, %v8508_v46, %v3948_v53  ;;  %v4630_v54 = vsel %vm340_vm3, %v8595_v35, %v4614_v39  ;;  %v4631_v12 = vsel %vm340_vm3, %v4614_v39, %v8685_v33  ;;  %v4734_v35 = vld [vmem:[#allocation6 + $0x228] sm:$0xff] }
 0x7f5   : > { %3992 = vst [vmem:[#allocation6 + $0xd0] sm:$0xff] %v3964_v17  ;;  %4991 = vmatpush.msrb.mxu1 %v8628_v26  ;;  %5018 = vmatpush.msra.mxu3 %v4630_v54 }
 0x7f6   : > { %5037 = vmatpush.msrb.mxu0 %v4071_v2  ;;  %5064 = vmatpush.msra.mxu2 %v4631_v12  ;;  %v8909_v2 = vld [vmem:[%s9068_s1 + $0x40] sm:$0xff] }
 0x7f7   : > { %4992 = vmatpush.msrb.mxu1 %v8548_v43  ;;  %5019 = vmatpush.msra.mxu3 %v8736_v58 }
 0x7f8   : > { %5038 = vmatpush.msrb.mxu0 %v8764_v27  ;;  %5065 = vmatpush.msra.mxu2 %v8740_v6 }
 0x7f9   : > { %5073 = vmatpush.msrb.mxu3 %v8701_v14  ;;  %4993 = vmatpush.msrb.mxu1 %v8646_v1 }
 0x7fa   : > { %5039 = vmatpush.msrb.mxu0 %v3964_v17  ;;  %5795 = vmatmul.msk.f32.vlgmr.msra.gmra.mxu3 %vm428_vm2, %v8716_v24 }
 0x7fb   : > { %v3950_v46 = vpop.permute.xlu1 %3949  ;;  %5074 = vmatpush.msrb.mxu3 %v8631_v52  ;;  %4994 = vmatpush.msrb.mxu1 %v8474_v60  ;;  %v3827_v60 = vpop.permute.xlu0 %3826 }
 0x7fc   : > { %v3965_v43 = vsel %vm3951_vm4, %v3948_v53, %v3950_v46  ;;  %5040 = vmatpush.msrb.mxu0 %v8777_v51  ;;  %5797 = vmatmul.msk.f32.vlgmr.msra.gmra.mxu2 %vm428_vm2, %v8716_v24  ;;  %v8923_v46 = vld [vmem:[%s9068_s1 + $0x90] sm:$0x3] }
 0x7fd   : > { %3993 = vst [vmem:[#allocation6 + $0xd8] sm:$0xff] %v3965_v43  ;;  %5075 = vmatpush.msrb.mxu3 %v8711_v34  ;;  %4995 = vmatpush.msrb.mxu1 %v8592_v16 }
 0x7fe   : > { %5041 = vmatpush.msrb.mxu0 %v8729_v59 }
 0x7ff   : > { %5076 = vmatpush.msrb.mxu3 %v8653_v25  ;;  %4996 = vmatpush.msrb.mxu1 %v8578_v5  ;;  %v4727_v5 = vld [vmem:[#allocation6 + $0x1f0] sm:$0xff] }
 0x800   : > { %4997 = vmatmul.f32.vlgmr.msrb.gmra.mxu1 %v8725_v62 }
 0x801   : > { %5077 = vmatpush.msrb.mxu3 %v8638_v7 }
 0x802   : > { %5796 = vmatmul.msk.f32.gmra.mxu3 %vm428_vm2, %v8752_v40 }
 0x803   : > { %v3825_v4 = vpop.permute.xlu1 %3824  ;;  %5078 = vmatpush.msrb.mxu3 %v8698_v11 }
 0x804   : > { %v3850_v41 = vsel %vm3844_vm9, %v8440_v20, %v3825_v4  ;;  %v3851_v16 = vsel %vm3844_vm9, %v3825_v4, %v3827_v60  ;;  %5798 = vmatmul.msk.f32.gmra.mxu2 %vm428_vm2, %v8752_v40 }
 0x805   : > { %3878 = vst [vmem:[#allocation6 + $0x28] sm:$0xff] %v3850_v41  ;;  %5079 = vmatpush.msrb.mxu3 %v4734_v35  ;;  %5042 = vmatpush.msrb.mxu0 %v3850_v41  ;;  %v6039_v41 = vmov 10  }
 0x806   : > { %3879 = vst [vmem:[#allocation6 + $0x30] sm:$0xff] %v3851_v16  ;;  %5043 = vmatmul.f32.vlgmr.msrb.gmra.mxu0 %v8725_v62  ;;  %5987 = vset.pattern.permute.xlu1 %v6039_v41 }
 0x807   : > { %5080 = vmatpush.msrb.mxu3 %v4727_v5  ;;  %5988 = vset.pattern.permute.xlu2 %v6039_v41 }
 0x808   : > { %5000 = vmatmul.f32.gmra.mxu1 %v8769_v63  ;;  %5368 = vperm.xlu2 %5988, %v8800_v0  }
 0x809   : > { %5081 = vmatpush.msrb.mxu3 %v8811_v57 }
 0x80b   : > { %v5980_v26 = vpop.permute.xlu1 %5979  ;;  %5082 = vmatpush.msrb.mxu3 %v8747_v30 }
 0x80c   : > { %v5982_v20 = vunpack.i.h.bf16 %v5980_v26  ;;  %v5981_v52 = vunpack.i.l.bf16 %v5980_v26 }
 0x80d   : > { %5083 = vmatpush.msrb.mxu3 %v8826_v47 }
 0x80e   : > { %v4625_v7 = vsel %vm340_vm3, %v8704_v50, %v5982_v20  ;;  %v4632_v1 = vsel %vm340_vm3, %v8685_v33, %v5981_v52  ;;  %5046 = vmatmul.f32.gmra.mxu0 %v8769_v63  ;;  %v6040_v20 = vmov 11   ;;  %vm5659_vm3 = vcmask 1024  }
 0x80f   : > { %5084 = vmatpush.msrb.mxu3 %v8829_v23  ;;  %5110 = vmatpush.msra.mxu1 %v4632_v1 }
 0x810   : > { %5989 = vset.pattern.permute.xlu0 %v6040_v20 }
 0x811   : > { %5085 = vmatpush.msrb.mxu3 %v3965_v43  ;;  %5111 = vmatpush.msra.mxu1 %v4625_v7 }
 0x812   : > { %5799 = vmatmul.msk.f32.vlgmr.msra.gmra.mxu1 %vm428_vm2, %v8716_v24  ;;  %v8890_v50 = vpop.permute.xlu2 %5142 }
 0x813   : > { %5086 = vmatpush.msrb.mxu3 %v8787_v32 }
 0x815   : > { %5087 = vmatpush.msrb.mxu3 %v8759_v31 }
 0x817   : > { %5088 = vmatpush.msrb.mxu3 %v3851_v16  ;;  %v5351_v16 = vld [vmem:[%s9069_s2 + $0x8] sm:$0x3] }
 0x818   : > { %5089 = vmatmul.f32.vlgmr.msrb.gmra.mxu3 %v8725_v62  ;;  %5373 = vperm.xlu1 %5987, %v5351_v16  }
 0x819   : > { %5395 = vperm.xlu0 %5989, %v5351_v16  }
 0x81a   : > { %5800 = vmatmul.msk.f32.gmra.mxu1 %vm428_vm2, %v8752_v40 }
 0x820   : > { %5092 = vmatmul.f32.gmra.mxu3 %v8769_v63  ;;  %5990 = vset.pattern.permute.xlu1 %v6040_v20 }
 0x821   : > { %5391 = vperm.xlu1 %5990, %v8800_v0  }
 0x828   : > { %v8898_v55 = vpop.permute.xlu1 %5164 }
 0x82e   : > { %v4814_v25 = vpop.f32.mrf.mxu1 }
 0x82f   : > { %v4860_v33 = vpop.f32.mrf.mxu0 }
 0x836   : > { %v4817_v34 = vpop.f32.mrf.mxu1 }
 0x837   : > { %v4863_v58 = vpop.f32.mrf.mxu0 }
 0x838   : > { %v4837_v11 = vpop.f32.mrf.mxu3  ;;  %v4883_v14 = vpop.f32.mrf.mxu2 }
 0x839   : > { %v4838_v21 = vadd.f32 %v4837_v11, %v4814_v25  ;;  %v4884_v30 = vadd.f32 %v4883_v14, %v4860_v33  ;;  %v8894_v9 = vpop.permute.xlu2 %5160 }
 0x83b   : > { %v5121_v3 = vmax.f32 %v4838_v21, 0.0  ;;  %v5122_v40 = vmax.f32 %v4884_v30, 0.0 }
 0x83e   : > { %v4929_v51 = vpop.f32.mrf.mxu1 }
 0x83f   : > { %v4975_v18 = vpop.f32.mrf.mxu0 }
 0x840   : > { %v4840_v24 = vpop.f32.mrf.mxu3  ;;  %v4886_v6 = vpop.f32.mrf.mxu2 }
 0x841   : > { %v4841_v59 = vadd.f32 %v4840_v24, %v4817_v34  ;;  %v4887_v31 = vadd.f32 %v4886_v6, %v4863_v58 }
 0x843   : > { %v5128_v62 = vmax.f32 %v4841_v59, 0.0  ;;  %v5129_v38 = vmax.f32 %v4887_v31, 0.0 }
 0x845   : > { %v5153_v27 = vmul.f32 %v8890_v50, %v5129_v38  ;;  %v5152_v63 = vmul.f32 %v8890_v50, %v5128_v62 }
 0x846   : > { %v4932_v57 = vpop.f32.mrf.mxu1 }
 0x847   : > { %v5174_v32 = vadd.f32 %v8898_v55, %v5152_v63  ;;  %v5175_v8 = vadd.f32 %v8898_v55, %v5153_v27  ;;  %v4978_v28 = vpop.f32.mrf.mxu0 }
 0x848   : > { %v4906_v10 = vpop.f32.mrf.mxu3  ;;  %v4952_v36 = vpop.f32.mrf.mxu2 }
 0x849   : > { %5203 = vmatpush.msrb.mxu2 %v5174_v32  ;;  %5226 = vmatpush.msra.mxu0 %v5175_v8  ;;  %v4930_v13 = vadd.f32 %v4929_v51, %v4906_v10  ;;  %v4976_v48 = vadd.f32 %v4975_v18, %v4952_v36 }
 0x84b   : > { %v5123_v22 = vmax.f32 %v4930_v13, 0.0  ;;  %v5124_v17 = vmax.f32 %v4976_v48, 0.0 }
 0x850   : > { %v8896_v15 = vpop.permute.xlu0 %5137  ;;  %v4909_v29 = vpop.f32.mrf.mxu3 }
 0x851   : > { %v5145_v42 = vmul.f32 %v8896_v15, %v5121_v3  ;;  %v5146_v45 = vmul.f32 %v8896_v15, %v5122_v40  ;;  %v4933_v61 = vadd.f32 %v4932_v57, %v4909_v29  ;;  %v4955_v49 = vpop.f32.mrf.mxu2  ;;  %v5147_v12 = vmul.f32 %v8896_v15, %v5123_v22 }
 0x852   : > { %v4979_v23 = vadd.f32 %v4978_v28, %v4955_v49  ;;  %v5148_v60 = vmul.f32 %v8896_v15, %v5124_v17  ;;  %v8984_v17 = vld [vmem:[%s9070_s3] sm:$0xff] }
 0x853   : > { %v5167_v44 = vadd.f32 %v8894_v9, %v5145_v42  ;;  %v5168_v37 = vadd.f32 %v8894_v9, %v5146_v45  ;;  %v5130_v47 = vmax.f32 %v4933_v61, 0.0  ;;  %v5169_v43 = vadd.f32 %v8894_v9, %v5147_v12 }
 0x854   : > { %v5131_v19 = vmax.f32 %v4979_v23, 0.0  ;;  %v5170_v4 = vadd.f32 %v8894_v9, %v5148_v60  ;;  %v5417_v41 = vperm.slane %v8984_v17, 1 }
 0x855   : > { %5204 = vmatpush.msrb.mxu2 %v5167_v44  ;;  %5227 = vmatpush.msra.mxu0 %v5168_v37  ;;  %v5154_v56 = vmul.f32 %v8890_v50, %v5130_v47 }
 0x856   : > { %5801 = vmatmul.msk.f32.vlgmr.msrb.gmra.mxu2 %vm428_vm2, %v8909_v2  ;;  %5803 = vmatmul.msk.f32.vlgmr.msra.gmra.mxu0 %vm428_vm2, %v8909_v2  ;;  %v5155_v39 = vmul.f32 %v8890_v50, %v5131_v19 }
 0x857   : > { %v5176_v53 = vadd.f32 %v8898_v55, %v5154_v56 }
 0x858   : > { %v5177_v54 = vadd.f32 %v8898_v55, %v5155_v39 }
 0x859   : > { %5249 = vmatpush.msrb.mxu1 %v5176_v53 }
 0x85a   : > { %5272 = vmatpush.msra.mxu2 %v5177_v54 }
 0x85b   : > { %5250 = vmatpush.msrb.mxu1 %v5169_v43 }
 0x85c   : > { %5805 = vmatmul.msk.f32.vlgmr.msrb.gmra.mxu1 %vm428_vm2, %v8909_v2  ;;  %5273 = vmatpush.msra.mxu2 %v5170_v4 }
 0x85e   : > { %5802 = vmatmul.msk.f32.gmra.mxu2 %vm428_vm2, %v8923_v46  ;;  %5804 = vmatmul.msk.f32.gmra.mxu0 %vm428_vm2, %v8923_v46 }
 0x864   : > { %5806 = vmatmul.msk.f32.gmra.mxu1 %vm428_vm2, %v8923_v46 }
 0x866   : > { %5807 = vmatmul.msk.f32.vlgmr.msra.gmra.mxu2 %vm428_vm2, %v8909_v2 }
 0x86e   : > { %5808 = vmatmul.msk.f32.gmra.mxu2 %vm428_vm2, %v8923_v46 }
 0x87d   : > { %v4998_v35 = vpop.f32.mrf.mxu1  ;;  %v5021_v5 = vpop.f32.mrf.mxu3 }
 0x87e   : > { %v5022_v52 = vadd.f32 %v5021_v5, %v4998_v35  ;;  %v5418_v5 = vperm.slane %v8984_v17, 2 }
 0x87f   : > { %v5067_v26 = vpop.f32.mrf.mxu2 }
 0x880   : > { %v5125_v33 = vmax.f32 %v5022_v52, 0.0 }
 0x882   : > { %v5149_v59 = vmul.f32 %v8896_v15, %v5125_v33  ;;  %v5419_v33 = vperm.slane %v8984_v17, 3 }
 0x883   : > { %v5044_v7 = vpop.f32.mrf.mxu0 }
 0x884   : > { %v5068_v14 = vadd.f32 %v5067_v26, %v5044_v7  ;;  %v5171_v0 = vadd.f32 %v8894_v9, %v5149_v59 }
 0x885   : > { %v5001_v1 = vpop.f32.mrf.mxu1  ;;  %v5024_v25 = vpop.f32.mrf.mxu3 }
 0x886   : > { %v5025_v11 = vadd.f32 %v5024_v25, %v5001_v1  ;;  %v5126_v21 = vmax.f32 %v5068_v14, 0.0 }
 0x887   : > { %v5070_v24 = vpop.f32.mrf.mxu2 }
 0x888   : > { %v5132_v34 = vmax.f32 %v5025_v11, 0.0  ;;  %v5150_v38 = vmul.f32 %v8896_v15, %v5126_v21 }
 0x88a   : > { %v5156_v58 = vmul.f32 %v8890_v50, %v5132_v34  ;;  %v5172_v27 = vadd.f32 %v8894_v9, %v5150_v38  ;;  %v8969_v49 = vpop.permute.xlu1 %5373 }
 0x88b   : > { %v5047_v6 = vpop.f32.mrf.mxu0  ;;  %v8973_v22 = vpop.permute.xlu0 %5395 }
 0x88c   : > { %v5178_v30 = vadd.f32 %v8898_v55, %v5156_v58  ;;  %v5071_v31 = vadd.f32 %v5070_v24, %v5047_v6  ;;  %v9003_v6 = vld [vmem:[%s9068_s1 + $0x48] sm:$0xff] }
 0x88e   : > { %v5133_v62 = vmax.f32 %v5071_v31, 0.0  ;;  %5295 = vmatpush.msra.mxu3 %v5178_v30 }
 0x88f   : > { %v5113_v63 = vpop.f32.mrf.mxu1 }
 0x890   : > { %v5157_v3 = vmul.f32 %v8890_v50, %v5133_v62  ;;  %5296 = vmatpush.msra.mxu3 %v5171_v0 }
 0x891   : > { %5809 = vmatmul.msk.f32.vlgmr.msra.gmra.mxu3 %vm428_vm2, %v8909_v2 }
 0x892   : > { %v5179_v40 = vadd.f32 %v8898_v55, %v5157_v3 }
 0x893   : > { %v8979_v39 = vpop.permute.xlu1 %5391 }
 0x894   : > { %5318 = vmatpush.msrb.mxu0 %v5179_v40  ;;  %v5413_v40 = vld [vmem:[%s9068_s1 + $0x98] sm:$0x3] }
 0x896   : > { %5319 = vmatpush.msrb.mxu0 %v5172_v27 }
 0x897   : > { %5811 = vmatmul.msk.f32.vlgmr.msrb.gmra.mxu0 %vm428_vm2, %v8909_v2  ;;  %v5116_v32 = vpop.f32.mrf.mxu1 }
 0x899   : > { %5810 = vmatmul.msk.f32.gmra.mxu3 %vm428_vm2, %v8923_v46 }
 0x89b   : > { %v5090_v10 = vpop.f32.mrf.mxu3 }
 0x89c   : > { %v5114_v51 = vadd.f32 %v5113_v63, %v5090_v10 }
 0x89e   : > { %v5127_v18 = vmax.f32 %v5114_v51, 0.0 }
 0x89f   : > { %5812 = vmatmul.msk.f32.gmra.mxu0 %vm428_vm2, %v8923_v46 }
 0x8a0   : > { %v5151_v45 = vmul.f32 %v8896_v15, %v5127_v18 }
 0x8a2   : > { %v5173_v29 = vadd.f32 %v8894_v9, %v5151_v45 }
 0x8a3   : > { %v5093_v36 = vpop.f32.mrf.mxu3 }
 0x8a4   : > { %v5117_v42 = vadd.f32 %v5116_v32, %v5093_v36 }
 0x8a6   : > { %v5134_v8 = vmax.f32 %v5117_v42, 0.0 }
 0x8a8   : > { %v5158_v44 = vmul.f32 %v8890_v50, %v5134_v8 }
 0x8aa   : > { %v5180_v37 = vadd.f32 %v8898_v55, %v5158_v44 }
 0x8ac   : > { %5341 = vmatpush.msra.mxu1 %v5180_v37  ;;  %v5420_v37 = vperm.slane %v8984_v17, 4 }
 0x8ae   : > { %5342 = vmatpush.msra.mxu1 %v5173_v29 }
 0x8af   : > { %5813 = vmatmul.msk.f32.vlgmr.msra.gmra.mxu1 %vm428_vm2, %v8909_v2  ;;  %v8975_v2 = vpop.permute.xlu2 %5368 }
 0x8b7   : > { %5814 = vmatmul.msk.f32.gmra.mxu1 %vm428_vm2, %v8923_v46  ;;  %v5416_v46 = vperm.slane %v8984_v17, 0  ;;  %vm5451_vm2 = vcmask 1041408  }
 0x8d3   : > { %v5229_v13 = vpop.f32.mrf.mxu0 }
 0x8d4   : > { %v5353_v19 = vmax.f32 %v5229_v13, 0.0 }
 0x8d6   : > { %v5377_v7 = vmul.f32 %v8975_v2, %v5353_v19 }
 0x8d8   : > { %v5399_v11 = vadd.f32 %v8979_v39, %v5377_v7 }
 0x8d9   : > { %v5206_v57 = vpop.f32.mrf.mxu2  ;;  %v5252_v15 = vpop.f32.mrf.mxu1 }
 0x8da   : > { %v5352_v9 = vmax.f32 %v5206_v57, 0.0  ;;  %v5354_v24 = vmax.f32 %v5252_v15, 0.0  ;;  %v5431_v58 = vmul.f32 %v5417_v41, %v5399_v11  ;;  %v5421_v57 = vperm.slane %v8984_v17, 5 }
 0x8db   : > { %v5232_v50 = vpop.f32.mrf.mxu0 }
 0x8dc   : > { %v5360_v47 = vmax.f32 %v5232_v50, 0.0  ;;  %v5376_v12 = vmul.f32 %v8975_v2, %v5352_v9  ;;  %v5378_v30 = vmul.f32 %v8975_v2, %v5354_v24 }
 0x8de   : > { %v5384_v48 = vmul.f32 %v8969_v49, %v5360_v47  ;;  %v5398_v4 = vadd.f32 %v8979_v39, %v5376_v12  ;;  %v5400_v62 = vadd.f32 %v8979_v39, %v5378_v30 }
 0x8e0   : > { %v5406_v53 = vadd.f32 %v8973_v22, %v5384_v48  ;;  %v5430_v20 = vmul.f32 %v5416_v46, %v5398_v4  ;;  %v5432_v38 = vmul.f32 %v5418_v5, %v5400_v62 }
 0x8e1   : > { %v5209_v61 = vpop.f32.mrf.mxu2  ;;  %v5255_v54 = vpop.f32.mrf.mxu1 }
 0x8e2   : > { %v5359_v28 = vmax.f32 %v5209_v61, 0.0  ;;  %v5361_v43 = vmax.f32 %v5255_v54, 0.0  ;;  %v5438_v52 = vmul.f32 %v5417_v41, %v5406_v53 }
 0x8e4   : > { %v5383_v23 = vmul.f32 %v8969_v49, %v5359_v28  ;;  %v5385_v35 = vmul.f32 %v8969_v49, %v5361_v43  ;;  %5818 = vmatpush.msk.msrb.mxu3 %vm5451_vm2, %v5438_v52  ;;  %v5422_v43 = vperm.slane %v8984_v17, 6 }
 0x8e6   : > { %v5405_v56 = vadd.f32 %v8973_v22, %v5383_v23  ;;  %v5407_v1 = vadd.f32 %v8973_v22, %v5385_v35  ;;  %5511 = vmatpush.msrb.mxu3 %v5431_v58 }
 0x8e7   : > { %5819 = vmatmul.msk.f32.vlgmr.msrb.gmra.mxu3 %vm5444_vm6, %v9003_v6 }
 0x8e8   : > { %v5437_v16 = vmul.f32 %v5416_v46, %v5405_v56  ;;  %v5439_v14 = vmul.f32 %v5418_v5, %v5407_v1 }
 0x8e9   : > { %v5275_v55 = vpop.f32.mrf.mxu2 }
 0x8ea   : > { %5815 = vmatpush.msk.msrb.mxu2 %vm5451_vm2, %v5437_v16  ;;  %v5355_v59 = vmax.f32 %v5275_v55, 0.0  ;;  %5821 = vmatpush.msk.msra.mxu0 %vm5451_vm2, %v5439_v14 }
 0x8ec   : > { %5488 = vmatpush.msrb.mxu2 %v5430_v20  ;;  %v5379_v31 = vmul.f32 %v8975_v2, %v5355_v59  ;;  %5534 = vmatpush.msra.mxu0 %v5432_v38 }
 0x8ed   : > { %5816 = vmatmul.msk.f32.vlgmr.msrb.gmra.mxu2 %vm5444_vm6, %v9003_v6  ;;  %5822 = vmatmul.msk.f32.vlgmr.msra.gmra.mxu0 %vm5444_vm6, %v9003_v6 }
 0x8ee   : > { %v5401_v0 = vadd.f32 %v8979_v39, %v5379_v31 }
 0x8ef   : > { %5820 = vmatmul.msk.f32.gmra.mxu3 %vm5444_vm6, %v5413_v40 }
 0x8f0   : > { %v5433_v3 = vmul.f32 %v5419_v33, %v5401_v0 }
 0x8f1   : > { %v5278_v60 = vpop.f32.mrf.mxu2 }
 0x8f2   : > { %v5362_v26 = vmax.f32 %v5278_v60, 0.0 }
 0x8f4   : > { %v5386_v25 = vmul.f32 %v8969_v49, %v5362_v26 }
 0x8f5   : > { %5817 = vmatmul.msk.f32.gmra.mxu2 %vm5444_vm6, %v5413_v40  ;;  %5823 = vmatmul.msk.f32.gmra.mxu0 %vm5444_vm6, %v5413_v40 }
 0x8f6   : > { %v5408_v34 = vadd.f32 %v8973_v22, %v5386_v25 }
 0x8f8   : > { %v5440_v21 = vmul.f32 %v5419_v33, %v5408_v34 }
 0x8fa   : > { %5824 = vmatpush.msk.msrb.mxu1 %vm5451_vm2, %v5440_v21 }
 0x8fc   : > { %5557 = vmatpush.msrb.mxu1 %v5433_v3 }
 0x8fd   : > { %5825 = vmatmul.msk.f32.vlgmr.msrb.gmra.mxu1 %vm5444_vm6, %v9003_v6 }
 0x905   : > { %5826 = vmatmul.msk.f32.gmra.mxu1 %vm5444_vm6, %v5413_v40 }
 0x914   : > { %v5298_v27 = vpop.f32.mrf.mxu3  ;;  %v5321_v63 = vpop.f32.mrf.mxu0 }
 0x915   : > { %v5356_v10 = vmax.f32 %v5298_v27, 0.0  ;;  %v5357_v51 = vmax.f32 %v5321_v63, 0.0 }
 0x917   : > { %v5380_v18 = vmul.f32 %v8975_v2, %v5356_v10  ;;  %v5381_v42 = vmul.f32 %v8975_v2, %v5357_v51 }
 0x919   : > { %v5402_v15 = vadd.f32 %v8979_v39, %v5380_v18  ;;  %v5403_v28 = vadd.f32 %v8979_v39, %v5381_v42 }
 0x91b   : > { %v5434_v55 = vmul.f32 %v5420_v37, %v5402_v15  ;;  %v5435_v23 = vmul.f32 %v5421_v57, %v5403_v28 }
 0x91c   : > { %v5301_v32 = vpop.f32.mrf.mxu3  ;;  %v5324_v36 = vpop.f32.mrf.mxu0 }
 0x91d   : > { %v5363_v8 = vmax.f32 %v5301_v32, 0.0  ;;  %v5364_v45 = vmax.f32 %v5324_v36, 0.0 }
 0x91f   : > { %v5387_v44 = vmul.f32 %v8969_v49, %v5363_v8  ;;  %v5388_v29 = vmul.f32 %v8969_v49, %v5364_v45 }
 0x921   : > { %v5409_v13 = vadd.f32 %v8973_v22, %v5387_v44  ;;  %v5410_v61 = vadd.f32 %v8973_v22, %v5388_v29 }
 0x923   : > { %v5441_v50 = vmul.f32 %v5420_v37, %v5409_v13  ;;  %v5442_v47 = vmul.f32 %v5421_v57, %v5410_v61 }
 0x925   : > { %5827 = vmatpush.msk.msra.mxu2 %vm5451_vm2, %v5441_v50  ;;  %5830 = vmatpush.msk.msra.mxu3 %vm5451_vm2, %v5442_v47 }
 0x927   : > { %5580 = vmatpush.msra.mxu2 %v5434_v55  ;;  %5603 = vmatpush.msra.mxu3 %v5435_v23 }
 0x928   : > { %5828 = vmatmul.msk.f32.vlgmr.msra.gmra.mxu2 %vm5444_vm6, %v9003_v6  ;;  %5831 = vmatmul.msk.f32.vlgmr.msra.gmra.mxu3 %vm5444_vm6, %v9003_v6 }
 0x92c   : > { %v5344_v9 = vpop.f32.mrf.mxu1 }
 0x92d   : > { %v5358_v48 = vmax.f32 %v5344_v9, 0.0 }
 0x92f   : > { %v5382_v19 = vmul.f32 %v8975_v2, %v5358_v48 }
 0x930   : > { %5829 = vmatmul.msk.f32.gmra.mxu2 %vm5444_vm6, %v5413_v40  ;;  %5832 = vmatmul.msk.f32.gmra.mxu3 %vm5444_vm6, %v5413_v40 }
 0x931   : > { %v5404_v12 = vadd.f32 %v8979_v39, %v5382_v19 }
 0x933   : > { %v5436_v4 = vmul.f32 %v5422_v43, %v5404_v12 }
 0x934   : > { %v5347_v56 = vpop.f32.mrf.mxu1 }
 0x935   : > { %v5365_v53 = vmax.f32 %v5347_v56, 0.0 }
 0x937   : > { %v5389_v54 = vmul.f32 %v8969_v49, %v5365_v53 }
 0x939   : > { %v5411_v46 = vadd.f32 %v8973_v22, %v5389_v54 }
 0x93b   : > { %v5443_v60 = vmul.f32 %v5422_v43, %v5411_v46 }
 0x93d   : > { %5833 = vmatpush.msk.msrb.mxu0 %vm5451_vm2, %v5443_v60 }
 0x93f   : > { %5626 = vmatpush.msrb.mxu0 %v5436_v4 }
 0x940   : > { %5834 = vmatmul.msk.f32.vlgmr.msrb.gmra.mxu0 %vm5444_vm6, %v9003_v6 }
 0x948   : > { %5835 = vmatmul.msk.f32.gmra.mxu0 %vm5444_vm6, %v5413_v40 }
 0x96a   : > { %v5513_v41 = vpop.f32.mrf.mxu3  ;;  %v5536_v49 = vpop.f32.mrf.mxu0 }
 0x970   : > { %v5490_v2 = vpop.f32.mrf.mxu2 }
 0x971   : > { %v5634_v39 = vadd.f32 %v5513_v41, %v5490_v2 }
 0x972   : > { %v5516_v35 = vpop.f32.mrf.mxu3  ;;  %v5539_v52 = vpop.f32.mrf.mxu0 }
 0x973   : > { %v5635_v22 = vadd.f32 %v5634_v39, %v5536_v49  ;;  %v5643_v20 = vsel %vm5451_vm2, %v5516_v35, 0.0  ;;  %v5645_v33 = vsel %vm5451_vm2, %v5539_v52, 0.0 }
 0x978   : > { %v5493_v16 = vpop.f32.mrf.mxu2 }
 0x979   : > { %v5642_v17 = vsel %vm5451_vm2, %v5493_v16, 0.0 }
 0x97a   : > { %v5559_v5 = vpop.f32.mrf.mxu1  ;;  %v5644_v1 = vadd.f32 %v5643_v20, %v5642_v17 }
 0x97b   : > { %v5636_v7 = vadd.f32 %v5635_v22, %v5559_v5 }
 0x97c   : > { %v5646_v34 = vadd.f32 %v5645_v33, %v5644_v1 }
 0x982   : > { %v5562_v11 = vpop.f32.mrf.mxu1 }
 0x983   : > { %v5647_v24 = vsel %vm5451_vm2, %v5562_v11, 0.0 }
 0x984   : > { %v5648_v21 = vadd.f32 %v5647_v24, %v5646_v34 }
 0x9ab   : > { %v5582_v26 = vpop.f32.mrf.mxu2  ;;  %v5605_v25 = vpop.f32.mrf.mxu3 }
 0x9ac   : > { %v5637_v14 = vadd.f32 %v5636_v7, %v5582_v26 }
 0x9ae   : > { %v5638_v58 = vadd.f32 %v5637_v14, %v5605_v25 }
 0x9b3   : > { %v5585_v59 = vpop.f32.mrf.mxu2  ;;  %v5608_v62 = vpop.f32.mrf.mxu3 }
 0x9b4   : > { %v5649_v31 = vsel %vm5451_vm2, %v5585_v59, 0.0  ;;  %v5651_v38 = vsel %vm5451_vm2, %v5608_v62, 0.0 }
 0x9b5   : > { %v5650_v0 = vadd.f32 %v5649_v31, %v5648_v21 }
 0x9b7   : > { %v5652_v3 = vadd.f32 %v5651_v38, %v5650_v0 }
 0x9bd   : > { %v5628_v6 = vpop.f32.mrf.mxu0 }
 0x9be   : > { %v5639_v30 = vadd.f32 %v5638_v58, %v5628_v6 }
 0x9c0   : > { %5640 = vadd.xlane.f32.xlu2 %v5639_v30 }
 0x9c5   : > { %v5631_v40 = vpop.f32.mrf.mxu0 }
 0x9c6   : > { %v5653_v27 = vsel %vm5451_vm2, %v5631_v40, 0.0 }
 0x9c7   : > { %v5654_v63 = vadd.f32 %v5653_v27, %v5652_v3 }
 0x9c9   : > { %5655 = vadd.xlane.f32.xlu1 %v5654_v63 }
 0xa33   : > { %v5641_v10 = vpop.xlane.xlu2 %5640 }
 0xa34   : > { %5658 = vst.msk [vmem:[%s194_s11] sm:$0xff] %vm5657_vm1, %v5641_v10 }
 0xa3c   : > { %v5656_v51 = vpop.xlane.xlu1 %5655 }
 0xa3d   : > { %5660 = vst.msk [vmem:[%s194_s11 + $0x8] sm:$0x3] %vm5659_vm3, %v5656_v51 }
 0xa3e PF: > { %s14_s15 = sadd.s32 1, %s5997_s15  }
 0xa3f   : > { %p11_p4 = scmp.ge.s32.totalorder %s14_s15, 4  }
 0xa41   :  { %13 = sbr.rel (!%p11_p4) target bundleno = 1 (0x1), region = 90 }

</bundles_post_ra>
